<compile_context>
chip_gen: v7x
topology: tpu7x:2x2x1
jax: 0.10.0
libtpu: 0.0.40
codegen_flags: <defaults>
</compile_context>

<pallas_src>
import numpy as np
import jax
import jax.numpy as jnp
from jax import lax
from jax.experimental import pallas as pl
from jax.experimental.pallas import tpu as pltpu

# ----- problem sizes implied by the module (regid='regress1') -----
B = 2
C_IN = 512                                # conv_in['regress1']
H = W = 14                                # AvgPool(5, stride 3) -> 4x4; 128*4*4 == 2048
POOL_K, POOL_S = 5, 3
H_OUT = (H - POOL_K) // POOL_S + 1        # 4
W_OUT = (W - POOL_K) // POOL_S + 1        # 4
S_OUT = H_OUT * W_OUT                     # 16 pooled spatial positions
C_PROJ = 128
FC_IN = C_PROJ * S_OUT                    # 2048
FC_HID = 1024
HEAD_OUT = 8                              # [xyz(3) | wpqr(4) | pad(1)]

# FC1 reduction pipelining: SG grid steps of S_PER_STEP spatial positions each.
SG = 2
S_PER_STEP = S_OUT // SG                  # 8
K_STEP = S_PER_STEP * C_PROJ              # 1024 reordered W1 rows per step

# dot_general dimension numbers contracting dim 0 of both operands (lhs^T @ rhs).
_TN_DIMS = (((0,), (0,)), ((), ()))


# ------------------------------------------------------------------
# Single fused kernel.
#   Grid: (SG,) over the FC1 reduction axis (groups of S_PER_STEP positions).
#   Step 0: pooling (constant matmul), per-batch 1x1 conv + bias + ReLU in
#           (spatial, channel) layout, scatter into the flat FC1 activation.
#   Every step: one (B, K_STEP) @ (K_STEP, FC_HID) bf16 MXU push accumulated
#           into a resident f32 scratch; the per-step W1 block DMA is
#           double-buffered by the BlockSpec pipeline.
#   Last step: ReLU, FC2 head into 8 lanes, L2-normalize the wpqr lanes, store.
# ------------------------------------------------------------------
def fused_regression_kernel(x_ref, pool_ref, wct_ref, bc_ref, w1_ref, b1_ref,
                            wh_ref, bh_ref, out_ref, proj_sc, hacc_sc):
    k = pl.program_id(0)

    @pl.when(k == 0)
    def _projection():
        # AvgPool(5,3) as one constant matmul on the MXU: (B*C, HW) @ (HW, S).
        pooled = jnp.dot(x_ref[...], pool_ref[...],
                         preferred_element_type=jnp.float32)        # (B*C_IN, S_OUT)
        for b in range(B):                                           # static unroll
            pooled_b = pooled[b * C_IN:(b + 1) * C_IN, :]            # (C_IN, S_OUT)
            # 1x1 conv with spatial on rows: (C,S)^T @ (C,128) -> (S,128).
            conv = lax.dot_general(pooled_b, wct_ref[...],
                                   dimension_numbers=_TN_DIMS,
                                   preferred_element_type=jnp.float32)
            conv = jnp.maximum(conv + bc_ref[...], 0.0)              # bias + ReLU
            # Row-major flatten (flat = s*C_PROJ + c) matches the reordered W1;
            # write each spatial row into its (step, batch, lane-group) slot.
            for s in range(S_OUT):
                g, j = divmod(s, S_PER_STEP)
                proj_sc[g:g + 1, b:b + 1, j * C_PROJ:(j + 1) * C_PROJ] = (
                    conv[s:s + 1, :].reshape(1, 1, C_PROJ))
        hacc_sc[...] = jnp.zeros_like(hacc_sc)

    # FC1 partial sum: one big-K MXU push per grid step.
    lhs = proj_sc[k].astype(jnp.bfloat16)                            # (B, K_STEP)
    hacc_sc[...] += jnp.dot(lhs, w1_ref[...],
                            preferred_element_type=jnp.float32)      # (B, FC_HID)

    @pl.when(k == SG - 1)
    def _head():
        h = jnp.maximum(hacc_sc[...] + b1_ref[...], 0.0)             # ReLU (Dropout = id)
        out = jnp.dot(h, wh_ref[...],
                      preferred_element_type=jnp.float32) + bh_ref[...]  # (B, 8)
        # L2-normalize lanes 3..6 (wpqr); xyz lanes 0..2 and pad lane 7 pass through.
        col = lax.broadcasted_iota(jnp.int32, out.shape, 1)
        is_q = (col >= 3) & (col < 7)
        sq = jnp.where(is_q, out * out, 0.0)
        norm = jnp.sqrt(jnp.sum(sq, axis=1, keepdims=True))
        scale = 1.0 / jnp.maximum(norm, 1e-12)                        # F.normalize eps
        out_ref[...] = jnp.where(is_q, out * scale, out)


def _fused_call(x2, prepped):
    pool_m, wc_t, bc_r, w1_ro, b1_r, wh_t, bh_r = prepped
    return pl.pallas_call(
        fused_regression_kernel,
        out_shape=jax.ShapeDtypeStruct((B, HEAD_OUT), jnp.float32),
        grid_spec=pltpu.PrefetchScalarGridSpec(
            num_scalar_prefetch=0,
            grid=(SG,),
            in_specs=[
                pl.BlockSpec((B * C_IN, H * W), lambda k: (0, 0)),     # x2     (1024, 196)
                pl.BlockSpec((H * W, S_OUT), lambda k: (0, 0)),        # pool_m (196, 16)
                pl.BlockSpec((C_IN, C_PROJ), lambda k: (0, 0)),        # wc_t   (512, 128)
                pl.BlockSpec((1, C_PROJ), lambda k: (0, 0)),           # bc     (1, 128)
                pl.BlockSpec((K_STEP, FC_HID), lambda k: (k, 0)),      # W1 blk (1024,1024) bf16
                pl.BlockSpec((1, FC_HID), lambda k: (0, 0)),           # b1
                pl.BlockSpec((FC_HID, HEAD_OUT), lambda k: (0, 0)),    # [wx|wq|0]^T (1024, 8)
                pl.BlockSpec((1, HEAD_OUT), lambda k: (0, 0)),         # [bx|bq|0]
            ],
            out_specs=pl.BlockSpec((B, HEAD_OUT), lambda k: (0, 0)),
            scratch_shapes=[
                pltpu.VMEM((SG, B, K_STEP), jnp.float32),              # flat proj activations
                pltpu.VMEM((B, FC_HID), jnp.float32),                  # FC1 accumulator
            ],
        ),
        compiler_params=pltpu.CompilerParams(
            dimension_semantics=("arbitrary",)),
    )(x2, pool_m, wc_t, bc_r, w1_ro, b1_r, wh_t, bh_r)


# ------------------------------------------------------------------
# One-time preparation of constants / reshaped / reordered weights.
# ------------------------------------------------------------------
def _build_pool_matrix():
    """AvgPool2d(5, stride 3) on a 14x14 map as a constant (H*W, S_OUT) operator."""
    P = np.zeros((H * W, S_OUT), dtype=np.float32)
    for s in range(S_OUT):
        ho, wo = divmod(s, W_OUT)
        for kh in range(POOL_K):
            for kw in range(POOL_K):
                P[(POOL_S * ho + kh) * W + (POOL_S * wo + kw), s] = 1.0 / (POOL_K * POOL_K)
    return jnp.asarray(P)


def prepare_params(params):
    """Run ONCE at init: all transposes / reorders / concats / casts happen here."""
    wc, bc, w1, b1, wx, bx, wq, bq = params
    pool_m = _build_pool_matrix()                               # (196, 16)
    wc_t = jnp.transpose(wc)                                    # (512, 128)
    bc_r = bc.reshape(1, C_PROJ)
    # PyTorch consumes p.view(B,-1) with flat index c*16+s; the kernel produces
    # the projection with flat index s*128+c, so permute W1's input rows once:
    # new row s*128+c <- old row c*16+s.
    w1_t = jnp.transpose(w1)                                    # (2048, 1024), row = c*16+s
    w1_ro = (w1_t.reshape(C_PROJ, S_OUT, FC_HID)
                 .transpose(1, 0, 2)
                 .reshape(FC_IN, FC_HID)
                 .astype(jnp.bfloat16))                         # (2048, 1024), row = s*128+c
    b1_r = b1.reshape(1, FC_HID)
    wh_t = jnp.transpose(jnp.concatenate(
        [wx, wq, jnp.zeros((1, FC_HID), jnp.float32)], axis=0))  # (1024, 8)
    bh_r = jnp.concatenate(
        [bx, bq, jnp.zeros((1,), jnp.float32)]).reshape(1, HEAD_OUT)
    return tuple(jax.device_put(a)
                 for a in (pool_m, wc_t, bc_r, w1_ro, b1_r, wh_t, bh_r))


@jax.jit
def regression_forward(x, prepped):
    """x: (B, C_IN, H, W) NCHW float32 -> (xyz (B,3), wpqr (B,4))."""
    # Only per-call glue: a FREE (contiguous) NCHW reshape -- no transpose.
    x2 = x.reshape(B * C_IN, H * W)                             # (1024, 196)
    out = _fused_call(x2, prepped)                              # (B, 8)
    return out[:, 0:3], out[:, 3:7]


# ------------------------------------------------------------------
# Pure-JAX reference (float32) for correctness checking.
# ------------------------------------------------------------------
def reference_forward(x, params):
    wc, bc, w1, b1, wx, bx, wq, bq = params
    pooled = jax.lax.reduce_window(x, 0.0, jax.lax.add,
                                   (1, 1, POOL_K, POOL_K),
                                   (1, 1, POOL_S, POOL_S), 'VALID') / float(POOL_K * POOL_K)
    conv = jnp.einsum('bchw,oc->bohw', pooled, wc) + bc[None, :, None, None]
    conv = jnp.maximum(conv, 0.0)
    flat = conv.reshape(B, -1)
    h = jnp.maximum(flat @ w1.T + b1, 0.0)
    xyz = h @ wx.T + bx
    wpqr = h @ wq.T + bq
    n = jnp.sqrt(jnp.sum(wpqr ** 2, axis=1, keepdims=True))
    return xyz, wpqr / jnp.maximum(n, 1e-12)


if __name__ == "__main__":
    key = jax.random.PRNGKey(0)
    ks = jax.random.split(key, 9)

    # deterministic synthetic parameters (shapes from the module __init__)
    wc = jax.random.normal(ks[0], (C_PROJ, C_IN), jnp.float32) * 0.02   # Conv2d 1x1
    bc = jax.random.normal(ks[1], (C_PROJ,), jnp.float32) * 0.02
    w1 = jax.random.normal(ks[2], (FC_HID, FC_IN), jnp.float32) * 0.02  # Linear(2048,1024)
    b1 = jax.random.normal(ks[3], (FC_HID,), jnp.float32) * 0.02
    wx = jax.random.normal(ks[4], (3, FC_HID), jnp.float32) * 0.02      # Linear(1024,3)
    bx = jax.random.normal(ks[5], (3,), jnp.float32) * 0.02
    wq = jax.random.normal(ks[6], (4, FC_HID), jnp.float32) * 0.02      # Linear(1024,4)
    bq = jax.random.normal(ks[7], (4,), jnp.float32) * 0.02
    params = (wc, bc, w1, b1, wx, bx, wq, bq)

    x = jax.random.normal(ks[8], (B, C_IN, H, W), jnp.float32) * 0.1    # NCHW input

    prepped = prepare_params(params)                                     # one-time prep

    xyz, wpqr = jax.block_until_ready(regression_forward(x, prepped))
    xyz_ref, wpqr_ref = jax.block_until_ready(reference_forward(x, params))

    np.testing.assert_allclose(np.asarray(xyz), np.asarray(xyz_ref), rtol=2e-2, atol=2e-2)
    np.testing.assert_allclose(np.asarray(wpqr), np.asarray(wpqr_ref), rtol=2e-2, atol=2e-2)

    print("KERNEL_OK")
</pallas_src>

<mosaic_0001>
module attributes {stable_mosaic.version = 11 : i64} {
  func.func @fused_regression_kernel(%arg0: i32, %arg1: memref<1024x196xf32, #tpu.memory_space<vmem>>, %arg2: memref<196x16xf32, #tpu.memory_space<vmem>>, %arg3: memref<512x128xf32, #tpu.memory_space<vmem>>, %arg4: memref<1x128xf32, #tpu.memory_space<vmem>>, %arg5: memref<1024x1024xbf16, #tpu.memory_space<vmem>>, %arg6: memref<1x1024xf32, #tpu.memory_space<vmem>>, %arg7: memref<1024x8xf32, #tpu.memory_space<vmem>>, %arg8: memref<1x8xf32, #tpu.memory_space<vmem>>, %arg9: memref<2x8xf32, #tpu.memory_space<vmem>>, %arg10: memref<2x2x1024xf32, #tpu.memory_space<vmem>>, %arg11: memref<2x1024xf32, #tpu.memory_space<vmem>>) attributes {dimension_semantics = [#tpu.dimension_semantics<arbitrary>], iteration_bounds = array<i64: 2>, scalar_prefetch = 0 : i64, scratch_operands = 2 : i64, tpu.core_type = #tpu.core_type<tc>, window_params = [{pipeline_mode = #tpu.pipeline_mode<synchronous>, transform_indices = @transform_0, window_bounds = array<i64: 1024, 196>}, {pipeline_mode = #tpu.pipeline_mode<synchronous>, transform_indices = @transform_1, window_bounds = array<i64: 196, 16>}, {pipeline_mode = #tpu.pipeline_mode<synchronous>, transform_indices = @transform_2, window_bounds = array<i64: 512, 128>}, {pipeline_mode = #tpu.pipeline_mode<synchronous>, transform_indices = @transform_3, window_bounds = array<i64: 1, 128>}, {transform_indices = @transform_4, window_bounds = array<i64: 1024, 1024>}, {pipeline_mode = #tpu.pipeline_mode<synchronous>, transform_indices = @transform_5, window_bounds = array<i64: 1, 1024>}, {pipeline_mode = #tpu.pipeline_mode<synchronous>, transform_indices = @transform_6, window_bounds = array<i64: 1024, 8>}, {pipeline_mode = #tpu.pipeline_mode<synchronous>, transform_indices = @transform_7, window_bounds = array<i64: 1, 8>}, {pipeline_mode = #tpu.pipeline_mode<synchronous>, transform_indices = @transform_8, window_bounds = array<i64: 2, 8>}]} {
    %c0_i32 = arith.constant 0 : i32
    %0 = arith.cmpi eq, %arg0, %c0_i32 : i32
    %1 = arith.extui %0 : i1 to i32
    %c0_i32_0 = arith.constant 0 : i32
    %2 = arith.cmpi ne, %1, %c0_i32_0 : i32
    scf.if %2 {
      %c0_9 = arith.constant 0 : index
      %c0_10 = arith.constant 0 : index
      %15 = vector.load %arg1[%c0_9, %c0_10] : memref<1024x196xf32, #tpu.memory_space<vmem>>, vector<1024x196xf32>
      %c0_11 = arith.constant 0 : index
      %c0_12 = arith.constant 0 : index
      %16 = vector.load %arg2[%c0_11, %c0_12] : memref<196x16xf32, #tpu.memory_space<vmem>>, vector<196x16xf32>
      %cst_13 = arith.constant dense<0.000000e+00> : vector<1024x16xf32>
      %17 = tpu.matmul %15, %16, %cst_13 {dimension_numbers = #tpu.dot_dimension_numbers<[1], [0], [0], [1], [0, 0, 1, 1], [], []>} : vector<1024x196xf32>, vector<196x16xf32>, vector<1024x16xf32> -> vector<1024x16xf32>
      %18 = vector.extract_strided_slice %17 {offsets = [0, 0], sizes = [512, 16], strides = [1, 1]} : vector<1024x16xf32> to vector<512x16xf32>
      %c0_14 = arith.constant 0 : index
      %c0_15 = arith.constant 0 : index
      %19 = vector.load %arg3[%c0_14, %c0_15] : memref<512x128xf32, #tpu.memory_space<vmem>>, vector<512x128xf32>
      %cst_16 = arith.constant dense<0.000000e+00> : vector<16x128xf32>
      %20 = tpu.matmul %18, %19, %cst_16 {dimension_numbers = #tpu.dot_dimension_numbers<[0], [0], [1], [1], [0, 1, 1, 1], [], []>} : vector<512x16xf32>, vector<512x128xf32>, vector<16x128xf32> -> vector<16x128xf32>
      %c0_17 = arith.constant 0 : index
      %c0_18 = arith.constant 0 : index
      %21 = vector.load %arg4[%c0_17, %c0_18] : memref<1x128xf32, #tpu.memory_space<vmem>>, vector<1x128xf32>
      %22 = vector.broadcast %21 : vector<1x128xf32> to vector<16x128xf32>
      %23 = arith.addf %20, %22 : vector<16x128xf32>
      %cst_19 = arith.constant 0.000000e+00 : f32
      %24 = vector.broadcast %cst_19 : f32 to vector<16x128xf32>
      %25 = arith.maximumf %23, %24 : vector<16x128xf32>
      %26 = vector.extract_strided_slice %25 {offsets = [0, 0], sizes = [1, 128], strides = [1, 1]} : vector<16x128xf32> to vector<1x128xf32>
      %27 = vector.shape_cast %26 : vector<1x128xf32> to vector<1x1x128xf32>
      %c0_20 = arith.constant 0 : index
      %c0_21 = arith.constant 0 : index
      %c0_22 = arith.constant 0 : index
      %28 = vector.load %arg10[%c0_20, %c0_21, %c0_22] : memref<2x2x1024xf32, #tpu.memory_space<vmem>>, vector<1x1x128xf32>
      tpu.vector_store %arg10[%c0_20, %c0_21, %c0_22], %27 {strides = array<i32>} : memref<2x2x1024xf32, #tpu.memory_space<vmem>>, vector<1x1x128xf32>,
      %29 = vector.extract_strided_slice %25 {offsets = [1, 0], sizes = [1, 128], strides = [1, 1]} : vector<16x128xf32> to vector<1x128xf32>
      %30 = vector.shape_cast %29 : vector<1x128xf32> to vector<1x1x128xf32>
      %c0_23 = arith.constant 0 : index
      %c0_24 = arith.constant 0 : index
      %c128 = arith.constant 128 : index
      %31 = vector.load %arg10[%c0_23, %c0_24, %c128] : memref<2x2x1024xf32, #tpu.memory_space<vmem>>, vector<1x1x128xf32>
      tpu.vector_store %arg10[%c0_23, %c0_24, %c128], %30 {strides = array<i32>} : memref<2x2x1024xf32, #tpu.memory_space<vmem>>, vector<1x1x128xf32>,
      %32 = vector.extract_strided_slice %25 {offsets = [2, 0], sizes = [1, 128], strides = [1, 1]} : vector<16x128xf32> to vector<1x128xf32>
      %33 = vector.shape_cast %32 : vector<1x128xf32> to vector<1x1x128xf32>
      %c0_25 = arith.constant 0 : index
      %c0_26 = arith.constant 0 : index
      %c256 = arith.constant 256 : index
      %34 = vector.load %arg10[%c0_25, %c0_26, %c256] : memref<2x2x1024xf32, #tpu.memory_space<vmem>>, vector<1x1x128xf32>
      tpu.vector_store %arg10[%c0_25, %c0_26, %c256], %33 {strides = array<i32>} : memref<2x2x1024xf32, #tpu.memory_space<vmem>>, vector<1x1x128xf32>,
      %35 = vector.extract_strided_slice %25 {offsets = [3, 0], sizes = [1, 128], strides = [1, 1]} : vector<16x128xf32> to vector<1x128xf32>
      %36 = vector.shape_cast %35 : vector<1x128xf32> to vector<1x1x128xf32>
      %c0_27 = arith.constant 0 : index
      %c0_28 = arith.constant 0 : index
      %c384 = arith.constant 384 : index
      %37 = vector.load %arg10[%c0_27, %c0_28, %c384] : memref<2x2x1024xf32, #tpu.memory_space<vmem>>, vector<1x1x128xf32>
      tpu.vector_store %arg10[%c0_27, %c0_28, %c384], %36 {strides = array<i32>} : memref<2x2x1024xf32, #tpu.memory_space<vmem>>, vector<1x1x128xf32>,
      %38 = vector.extract_strided_slice %25 {offsets = [4, 0], sizes = [1, 128], strides = [1, 1]} : vector<16x128xf32> to vector<1x128xf32>
      %39 = vector.shape_cast %38 : vector<1x128xf32> to vector<1x1x128xf32>
      %c0_29 = arith.constant 0 : index
      %c0_30 = arith.constant 0 : index
      %c512 = arith.constant 512 : index
      %40 = vector.load %arg10[%c0_29, %c0_30, %c512] : memref<2x2x1024xf32, #tpu.memory_space<vmem>>, vector<1x1x128xf32>
      tpu.vector_store %arg10[%c0_29, %c0_30, %c512], %39 {strides = array<i32>} : memref<2x2x1024xf32, #tpu.memory_space<vmem>>, vector<1x1x128xf32>,
      %41 = vector.extract_strided_slice %25 {offsets = [5, 0], sizes = [1, 128], strides = [1, 1]} : vector<16x128xf32> to vector<1x128xf32>
      %42 = vector.shape_cast %41 : vector<1x128xf32> to vector<1x1x128xf32>
      %c0_31 = arith.constant 0 : index
      %c0_32 = arith.constant 0 : index
      %c640 = arith.constant 640 : index
      %43 = vector.load %arg10[%c0_31, %c0_32, %c640] : memref<2x2x1024xf32, #tpu.memory_space<vmem>>, vector<1x1x128xf32>
      tpu.vector_store %arg10[%c0_31, %c0_32, %c640], %42 {strides = array<i32>} : memref<2x2x1024xf32, #tpu.memory_space<vmem>>, vector<1x1x128xf32>,
      %44 = vector.extract_strided_slice %25 {offsets = [6, 0], sizes = [1, 128], strides = [1, 1]} : vector<16x128xf32> to vector<1x128xf32>
      %45 = vector.shape_cast %44 : vector<1x128xf32> to vector<1x1x128xf32>
      %c0_33 = arith.constant 0 : index
      %c0_34 = arith.constant 0 : index
      %c768 = arith.constant 768 : index
      %46 = vector.load %arg10[%c0_33, %c0_34, %c768] : memref<2x2x1024xf32, #tpu.memory_space<vmem>>, vector<1x1x128xf32>
      tpu.vector_store %arg10[%c0_33, %c0_34, %c768], %45 {strides = array<i32>} : memref<2x2x1024xf32, #tpu.memory_space<vmem>>, vector<1x1x128xf32>,
      %47 = vector.extract_strided_slice %25 {offsets = [7, 0], sizes = [1, 128], strides = [1, 1]} : vector<16x128xf32> to vector<1x128xf32>
      %48 = vector.shape_cast %47 : vector<1x128xf32> to vector<1x1x128xf32>
      %c0_35 = arith.constant 0 : index
      %c0_36 = arith.constant 0 : index
      %c896 = arith.constant 896 : index
      %49 = vector.load %arg10[%c0_35, %c0_36, %c896] : memref<2x2x1024xf32, #tpu.memory_space<vmem>>, vector<1x1x128xf32>
      tpu.vector_store %arg10[%c0_35, %c0_36, %c896], %48 {strides = array<i32>} : memref<2x2x1024xf32, #tpu.memory_space<vmem>>, vector<1x1x128xf32>,
      %50 = vector.extract_strided_slice %25 {offsets = [8, 0], sizes = [1, 128], strides = [1, 1]} : vector<16x128xf32> to vector<1x128xf32>
      %51 = vector.shape_cast %50 : vector<1x128xf32> to vector<1x1x128xf32>
      %c1 = arith.constant 1 : index
      %c0_37 = arith.constant 0 : index
      %c0_38 = arith.constant 0 : index
      %52 = vector.load %arg10[%c1, %c0_37, %c0_38] : memref<2x2x1024xf32, #tpu.memory_space<vmem>>, vector<1x1x128xf32>
      tpu.vector_store %arg10[%c1, %c0_37, %c0_38], %51 {strides = array<i32>} : memref<2x2x1024xf32, #tpu.memory_space<vmem>>, vector<1x1x128xf32>,
      %53 = vector.extract_strided_slice %25 {offsets = [9, 0], sizes = [1, 128], strides = [1, 1]} : vector<16x128xf32> to vector<1x128xf32>
      %54 = vector.shape_cast %53 : vector<1x128xf32> to vector<1x1x128xf32>
      %c1_39 = arith.constant 1 : index
      %c0_40 = arith.constant 0 : index
      %c128_41 = arith.constant 128 : index
      %55 = vector.load %arg10[%c1_39, %c0_40, %c128_41] : memref<2x2x1024xf32, #tpu.memory_space<vmem>>, vector<1x1x128xf32>
      tpu.vector_store %arg10[%c1_39, %c0_40, %c128_41], %54 {strides = array<i32>} : memref<2x2x1024xf32, #tpu.memory_space<vmem>>, vector<1x1x128xf32>,
      %56 = vector.extract_strided_slice %25 {offsets = [10, 0], sizes = [1, 128], strides = [1, 1]} : vector<16x128xf32> to vector<1x128xf32>
      %57 = vector.shape_cast %56 : vector<1x128xf32> to vector<1x1x128xf32>
      %c1_42 = arith.constant 1 : index
      %c0_43 = arith.constant 0 : index
      %c256_44 = arith.constant 256 : index
      %58 = vector.load %arg10[%c1_42, %c0_43, %c256_44] : memref<2x2x1024xf32, #tpu.memory_space<vmem>>, vector<1x1x128xf32>
      tpu.vector_store %arg10[%c1_42, %c0_43, %c256_44], %57 {strides = array<i32>} : memref<2x2x1024xf32, #tpu.memory_space<vmem>>, vector<1x1x128xf32>,
      %59 = vector.extract_strided_slice %25 {offsets = [11, 0], sizes = [1, 128], strides = [1, 1]} : vector<16x128xf32> to vector<1x128xf32>
      %60 = vector.shape_cast %59 : vector<1x128xf32> to vector<1x1x128xf32>
      %c1_45 = arith.constant 1 : index
      %c0_46 = arith.constant 0 : index
      %c384_47 = arith.constant 384 : index
      %61 = vector.load %arg10[%c1_45, %c0_46, %c384_47] : memref<2x2x1024xf32, #tpu.memory_space<vmem>>, vector<1x1x128xf32>
      tpu.vector_store %arg10[%c1_45, %c0_46, %c384_47], %60 {strides = array<i32>} : memref<2x2x1024xf32, #tpu.memory_space<vmem>>, vector<1x1x128xf32>,
      %62 = vector.extract_strided_slice %25 {offsets = [12, 0], sizes = [1, 128], strides = [1, 1]} : vector<16x128xf32> to vector<1x128xf32>
      %63 = vector.shape_cast %62 : vector<1x128xf32> to vector<1x1x128xf32>
      %c1_48 = arith.constant 1 : index
      %c0_49 = arith.constant 0 : index
      %c512_50 = arith.constant 512 : index
      %64 = vector.load %arg10[%c1_48, %c0_49, %c512_50] : memref<2x2x1024xf32, #tpu.memory_space<vmem>>, vector<1x1x128xf32>
      tpu.vector_store %arg10[%c1_48, %c0_49, %c512_50], %63 {strides = array<i32>} : memref<2x2x1024xf32, #tpu.memory_space<vmem>>, vector<1x1x128xf32>,
      %65 = vector.extract_strided_slice %25 {offsets = [13, 0], sizes = [1, 128], strides = [1, 1]} : vector<16x128xf32> to vector<1x128xf32>
      %66 = vector.shape_cast %65 : vector<1x128xf32> to vector<1x1x128xf32>
      %c1_51 = arith.constant 1 : index
      %c0_52 = arith.constant 0 : index
      %c640_53 = arith.constant 640 : index
      %67 = vector.load %arg10[%c1_51, %c0_52, %c640_53] : memref<2x2x1024xf32, #tpu.memory_space<vmem>>, vector<1x1x128xf32>
      tpu.vector_store %arg10[%c1_51, %c0_52, %c640_53], %66 {strides = array<i32>} : memref<2x2x1024xf32, #tpu.memory_space<vmem>>, vector<1x1x128xf32>,
      %68 = vector.extract_strided_slice %25 {offsets = [14, 0], sizes = [1, 128], strides = [1, 1]} : vector<16x128xf32> to vector<1x128xf32>
      %69 = vector.shape_cast %68 : vector<1x128xf32> to vector<1x1x128xf32>
      %c1_54 = arith.constant 1 : index
      %c0_55 = arith.constant 0 : index
      %c768_56 = arith.constant 768 : index
      %70 = vector.load %arg10[%c1_54, %c0_55, %c768_56] : memref<2x2x1024xf32, #tpu.memory_space<vmem>>, vector<1x1x128xf32>
      tpu.vector_store %arg10[%c1_54, %c0_55, %c768_56], %69 {strides = array<i32>} : memref<2x2x1024xf32, #tpu.memory_space<vmem>>, vector<1x1x128xf32>,
      %71 = vector.extract_strided_slice %25 {offsets = [15, 0], sizes = [1, 128], strides = [1, 1]} : vector<16x128xf32> to vector<1x128xf32>
      %72 = vector.shape_cast %71 : vector<1x128xf32> to vector<1x1x128xf32>
      %c1_57 = arith.constant 1 : index
      %c0_58 = arith.constant 0 : index
      %c896_59 = arith.constant 896 : index
      %73 = vector.load %arg10[%c1_57, %c0_58, %c896_59] : memref<2x2x1024xf32, #tpu.memory_space<vmem>>, vector<1x1x128xf32>
      tpu.vector_store %arg10[%c1_57, %c0_58, %c896_59], %72 {strides = array<i32>} : memref<2x2x1024xf32, #tpu.memory_space<vmem>>, vector<1x1x128xf32>,
      %74 = vector.extract_strided_slice %17 {offsets = [512, 0], sizes = [512, 16], strides = [1, 1]} : vector<1024x16xf32> to vector<512x16xf32>
      %c0_60 = arith.constant 0 : index
      %c0_61 = arith.constant 0 : index
      %75 = vector.load %arg3[%c0_60, %c0_61] : memref<512x128xf32, #tpu.memory_space<vmem>>, vector<512x128xf32>
      %cst_62 = arith.constant dense<0.000000e+00> : vector<16x128xf32>
      %76 = tpu.matmul %74, %75, %cst_62 {dimension_numbers = #tpu.dot_dimension_numbers<[0], [0], [1], [1], [0, 1, 1, 1], [], []>} : vector<512x16xf32>, vector<512x128xf32>, vector<16x128xf32> -> vector<16x128xf32>
      %c0_63 = arith.constant 0 : index
      %c0_64 = arith.constant 0 : index
      %77 = vector.load %arg4[%c0_63, %c0_64] : memref<1x128xf32, #tpu.memory_space<vmem>>, vector<1x128xf32>
      %78 = vector.broadcast %77 : vector<1x128xf32> to vector<16x128xf32>
      %79 = arith.addf %76, %78 : vector<16x128xf32>
      %cst_65 = arith.constant 0.000000e+00 : f32
      %80 = vector.broadcast %cst_65 : f32 to vector<16x128xf32>
      %81 = arith.maximumf %79, %80 : vector<16x128xf32>
      %82 = vector.extract_strided_slice %81 {offsets = [0, 0], sizes = [1, 128], strides = [1, 1]} : vector<16x128xf32> to vector<1x128xf32>
      %83 = vector.shape_cast %82 : vector<1x128xf32> to vector<1x1x128xf32>
      %c0_66 = arith.constant 0 : index
      %c1_67 = arith.constant 1 : index
      %c0_68 = arith.constant 0 : index
      %84 = vector.load %arg10[%c0_66, %c1_67, %c0_68] : memref<2x2x1024xf32, #tpu.memory_space<vmem>>, vector<1x1x128xf32>
      tpu.vector_store %arg10[%c0_66, %c1_67, %c0_68], %83 {strides = array<i32>} : memref<2x2x1024xf32, #tpu.memory_space<vmem>>, vector<1x1x128xf32>,
      %85 = vector.extract_strided_slice %81 {offsets = [1, 0], sizes = [1, 128], strides = [1, 1]} : vector<16x128xf32> to vector<1x128xf32>
      %86 = vector.shape_cast %85 : vector<1x128xf32> to vector<1x1x128xf32>
      %c0_69 = arith.constant 0 : index
      %c1_70 = arith.constant 1 : index
      %c128_71 = arith.constant 128 : index
      %87 = vector.load %arg10[%c0_69, %c1_70, %c128_71] : memref<2x2x1024xf32, #tpu.memory_space<vmem>>, vector<1x1x128xf32>
      tpu.vector_store %arg10[%c0_69, %c1_70, %c128_71], %86 {strides = array<i32>} : memref<2x2x1024xf32, #tpu.memory_space<vmem>>, vector<1x1x128xf32>,
      %88 = vector.extract_strided_slice %81 {offsets = [2, 0], sizes = [1, 128], strides = [1, 1]} : vector<16x128xf32> to vector<1x128xf32>
      %89 = vector.shape_cast %88 : vector<1x128xf32> to vector<1x1x128xf32>
      %c0_72 = arith.constant 0 : index
      %c1_73 = arith.constant 1 : index
      %c256_74 = arith.constant 256 : index
      %90 = vector.load %arg10[%c0_72, %c1_73, %c256_74] : memref<2x2x1024xf32, #tpu.memory_space<vmem>>, vector<1x1x128xf32>
      tpu.vector_store %arg10[%c0_72, %c1_73, %c256_74], %89 {strides = array<i32>} : memref<2x2x1024xf32, #tpu.memory_space<vmem>>, vector<1x1x128xf32>,
      %91 = vector.extract_strided_slice %81 {offsets = [3, 0], sizes = [1, 128], strides = [1, 1]} : vector<16x128xf32> to vector<1x128xf32>
      %92 = vector.shape_cast %91 : vector<1x128xf32> to vector<1x1x128xf32>
      %c0_75 = arith.constant 0 : index
      %c1_76 = arith.constant 1 : index
      %c384_77 = arith.constant 384 : index
      %93 = vector.load %arg10[%c0_75, %c1_76, %c384_77] : memref<2x2x1024xf32, #tpu.memory_space<vmem>>, vector<1x1x128xf32>
      tpu.vector_store %arg10[%c0_75, %c1_76, %c384_77], %92 {strides = array<i32>} : memref<2x2x1024xf32, #tpu.memory_space<vmem>>, vector<1x1x128xf32>,
      %94 = vector.extract_strided_slice %81 {offsets = [4, 0], sizes = [1, 128], strides = [1, 1]} : vector<16x128xf32> to vector<1x128xf32>
      %95 = vector.shape_cast %94 : vector<1x128xf32> to vector<1x1x128xf32>
      %c0_78 = arith.constant 0 : index
      %c1_79 = arith.constant 1 : index
      %c512_80 = arith.constant 512 : index
      %96 = vector.load %arg10[%c0_78, %c1_79, %c512_80] : memref<2x2x1024xf32, #tpu.memory_space<vmem>>, vector<1x1x128xf32>
      tpu.vector_store %arg10[%c0_78, %c1_79, %c512_80], %95 {strides = array<i32>} : memref<2x2x1024xf32, #tpu.memory_space<vmem>>, vector<1x1x128xf32>,
      %97 = vector.extract_strided_slice %81 {offsets = [5, 0], sizes = [1, 128], strides = [1, 1]} : vector<16x128xf32> to vector<1x128xf32>
      %98 = vector.shape_cast %97 : vector<1x128xf32> to vector<1x1x128xf32>
      %c0_81 = arith.constant 0 : index
      %c1_82 = arith.constant 1 : index
      %c640_83 = arith.constant 640 : index
      %99 = vector.load %arg10[%c0_81, %c1_82, %c640_83] : memref<2x2x1024xf32, #tpu.memory_space<vmem>>, vector<1x1x128xf32>
      tpu.vector_store %arg10[%c0_81, %c1_82, %c640_83], %98 {strides = array<i32>} : memref<2x2x1024xf32, #tpu.memory_space<vmem>>, vector<1x1x128xf32>,
      %100 = vector.extract_strided_slice %81 {offsets = [6, 0], sizes = [1, 128], strides = [1, 1]} : vector<16x128xf32> to vector<1x128xf32>
      %101 = vector.shape_cast %100 : vector<1x128xf32> to vector<1x1x128xf32>
      %c0_84 = arith.constant 0 : index
      %c1_85 = arith.constant 1 : index
      %c768_86 = arith.constant 768 : index
      %102 = vector.load %arg10[%c0_84, %c1_85, %c768_86] : memref<2x2x1024xf32, #tpu.memory_space<vmem>>, vector<1x1x128xf32>
      tpu.vector_store %arg10[%c0_84, %c1_85, %c768_86], %101 {strides = array<i32>} : memref<2x2x1024xf32, #tpu.memory_space<vmem>>, vector<1x1x128xf32>,
      %103 = vector.extract_strided_slice %81 {offsets = [7, 0], sizes = [1, 128], strides = [1, 1]} : vector<16x128xf32> to vector<1x128xf32>
      %104 = vector.shape_cast %103 : vector<1x128xf32> to vector<1x1x128xf32>
      %c0_87 = arith.constant 0 : index
      %c1_88 = arith.constant 1 : index
      %c896_89 = arith.constant 896 : index
      %105 = vector.load %arg10[%c0_87, %c1_88, %c896_89] : memref<2x2x1024xf32, #tpu.memory_space<vmem>>, vector<1x1x128xf32>
      tpu.vector_store %arg10[%c0_87, %c1_88, %c896_89], %104 {strides = array<i32>} : memref<2x2x1024xf32, #tpu.memory_space<vmem>>, vector<1x1x128xf32>,
      %106 = vector.extract_strided_slice %81 {offsets = [8, 0], sizes = [1, 128], strides = [1, 1]} : vector<16x128xf32> to vector<1x128xf32>
      %107 = vector.shape_cast %106 : vector<1x128xf32> to vector<1x1x128xf32>
      %c1_90 = arith.constant 1 : index
      %c1_91 = arith.constant 1 : index
      %c0_92 = arith.constant 0 : index
      %108 = vector.load %arg10[%c1_90, %c1_91, %c0_92] : memref<2x2x1024xf32, #tpu.memory_space<vmem>>, vector<1x1x128xf32>
      tpu.vector_store %arg10[%c1_90, %c1_91, %c0_92], %107 {strides = array<i32>} : memref<2x2x1024xf32, #tpu.memory_space<vmem>>, vector<1x1x128xf32>,
      %109 = vector.extract_strided_slice %81 {offsets = [9, 0], sizes = [1, 128], strides = [1, 1]} : vector<16x128xf32> to vector<1x128xf32>
      %110 = vector.shape_cast %109 : vector<1x128xf32> to vector<1x1x128xf32>
      %c1_93 = arith.constant 1 : index
      %c1_94 = arith.constant 1 : index
      %c128_95 = arith.constant 128 : index
      %111 = vector.load %arg10[%c1_93, %c1_94, %c128_95] : memref<2x2x1024xf32, #tpu.memory_space<vmem>>, vector<1x1x128xf32>
      tpu.vector_store %arg10[%c1_93, %c1_94, %c128_95], %110 {strides = array<i32>} : memref<2x2x1024xf32, #tpu.memory_space<vmem>>, vector<1x1x128xf32>,
      %112 = vector.extract_strided_slice %81 {offsets = [10, 0], sizes = [1, 128], strides = [1, 1]} : vector<16x128xf32> to vector<1x128xf32>
      %113 = vector.shape_cast %112 : vector<1x128xf32> to vector<1x1x128xf32>
      %c1_96 = arith.constant 1 : index
      %c1_97 = arith.constant 1 : index
      %c256_98 = arith.constant 256 : index
      %114 = vector.load %arg10[%c1_96, %c1_97, %c256_98] : memref<2x2x1024xf32, #tpu.memory_space<vmem>>, vector<1x1x128xf32>
      tpu.vector_store %arg10[%c1_96, %c1_97, %c256_98], %113 {strides = array<i32>} : memref<2x2x1024xf32, #tpu.memory_space<vmem>>, vector<1x1x128xf32>,
      %115 = vector.extract_strided_slice %81 {offsets = [11, 0], sizes = [1, 128], strides = [1, 1]} : vector<16x128xf32> to vector<1x128xf32>
      %116 = vector.shape_cast %115 : vector<1x128xf32> to vector<1x1x128xf32>
      %c1_99 = arith.constant 1 : index
      %c1_100 = arith.constant 1 : index
      %c384_101 = arith.constant 384 : index
      %117 = vector.load %arg10[%c1_99, %c1_100, %c384_101] : memref<2x2x1024xf32, #tpu.memory_space<vmem>>, vector<1x1x128xf32>
      tpu.vector_store %arg10[%c1_99, %c1_100, %c384_101], %116 {strides = array<i32>} : memref<2x2x1024xf32, #tpu.memory_space<vmem>>, vector<1x1x128xf32>,
      %118 = vector.extract_strided_slice %81 {offsets = [12, 0], sizes = [1, 128], strides = [1, 1]} : vector<16x128xf32> to vector<1x128xf32>
      %119 = vector.shape_cast %118 : vector<1x128xf32> to vector<1x1x128xf32>
      %c1_102 = arith.constant 1 : index
      %c1_103 = arith.constant 1 : index
      %c512_104 = arith.constant 512 : index
      %120 = vector.load %arg10[%c1_102, %c1_103, %c512_104] : memref<2x2x1024xf32, #tpu.memory_space<vmem>>, vector<1x1x128xf32>
      tpu.vector_store %arg10[%c1_102, %c1_103, %c512_104], %119 {strides = array<i32>} : memref<2x2x1024xf32, #tpu.memory_space<vmem>>, vector<1x1x128xf32>,
      %121 = vector.extract_strided_slice %81 {offsets = [13, 0], sizes = [1, 128], strides = [1, 1]} : vector<16x128xf32> to vector<1x128xf32>
      %122 = vector.shape_cast %121 : vector<1x128xf32> to vector<1x1x128xf32>
      %c1_105 = arith.constant 1 : index
      %c1_106 = arith.constant 1 : index
      %c640_107 = arith.constant 640 : index
      %123 = vector.load %arg10[%c1_105, %c1_106, %c640_107] : memref<2x2x1024xf32, #tpu.memory_space<vmem>>, vector<1x1x128xf32>
      tpu.vector_store %arg10[%c1_105, %c1_106, %c640_107], %122 {strides = array<i32>} : memref<2x2x1024xf32, #tpu.memory_space<vmem>>, vector<1x1x128xf32>,
      %124 = vector.extract_strided_slice %81 {offsets = [14, 0], sizes = [1, 128], strides = [1, 1]} : vector<16x128xf32> to vector<1x128xf32>
      %125 = vector.shape_cast %124 : vector<1x128xf32> to vector<1x1x128xf32>
      %c1_108 = arith.constant 1 : index
      %c1_109 = arith.constant 1 : index
      %c768_110 = arith.constant 768 : index
      %126 = vector.load %arg10[%c1_108, %c1_109, %c768_110] : memref<2x2x1024xf32, #tpu.memory_space<vmem>>, vector<1x1x128xf32>
      tpu.vector_store %arg10[%c1_108, %c1_109, %c768_110], %125 {strides = array<i32>} : memref<2x2x1024xf32, #tpu.memory_space<vmem>>, vector<1x1x128xf32>,
      %127 = vector.extract_strided_slice %81 {offsets = [15, 0], sizes = [1, 128], strides = [1, 1]} : vector<16x128xf32> to vector<1x128xf32>
      %128 = vector.shape_cast %127 : vector<1x128xf32> to vector<1x1x128xf32>
      %c1_111 = arith.constant 1 : index
      %c1_112 = arith.constant 1 : index
      %c896_113 = arith.constant 896 : index
      %129 = vector.load %arg10[%c1_111, %c1_112, %c896_113] : memref<2x2x1024xf32, #tpu.memory_space<vmem>>, vector<1x1x128xf32>
      tpu.vector_store %arg10[%c1_111, %c1_112, %c896_113], %128 {strides = array<i32>} : memref<2x2x1024xf32, #tpu.memory_space<vmem>>, vector<1x1x128xf32>,
      %cst_114 = arith.constant 0.000000e+00 : f32
      %130 = vector.broadcast %cst_114 : f32 to vector<2x1024xf32>
      %c0_115 = arith.constant 0 : index
      %c0_116 = arith.constant 0 : index
      %131 = vector.load %arg11[%c0_115, %c0_116] : memref<2x1024xf32, #tpu.memory_space<vmem>>, vector<2x1024xf32>
      tpu.vector_store %arg11[%c0_115, %c0_116], %130 {strides = array<i32>} : memref<2x1024xf32, #tpu.memory_space<vmem>>, vector<2x1024xf32>,
    } else {
    }
    %3 = arith.index_cast %arg0 : i32 to index
    %c0 = arith.constant 0 : index
    %c0_1 = arith.constant 0 : index
    %4 = vector.load %arg10[%3, %c0, %c0_1] : memref<2x2x1024xf32, #tpu.memory_space<vmem>>, vector<1x2x1024xf32>
    %5 = vector.shape_cast %4 : vector<1x2x1024xf32> to vector<2x1024xf32>
    %6 = arith.truncf %5 : vector<2x1024xf32> to vector<2x1024xbf16>
    %c0_2 = arith.constant 0 : index
    %c0_3 = arith.constant 0 : index
    %7 = vector.load %arg11[%c0_2, %c0_3] : memref<2x1024xf32, #tpu.memory_space<vmem>>, vector<2x1024xf32>
    %c0_4 = arith.constant 0 : index
    %c0_5 = arith.constant 0 : index
    %8 = vector.load %arg5[%c0_4, %c0_5] : memref<1024x1024xbf16, #tpu.memory_space<vmem>>, vector<1024x1024xbf16>
    %cst = arith.constant dense<0.000000e+00> : vector<2x1024xf32>
    %9 = tpu.matmul %6, %8, %cst {dimension_numbers = #tpu.dot_dimension_numbers<[1], [0], [0], [1], [0, 0, 1, 1], [], []>} : vector<2x1024xbf16>, vector<1024x1024xbf16>, vector<2x1024xf32> -> vector<2x1024xf32>
    %10 = arith.addf %7, %9 : vector<2x1024xf32>
    %c0_6 = arith.constant 0 : index
    %c0_7 = arith.constant 0 : index
    %11 = vector.load %arg11[%c0_6, %c0_7] : memref<2x1024xf32, #tpu.memory_space<vmem>>, vector<2x1024xf32>
    tpu.vector_store %arg11[%c0_6, %c0_7], %10 {strides = array<i32>} : memref<2x1024xf32, #tpu.memory_space<vmem>>, vector<2x1024xf32>,
    %c1_i32 = arith.constant 1 : i32
    %12 = arith.cmpi eq, %arg0, %c1_i32 : i32
    %13 = arith.extui %12 : i1 to i32
    %c0_i32_8 = arith.constant 0 : i32
    %14 = arith.cmpi ne, %13, %c0_i32_8 : i32
    scf.if %14 {
      %c0_9 = arith.constant 0 : index
      %c0_10 = arith.constant 0 : index
      %15 = vector.load %arg11[%c0_9, %c0_10] : memref<2x1024xf32, #tpu.memory_space<vmem>>, vector<2x1024xf32>
      %c0_11 = arith.constant 0 : index
      %c0_12 = arith.constant 0 : index
      %16 = vector.load %arg6[%c0_11, %c0_12] : memref<1x1024xf32, #tpu.memory_space<vmem>>, vector<1x1024xf32>
      %17 = vector.broadcast %16 : vector<1x1024xf32> to vector<2x1024xf32>
      %18 = arith.addf %15, %17 : vector<2x1024xf32>
      %cst_13 = arith.constant 0.000000e+00 : f32
      %19 = vector.broadcast %cst_13 : f32 to vector<2x1024xf32>
      %20 = arith.maximumf %18, %19 : vector<2x1024xf32>
      %c0_14 = arith.constant 0 : index
      %c0_15 = arith.constant 0 : index
      %21 = vector.load %arg7[%c0_14, %c0_15] : memref<1024x8xf32, #tpu.memory_space<vmem>>, vector<1024x8xf32>
      %cst_16 = arith.constant dense<0.000000e+00> : vector<2x8xf32>
      %22 = tpu.matmul %20, %21, %cst_16 {dimension_numbers = #tpu.dot_dimension_numbers<[1], [0], [0], [1], [0, 0, 1, 1], [], []>} : vector<2x1024xf32>, vector<1024x8xf32>, vector<2x8xf32> -> vector<2x8xf32>
      %c0_17 = arith.constant 0 : index
      %c0_18 = arith.constant 0 : index
      %23 = vector.load %arg8[%c0_17, %c0_18] : memref<1x8xf32, #tpu.memory_space<vmem>>, vector<1x8xf32>
      %24 = vector.broadcast %23 : vector<1x8xf32> to vector<2x8xf32>
      %25 = arith.addf %22, %24 : vector<2x8xf32>
      %26 = tpu.iota {dimensions = array<i32: 1>} : vector<2x8xi32>
      %c3_i32 = arith.constant 3 : i32
      %27 = vector.broadcast %c3_i32 : i32 to vector<2x8xi32>
      %28 = arith.cmpi sge, %26, %27 : vector<2x8xi32>
      %c7_i32 = arith.constant 7 : i32
      %29 = vector.broadcast %c7_i32 : i32 to vector<2x8xi32>
      %30 = arith.cmpi slt, %26, %29 : vector<2x8xi32>
      %31 = arith.andi %28, %30 : vector<2x8xi1>
      %32 = arith.mulf %25, %25 : vector<2x8xf32>
      %cst_19 = arith.constant 0.000000e+00 : f32
      %33 = vector.broadcast %cst_19 : f32 to vector<2x8xf32>
      %34 = arith.select %31, %32, %33 : vector<2x8xi1>, vector<2x8xf32>
      %cst_20 = arith.constant dense<0.000000e+00> : vector<2xf32>
      %35 = vector.multi_reduction <add>, %34, %cst_20 [1] : vector<2x8xf32> to vector<2xf32>
      %36 = vector.shape_cast %35 : vector<2xf32> to vector<2x1xf32>
      %37 = math.sqrt %36 : vector<2x1xf32>
      %cst_21 = arith.constant 9.99999996E-13 : f32
      %38 = vector.broadcast %cst_21 : f32 to vector<2x1xf32>
      %39 = arith.maximumf %37, %38 : vector<2x1xf32>
      %cst_22 = arith.constant 1.000000e+00 : f32
      %40 = vector.broadcast %cst_22 : f32 to vector<2x1xf32>
      %41 = arith.divf %40, %39 : vector<2x1xf32>
      %42 = vector.broadcast %41 : vector<2x1xf32> to vector<2x8xf32>
      %43 = arith.mulf %25, %42 : vector<2x8xf32>
      %44 = arith.select %31, %43, %25 : vector<2x8xi1>, vector<2x8xf32>
      %c0_23 = arith.constant 0 : index
      %c0_24 = arith.constant 0 : index
      %45 = vector.load %arg9[%c0_23, %c0_24] : memref<2x8xf32, #tpu.memory_space<vmem>>, vector<2x8xf32>
      tpu.vector_store %arg9[%c0_23, %c0_24], %44 {strides = array<i32>} : memref<2x8xf32, #tpu.memory_space<vmem>>, vector<2x8xf32>,
    } else {
    }
    return
  }
  func.func @transform_0(%arg0: i32) -> (i32, i32) {
    %c0_i32 = arith.constant 0 : i32
    %c0_i32_0 = arith.constant 0 : i32
    %c0_i32_1 = arith.constant 0 : i32
    return %c0_i32, %c0_i32_0 : i32, i32
  }
  func.func @transform_1(%arg0: i32) -> (i32, i32) {
    %c0_i32 = arith.constant 0 : i32
    %c0_i32_0 = arith.constant 0 : i32
    %c0_i32_1 = arith.constant 0 : i32
    return %c0_i32, %c0_i32_0 : i32, i32
  }
  func.func @transform_2(%arg0: i32) -> (i32, i32) {
    %c0_i32 = arith.constant 0 : i32
    %c0_i32_0 = arith.constant 0 : i32
    %c0_i32_1 = arith.constant 0 : i32
    return %c0_i32, %c0_i32_0 : i32, i32
  }
  func.func @transform_3(%arg0: i32) -> (i32, i32) {
    %c0_i32 = arith.constant 0 : i32
    %c0_i32_0 = arith.constant 0 : i32
    %c0_i32_1 = arith.constant 0 : i32
    return %c0_i32, %c0_i32_0 : i32, i32
  }
  func.func @transform_4(%arg0: i32) -> (i32, i32) {
    %c0_i32 = arith.constant 0 : i32
    %c0_i32_0 = arith.constant 0 : i32
    return %arg0, %c0_i32 : i32, i32
  }
  func.func @transform_5(%arg0: i32) -> (i32, i32) {
    %c0_i32 = arith.constant 0 : i32
    %c0_i32_0 = arith.constant 0 : i32
    %c0_i32_1 = arith.constant 0 : i32
    return %c0_i32, %c0_i32_0 : i32, i32
  }
  func.func @transform_6(%arg0: i32) -> (i32, i32) {
    %c0_i32 = arith.constant 0 : i32
    %c0_i32_0 = arith.constant 0 : i32
    %c0_i32_1 = arith.constant 0 : i32
    return %c0_i32, %c0_i32_0 : i32, i32
  }
  func.func @transform_7(%arg0: i32) -> (i32, i32) {
    %c0_i32 = arith.constant 0 : i32
    %c0_i32_0 = arith.constant 0 : i32
    %c0_i32_1 = arith.constant 0 : i32
    return %c0_i32, %c0_i32_0 : i32, i32
  }
  func.func @transform_8(%arg0: i32) -> (i32, i32) {
    %c0_i32 = arith.constant 0 : i32
    %c0_i32_0 = arith.constant 0 : i32
    %c0_i32_1 = arith.constant 0 : i32
    return %c0_i32, %c0_i32_0 : i32, i32
  }
}

</mosaic_0001>

<bundles_post_ra>
// kernel: regression_forward.1
= control target key start
LH: loop header
LB: loop body
LE: loop exit
PB: predicated region body
PF: predicated region fallthrough
CT: control target
= control target key end

     0   :  { %s8552_s27 = smov 0   ;;  %s11260_s0 = inlined_call_operand.vmem [shape: f32[1024,196], index: 0, kind: input, shape index: {}]   ;;  %s11261_s1 = inlined_call_operand.vmem [shape: f32[196,16], index: 1, kind: input, shape index: {}]   ;;  %s11262_s2 = inlined_call_operand.vmem [shape: f32[512,128], index: 2, kind: input, shape index: {}]   ;;  %s11263_s3 = inlined_call_operand.vmem [shape: f32[1,128], index: 3, kind: input, shape index: {}]   ;;  %s11264_s4 = inlined_call_operand.vmem [shape: bf16[2048,1024], index: 4, kind: input, shape index: {}]   ;;  %s11265_s5 = inlined_call_operand.vmem [shape: f32[1,1024], index: 5, kind: input, shape index: {}]   ;;  %s11266_s6 = inlined_call_operand.vmem [shape: f32[1024,8], index: 6, kind: input, shape index: {}]   ;;  %s11267_s7 = inlined_call_operand.vmem [shape: f32[1,8], index: 7, kind: input, shape index: {}]   ;;  %s11268_s8 = inlined_call_operand.vmem [shape: f32[2,8], index: 8, kind: output, shape index: {}]  }
   0x1 LB: > { %s8558_s28 = sadd.s32 4294967295, %s8501_s27   ;;  %p6975_p0 = scmp.ge.s32.totalorder %s8501_s27, 1  ;;  %s8501_s27 = sphi %s8552_s27, %s18_s27  }
   0x2   : > { %p259_p1 = scmp.lt.s32.totalorder %s8501_s27, 3 }
   0x4   : > { %p260_p2 = pnand %p6975_p0, %p259_p1 }
   0x5   : > { %s6976_s29 = sshll.u32 (!%p260_p2), %s8558_s28, 7  ;;  %p6979_p4 = scmp.ne.s32.totalorder (!%p260_p2), %s8558_s28, 0 }
   0x6   : > { %263 = sbr.rel (%p260_p2) target bundleno = 2118 (0x846), region = 52  ;;  %p290_p3 = scmp.lt.s32.totalorder (!%p260_p2), %s6976_s29, 255 }
   0xd   : > { %s11402_s29 = smov (!%p290_p3, %s6976_s29), 255  ;;  %299 = sbr.rel (%p6979_p4) target bundleno = 939 (0x3ab), region = 56 }
   0xe   : > { %s7649_s30 = sshll.u32 %s11402_s29, 5 }
   0xf   : > { %s8566_s11 = scalar_lea.vmem %s11264_s4, %s7649_s30 }
  0x14   : > { %v556_v0 = vld [vmem:[%s11261_s1] sm:$0xff]  ;;  %v557_v1 = vld [vmem:[%s11261_s1 + $0x8] sm:$0xff]  ;;  %v558_v2 = vld [vmem:[%s11261_s1 + $0x10] sm:$0xff]  ;;  %v8503_v3 = vmov 0.0|0.0   ;;  %v8504_v6 = vmov 0.0   ;;  %vm581_vm0 = vcmask 556032  }
  0x15   : > { %7943 = vmatprep.subr.bf16.mxu0 %v8503_v3  ;;  %v7944_v4 = vpack.c.bf16 %v557_v1, %v556_v0  ;;  %v559_v5 = vld [vmem:[%s11261_s1 + $0x18] sm:$0xff]  ;;  %2542 = vst [vmem:[#allocation3] sm:$0xff] %v8504_v6  ;;  %2543 = vst [vmem:[#allocation3 + $0x8] sm:$0xff] %v8504_v6  ;;  %8235 = vmatprep.subr.bf16.mxu1 %v8503_v3  ;;  %v560_v8 = vld [vmem:[%s11261_s1 + $0x20] sm:$0xff]  ;;  %vm966_vm1 = vcmask 1043456  }
  0x16   : > { %v7947_v7 = vpack.c.bf16 %v559_v5, %v558_v2  ;;  %v561_v9 = vld [vmem:[%s11261_s1 + $0x28] sm:$0xff]  ;;  %v562_v11 = vld [vmem:[%s11261_s1 + $0x30] sm:$0xff]  ;;  %v563_v12 = vld [vmem:[%s11261_s1 + $0x38] sm:$0xff] }
  0x17   : > { %7945 = vmatpush1.bf16.msra.mxu0 %v7944_v4  ;;  %8248 = vmatpush1.bf16.msra.mxu1 %v7944_v4  ;;  %v7950_v10 = vpack.c.bf16 %v561_v9, %v560_v8  ;;  %v301_v13 = vld [vmem:[%s11260_s0 + $0x8] sm:$0xff]  ;;  %v7953_v14 = vpack.c.bf16 %v563_v12, %v562_v11  ;;  %v564_v15 = vld [vmem:[%s11261_s1 + $0x40] sm:$0xff]  ;;  %v566_v18 = vld [vmem:[%s11261_s1 + $0x50] sm:$0xff] }
  0x18   : > { %7946 = vmatprep.subr.bf16.mxu0 %v8503_v3  ;;  %8236 = vmatprep.subr.bf16.mxu1 %v8503_v3  ;;  %v565_v16 = vld [vmem:[%s11261_s1 + $0x48] sm:$0xff]  ;;  %v567_v19 = vld [vmem:[%s11261_s1 + $0x58] sm:$0xff]  ;;  %v568_v21 = vld [vmem:[%s11261_s1 + $0x60] sm:$0xff] }
  0x19   : > { %6981 = vmatprep.mubr.msk.f32.mxu0 %vm581_vm0, %v301_v13  ;;  %v7956_v17 = vpack.c.bf16 %v565_v16, %v564_v15  ;;  %v7959_v20 = vpack.c.bf16 %v567_v19, %v566_v18  ;;  %v569_v22 = vld [vmem:[%s11261_s1 + $0x68] sm:$0xff]  ;;  %v455_v23 = vld [vmem:[%s11260_s0 + $0x4d8] sm:$0xff]  ;;  %v570_v25 = vld [vmem:[%s11261_s1 + $0x70] sm:$0xff] }
  0x1a   : > { %v7962_v24 = vpack.c.bf16 %v569_v22, %v568_v21  ;;  %v571_v26 = vld [vmem:[%s11261_s1 + $0x78] sm:$0xff]  ;;  %7058 = vmatprep.mubr.msk.f32.mxu1 %vm581_vm0, %v455_v23  ;;  %v572_v28 = vld [vmem:[%s11261_s1 + $0x80] sm:$0xff]  ;;  %v573_v29 = vld [vmem:[%s11261_s1 + $0x88] sm:$0xff] }
  0x1b   : > { %7948 = vmatpush1.bf16.msra.mxu0 %v7947_v7  ;;  %8249 = vmatpush1.bf16.msra.mxu1 %v7947_v7  ;;  %v7965_v27 = vpack.c.bf16 %v571_v26, %v570_v25  ;;  %v7968_v30 = vpack.c.bf16 %v573_v29, %v572_v28  ;;  %v574_v31 = vld [vmem:[%s11261_s1 + $0x90] sm:$0xff]  ;;  %v575_v32 = vld [vmem:[%s11261_s1 + $0x98] sm:$0xff]  ;;  %v576_v34 = vld [vmem:[%s11261_s1 + $0xa0] sm:$0xff] }
  0x1c   : > { %7949 = vmatprep.subr.bf16.mxu0 %v8503_v3  ;;  %8237 = vmatprep.subr.bf16.mxu1 %v8503_v3  ;;  %v7971_v33 = vpack.c.bf16 %v575_v32, %v574_v31  ;;  %v577_v35 = vld [vmem:[%s11261_s1 + $0xa8] sm:$0xff]  ;;  %v578_v37 = vld [vmem:[%s11261_s1 + $0xb0] sm:$0xff]  ;;  %v579_v38 = vld [vmem:[%s11261_s1 + $0xb8] sm:$0xff] }
  0x1d   : > { %v7974_v36 = vpack.c.bf16 %v577_v35, %v576_v34  ;;  %v7977_v39 = vpack.c.bf16 %v579_v38, %v578_v37  ;;  %v580_v40 = vld [vmem:[%s11261_s1 + $0xc0] sm:$0xf]  ;;  %v454_v42 = vld [vmem:[%s11260_s0 + $0x4d0] sm:$0xff]  ;;  %v303_v43 = vld [vmem:[%s11260_s0 + $0x18] sm:$0xff] }
  0x1e   : > { %v300_v41 = vld [vmem:[%s11260_s0] sm:$0xff]  ;;  %v457_v44 = vld [vmem:[%s11260_s0 + $0x4e8] sm:$0xff]  ;;  %v302_v45 = vld [vmem:[%s11260_s0 + $0x10] sm:$0xff] }
  0x1f   : > { %7951 = vmatpush1.bf16.msra.mxu0 %v7950_v10  ;;  %8250 = vmatpush1.bf16.msra.mxu1 %v7950_v10  ;;  %v456_v46 = vld [vmem:[%s11260_s0 + $0x4e0] sm:$0xff]  ;;  %v305_v47 = vld [vmem:[%s11260_s0 + $0x28] sm:$0xff]  ;;  %v459_v48 = vld [vmem:[%s11260_s0 + $0x4f8] sm:$0xff] }
  0x20   : > { %7952 = vmatprep.subr.bf16.mxu0 %v8503_v3  ;;  %8238 = vmatprep.subr.bf16.mxu1 %v8503_v3  ;;  %v304_v49 = vld [vmem:[%s11260_s0 + $0x20] sm:$0xff]  ;;  %v458_v50 = vld [vmem:[%s11260_s0 + $0x4f0] sm:$0xff]  ;;  %v307_v51 = vld [vmem:[%s11260_s0 + $0x38] sm:$0xff] }
  0x21   : > { %v461_v52 = vld [vmem:[%s11260_s0 + $0x508] sm:$0xff]  ;;  %v306_v53 = vld [vmem:[%s11260_s0 + $0x30] sm:$0xff]  ;;  %v460_v54 = vld [vmem:[%s11260_s0 + $0x500] sm:$0xff] }
  0x22   : > { %v309_v55 = vld [vmem:[%s11260_s0 + $0x48] sm:$0xff]  ;;  %v463_v56 = vld [vmem:[%s11260_s0 + $0x518] sm:$0xff]  ;;  %v308_v57 = vld [vmem:[%s11260_s0 + $0x40] sm:$0xff] }
  0x23   : > { %7954 = vmatpush1.bf16.msra.mxu0 %v7953_v14  ;;  %8251 = vmatpush1.bf16.msra.mxu1 %v7953_v14  ;;  %v462_v58 = vld [vmem:[%s11260_s0 + $0x510] sm:$0xff]  ;;  %v311_v59 = vld [vmem:[%s11260_s0 + $0x58] sm:$0xff]  ;;  %v465_v60 = vld [vmem:[%s11260_s0 + $0x528] sm:$0xff] }
  0x24   : > { %7955 = vmatprep.subr.bf16.mxu0 %v8503_v3  ;;  %8239 = vmatprep.subr.bf16.mxu1 %v8503_v3  ;;  %v310_v61 = vld [vmem:[%s11260_s0 + $0x50] sm:$0xff]  ;;  %v464_v62 = vld [vmem:[%s11260_s0 + $0x520] sm:$0xff]  ;;  %v313_v63 = vld [vmem:[%s11260_s0 + $0x68] sm:$0xff] }
  0x25   : > { %v467_v0 = vld [vmem:[%s11260_s0 + $0x538] sm:$0xff]  ;;  %v312_v1 = vld [vmem:[%s11260_s0 + $0x60] sm:$0xff]  ;;  %v466_v2 = vld [vmem:[%s11260_s0 + $0x530] sm:$0xff] }
  0x26   : > { %v469_v4 = vld [vmem:[%s11260_s0 + $0x548] sm:$0xff]  ;;  %v314_v5 = vld [vmem:[%s11260_s0 + $0x70] sm:$0xff]  ;;  %v471_v8 = vld [vmem:[%s11260_s0 + $0x558] sm:$0xff] }
  0x27   : > { %7957 = vmatpush1.bf16.msra.mxu0 %v7956_v17  ;;  %8252 = vmatpush1.bf16.msra.mxu1 %v7956_v17  ;;  %v317_v7 = vld [vmem:[%s11260_s0 + $0x88] sm:$0xff]  ;;  %v316_v9 = vld [vmem:[%s11260_s0 + $0x80] sm:$0xff]  ;;  %v470_v10 = vld [vmem:[%s11260_s0 + $0x550] sm:$0xff] }
  0x28   : > { %7958 = vmatprep.subr.bf16.mxu0 %v8503_v3  ;;  %8240 = vmatprep.subr.bf16.mxu1 %v8503_v3  ;;  %v319_v11 = vld [vmem:[%s11260_s0 + $0x98] sm:$0xff]  ;;  %v473_v12 = vld [vmem:[%s11260_s0 + $0x568] sm:$0xff]  ;;  %v318_v13 = vld [vmem:[%s11260_s0 + $0x90] sm:$0xff] }
  0x29   : > { %v472_v14 = vld [vmem:[%s11260_s0 + $0x560] sm:$0xff]  ;;  %v321_v15 = vld [vmem:[%s11260_s0 + $0xa8] sm:$0xff]  ;;  %v475_v16 = vld [vmem:[%s11260_s0 + $0x578] sm:$0xff] }
  0x2a   : > { %v320_v17 = vld [vmem:[%s11260_s0 + $0xa0] sm:$0xff]  ;;  %v474_v18 = vld [vmem:[%s11260_s0 + $0x570] sm:$0xff]  ;;  %v323_v19 = vld [vmem:[%s11260_s0 + $0xb8] sm:$0xff] }
  0x2b   : > { %7960 = vmatpush1.bf16.msra.mxu0 %v7959_v20  ;;  %8253 = vmatpush1.bf16.msra.mxu1 %v7959_v20  ;;  %v477_v20 = vld [vmem:[%s11260_s0 + $0x588] sm:$0xff]  ;;  %v322_v21 = vld [vmem:[%s11260_s0 + $0xb0] sm:$0xff]  ;;  %v476_v22 = vld [vmem:[%s11260_s0 + $0x580] sm:$0xff] }
  0x2c   : > { %7961 = vmatprep.subr.bf16.mxu0 %v8503_v3  ;;  %8241 = vmatprep.subr.bf16.mxu1 %v8503_v3  ;;  %v325_v23 = vld [vmem:[%s11260_s0 + $0xc8] sm:$0xff]  ;;  %v324_v25 = vld [vmem:[%s11260_s0 + $0xc0] sm:$0xff]  ;;  %v478_v26 = vld [vmem:[%s11260_s0 + $0x590] sm:$0xff] }
  0x2d   : > { %v481_v28 = vld [vmem:[%s11260_s0 + $0x5a8] sm:$0xff]  ;;  %v326_v29 = vld [vmem:[%s11260_s0 + $0xd0] sm:$0xff]  ;;  %v483_v32 = vld [vmem:[%s11260_s0 + $0x5b8] sm:$0xff] }
  0x2e   : > { %v329_v31 = vld [vmem:[%s11260_s0 + $0xe8] sm:$0xff]  ;;  %v482_v34 = vld [vmem:[%s11260_s0 + $0x5b0] sm:$0xff]  ;;  %v331_v35 = vld [vmem:[%s11260_s0 + $0xf8] sm:$0xff] }
  0x2f   : > { %7963 = vmatpush1.bf16.msra.mxu0 %v7962_v24  ;;  %8254 = vmatpush1.bf16.msra.mxu1 %v7962_v24  ;;  %v479_v24 = vld [vmem:[%s11260_s0 + $0x598] sm:$0xff]  ;;  %v330_v37 = vld [vmem:[%s11260_s0 + $0xf0] sm:$0xff]  ;;  %v484_v38 = vld [vmem:[%s11260_s0 + $0x5c0] sm:$0xff] }
  0x30   : > { %7964 = vmatprep.subr.bf16.mxu0 %v8503_v3  ;;  %8242 = vmatprep.subr.bf16.mxu1 %v8503_v3 }
  0x33   : > { %7966 = vmatpush1.bf16.msra.mxu0 %v7965_v27  ;;  %8255 = vmatpush1.bf16.msra.mxu1 %v7965_v27  ;;  %v327_v27 = vld [vmem:[%s11260_s0 + $0xd8] sm:$0xff] }
  0x34   : > { %7967 = vmatprep.subr.bf16.mxu0 %v8503_v3  ;;  %8243 = vmatprep.subr.bf16.mxu1 %v8503_v3 }
  0x37   : > { %7969 = vmatpush1.bf16.msra.mxu0 %v7968_v30  ;;  %8256 = vmatpush1.bf16.msra.mxu1 %v7968_v30  ;;  %v480_v30 = vld [vmem:[%s11260_s0 + $0x5a0] sm:$0xff] }
  0x38   : > { %7970 = vmatprep.subr.bf16.mxu0 %v8503_v3  ;;  %8244 = vmatprep.subr.bf16.mxu1 %v8503_v3 }
  0x3b   : > { %7972 = vmatpush1.bf16.msra.mxu0 %v7971_v33  ;;  %8257 = vmatpush1.bf16.msra.mxu1 %v7971_v33  ;;  %v328_v33 = vld [vmem:[%s11260_s0 + $0xe0] sm:$0xff] }
  0x3c   : > { %7973 = vmatprep.subr.bf16.mxu0 %v8503_v3  ;;  %8245 = vmatprep.subr.bf16.mxu1 %v8503_v3 }
  0x3f   : > { %7975 = vmatpush1.bf16.msra.mxu0 %v7974_v36  ;;  %8258 = vmatpush1.bf16.msra.mxu1 %v7974_v36  ;;  %v485_v36 = vld [vmem:[%s11260_s0 + $0x5c8] sm:$0xff] }
  0x40   : > { %7976 = vmatprep.subr.bf16.mxu0 %v8503_v3  ;;  %8246 = vmatprep.subr.bf16.mxu1 %v8503_v3  ;;  %v315_v3 = vld [vmem:[%s11260_s0 + $0x78] sm:$0xff] }
  0x43   : > { %7978 = vmatpush1.bf16.msra.mxu0 %v7977_v39  ;;  %8259 = vmatpush1.bf16.msra.mxu1 %v7977_v39  ;;  %v333_v39 = vld [vmem:[%s11260_s0 + $0x108] sm:$0xff] }
  0x44   : > { %1018 = vmatprep.subr.mxu0 %v8504_v6  ;;  %8247 = vmatprep.subr.mxu1 %v8504_v6  ;;  %v468_v6 = vld [vmem:[%s11260_s0 + $0x540] sm:$0xff] }
  0x47   : > { %6980 = vmatpush1.msk.msra.mxu0 %vm966_vm1, %v580_v40  ;;  %8260 = vmatpush1.msk.msra.mxu1 %vm966_vm1, %v580_v40  ;;  %v487_v40 = vld [vmem:[%s11260_s0 + $0x5d8] sm:$0xff] }
  0x48   : > { %1035 = vmatmul.mubr.f32.vlgmr.msra.gmra.mrb[0].mxu0 %v300_v41  ;;  %1420 = vmatmul.mubr.f32.vlgmr.msra.gmra.mrb[0].mxu1 %v454_v42  ;;  %v332_v41 = vld [vmem:[%s11260_s0 + $0x100] sm:$0xff]  ;;  %v486_v42 = vld [vmem:[%s11260_s0 + $0x5d0] sm:$0xff] }
  0x49   : > { %6982 = vmatprep.mubr.msk.f32.mxu0 %vm581_vm0, %v303_v43  ;;  %7059 = vmatprep.mubr.msk.f32.mxu1 %vm581_vm0, %v457_v44  ;;  %v335_v43 = vld [vmem:[%s11260_s0 + $0x118] sm:$0xff]  ;;  %v489_v44 = vld [vmem:[%s11260_s0 + $0x5e8] sm:$0xff] }
  0x4c   : > { %1040 = vmatmul.mubr.f32.gmra.mrb[2].mxu0 %v302_v45  ;;  %1425 = vmatmul.mubr.f32.gmra.mrb[2].mxu1 %v456_v46  ;;  %v334_v45 = vld [vmem:[%s11260_s0 + $0x110] sm:$0xff]  ;;  %v488_v46 = vld [vmem:[%s11260_s0 + $0x5e0] sm:$0xff] }
  0x4d   : > { %6983 = vmatprep.mubr.msk.f32.mxu0 %vm581_vm0, %v305_v47  ;;  %7060 = vmatprep.mubr.msk.f32.mxu1 %vm581_vm0, %v459_v48  ;;  %v337_v47 = vld [vmem:[%s11260_s0 + $0x128] sm:$0xff]  ;;  %v491_v48 = vld [vmem:[%s11260_s0 + $0x5f8] sm:$0xff] }
  0x50   : > { %1045 = vmatmul.mubr.f32.gmra.mrb[4].mxu0 %v304_v49  ;;  %1430 = vmatmul.mubr.f32.gmra.mrb[4].mxu1 %v458_v50  ;;  %v336_v49 = vld [vmem:[%s11260_s0 + $0x120] sm:$0xff]  ;;  %v490_v50 = vld [vmem:[%s11260_s0 + $0x5f0] sm:$0xff] }
  0x51   : > { %6984 = vmatprep.mubr.msk.f32.mxu0 %vm581_vm0, %v307_v51  ;;  %7061 = vmatprep.mubr.msk.f32.mxu1 %vm581_vm0, %v461_v52  ;;  %v339_v51 = vld [vmem:[%s11260_s0 + $0x138] sm:$0xff]  ;;  %v493_v52 = vld [vmem:[%s11260_s0 + $0x608] sm:$0xff] }
  0x54   : > { %1050 = vmatmul.mubr.f32.gmra.mrb[6].mxu0 %v306_v53  ;;  %1435 = vmatmul.mubr.f32.gmra.mrb[6].mxu1 %v460_v54  ;;  %v338_v53 = vld [vmem:[%s11260_s0 + $0x130] sm:$0xff]  ;;  %v492_v54 = vld [vmem:[%s11260_s0 + $0x600] sm:$0xff] }
  0x55   : > { %6985 = vmatprep.mubr.msk.f32.mxu0 %vm581_vm0, %v309_v55  ;;  %7062 = vmatprep.mubr.msk.f32.mxu1 %vm581_vm0, %v463_v56  ;;  %v341_v55 = vld [vmem:[%s11260_s0 + $0x148] sm:$0xff]  ;;  %v495_v56 = vld [vmem:[%s11260_s0 + $0x618] sm:$0xff] }
  0x58   : > { %1055 = vmatmul.mubr.f32.gmra.mrb[8].mxu0 %v308_v57  ;;  %1440 = vmatmul.mubr.f32.gmra.mrb[8].mxu1 %v462_v58  ;;  %v340_v57 = vld [vmem:[%s11260_s0 + $0x140] sm:$0xff]  ;;  %v494_v58 = vld [vmem:[%s11260_s0 + $0x610] sm:$0xff] }
  0x59   : > { %6986 = vmatprep.mubr.msk.f32.mxu0 %vm581_vm0, %v311_v59  ;;  %7063 = vmatprep.mubr.msk.f32.mxu1 %vm581_vm0, %v465_v60  ;;  %v343_v59 = vld [vmem:[%s11260_s0 + $0x158] sm:$0xff]  ;;  %v497_v60 = vld [vmem:[%s11260_s0 + $0x628] sm:$0xff] }
  0x5c   : > { %1060 = vmatmul.mubr.f32.gmra.mrb[10].mxu0 %v310_v61  ;;  %1445 = vmatmul.mubr.f32.gmra.mrb[10].mxu1 %v464_v62  ;;  %v342_v61 = vld [vmem:[%s11260_s0 + $0x150] sm:$0xff]  ;;  %v496_v62 = vld [vmem:[%s11260_s0 + $0x620] sm:$0xff] }
  0x5d   : > { %6987 = vmatprep.mubr.msk.f32.mxu0 %vm581_vm0, %v313_v63  ;;  %7064 = vmatprep.mubr.msk.f32.mxu1 %vm581_vm0, %v467_v0  ;;  %v345_v63 = vld [vmem:[%s11260_s0 + $0x168] sm:$0xff]  ;;  %v499_v0 = vld [vmem:[%s11260_s0 + $0x638] sm:$0xff] }
  0x60   : > { %1065 = vmatmul.mubr.f32.gmra.mrb[12].mxu0 %v312_v1  ;;  %1450 = vmatmul.mubr.f32.gmra.mrb[12].mxu1 %v466_v2  ;;  %v344_v1 = vld [vmem:[%s11260_s0 + $0x160] sm:$0xff]  ;;  %v498_v2 = vld [vmem:[%s11260_s0 + $0x630] sm:$0xff] }
  0x61   : > { %6988 = vmatprep.mubr.msk.f32.mxu0 %vm581_vm0, %v315_v3  ;;  %7065 = vmatprep.mubr.msk.f32.mxu1 %vm581_vm0, %v469_v4  ;;  %v347_v3 = vld [vmem:[%s11260_s0 + $0x178] sm:$0xff]  ;;  %v501_v4 = vld [vmem:[%s11260_s0 + $0x648] sm:$0xff] }
  0x64   : > { %1070 = vmatmul.mubr.f32.gmra.mrb[14].mxu0 %v314_v5  ;;  %1455 = vmatmul.mubr.f32.gmra.mrb[14].mxu1 %v468_v6  ;;  %v346_v5 = vld [vmem:[%s11260_s0 + $0x170] sm:$0xff]  ;;  %v500_v6 = vld [vmem:[%s11260_s0 + $0x640] sm:$0xff] }
  0x65   : > { %6989 = vmatprep.mubr.msk.f32.mxu0 %vm581_vm0, %v317_v7  ;;  %7066 = vmatprep.mubr.msk.f32.mxu1 %vm581_vm0, %v471_v8  ;;  %v349_v7 = vld [vmem:[%s11260_s0 + $0x188] sm:$0xff]  ;;  %v503_v8 = vld [vmem:[%s11260_s0 + $0x658] sm:$0xff] }
  0x68   : > { %1075 = vmatmul.mubr.f32.gmra.mrb[16].mxu0 %v316_v9  ;;  %1460 = vmatmul.mubr.f32.gmra.mrb[16].mxu1 %v470_v10  ;;  %v348_v9 = vld [vmem:[%s11260_s0 + $0x180] sm:$0xff]  ;;  %v502_v10 = vld [vmem:[%s11260_s0 + $0x650] sm:$0xff] }
  0x69   : > { %6990 = vmatprep.mubr.msk.f32.mxu0 %vm581_vm0, %v319_v11  ;;  %7067 = vmatprep.mubr.msk.f32.mxu1 %vm581_vm0, %v473_v12  ;;  %v351_v11 = vld [vmem:[%s11260_s0 + $0x198] sm:$0xff]  ;;  %v505_v12 = vld [vmem:[%s11260_s0 + $0x668] sm:$0xff] }
  0x6c   : > { %1080 = vmatmul.mubr.f32.gmra.mrb[18].mxu0 %v318_v13  ;;  %1465 = vmatmul.mubr.f32.gmra.mrb[18].mxu1 %v472_v14  ;;  %v350_v13 = vld [vmem:[%s11260_s0 + $0x190] sm:$0xff]  ;;  %v504_v14 = vld [vmem:[%s11260_s0 + $0x660] sm:$0xff] }
  0x6d   : > { %6991 = vmatprep.mubr.msk.f32.mxu0 %vm581_vm0, %v321_v15  ;;  %7068 = vmatprep.mubr.msk.f32.mxu1 %vm581_vm0, %v475_v16  ;;  %v353_v15 = vld [vmem:[%s11260_s0 + $0x1a8] sm:$0xff]  ;;  %v507_v16 = vld [vmem:[%s11260_s0 + $0x678] sm:$0xff] }
  0x70   : > { %1085 = vmatmul.mubr.f32.gmra.mrb[20].mxu0 %v320_v17  ;;  %1470 = vmatmul.mubr.f32.gmra.mrb[20].mxu1 %v474_v18  ;;  %v352_v17 = vld [vmem:[%s11260_s0 + $0x1a0] sm:$0xff]  ;;  %v506_v18 = vld [vmem:[%s11260_s0 + $0x670] sm:$0xff] }
  0x71   : > { %6992 = vmatprep.mubr.msk.f32.mxu0 %vm581_vm0, %v323_v19  ;;  %7069 = vmatprep.mubr.msk.f32.mxu1 %vm581_vm0, %v477_v20  ;;  %v355_v19 = vld [vmem:[%s11260_s0 + $0x1b8] sm:$0xff]  ;;  %v509_v20 = vld [vmem:[%s11260_s0 + $0x688] sm:$0xff] }
  0x74   : > { %1090 = vmatmul.mubr.f32.gmra.mrb[22].mxu0 %v322_v21  ;;  %1475 = vmatmul.mubr.f32.gmra.mrb[22].mxu1 %v476_v22  ;;  %v354_v21 = vld [vmem:[%s11260_s0 + $0x1b0] sm:$0xff]  ;;  %v508_v22 = vld [vmem:[%s11260_s0 + $0x680] sm:$0xff] }
  0x75   : > { %6993 = vmatprep.mubr.msk.f32.mxu0 %vm581_vm0, %v325_v23  ;;  %7070 = vmatprep.mubr.msk.f32.mxu1 %vm581_vm0, %v479_v24  ;;  %v357_v23 = vld [vmem:[%s11260_s0 + $0x1c8] sm:$0xff]  ;;  %v511_v24 = vld [vmem:[%s11260_s0 + $0x698] sm:$0xff] }
  0x78   : > { %1095 = vmatmul.mubr.f32.gmra.mrb[24].mxu0 %v324_v25  ;;  %1480 = vmatmul.mubr.f32.gmra.mrb[24].mxu1 %v478_v26  ;;  %v356_v25 = vld [vmem:[%s11260_s0 + $0x1c0] sm:$0xff]  ;;  %v510_v26 = vld [vmem:[%s11260_s0 + $0x690] sm:$0xff] }
  0x79   : > { %6994 = vmatprep.mubr.msk.f32.mxu0 %vm581_vm0, %v327_v27  ;;  %7071 = vmatprep.mubr.msk.f32.mxu1 %vm581_vm0, %v481_v28  ;;  %v359_v27 = vld [vmem:[%s11260_s0 + $0x1d8] sm:$0xff]  ;;  %v513_v28 = vld [vmem:[%s11260_s0 + $0x6a8] sm:$0xff] }
  0x7c   : > { %1100 = vmatmul.mubr.f32.gmra.mrb[26].mxu0 %v326_v29  ;;  %1485 = vmatmul.mubr.f32.gmra.mrb[26].mxu1 %v480_v30  ;;  %v358_v29 = vld [vmem:[%s11260_s0 + $0x1d0] sm:$0xff]  ;;  %v512_v30 = vld [vmem:[%s11260_s0 + $0x6a0] sm:$0xff] }
  0x7d   : > { %6995 = vmatprep.mubr.msk.f32.mxu0 %vm581_vm0, %v329_v31  ;;  %7072 = vmatprep.mubr.msk.f32.mxu1 %vm581_vm0, %v483_v32  ;;  %v361_v31 = vld [vmem:[%s11260_s0 + $0x1e8] sm:$0xff]  ;;  %v515_v32 = vld [vmem:[%s11260_s0 + $0x6b8] sm:$0xff] }
  0x80   : > { %1105 = vmatmul.mubr.f32.gmra.mrb[28].mxu0 %v328_v33  ;;  %1490 = vmatmul.mubr.f32.gmra.mrb[28].mxu1 %v482_v34  ;;  %v360_v33 = vld [vmem:[%s11260_s0 + $0x1e0] sm:$0xff]  ;;  %v514_v34 = vld [vmem:[%s11260_s0 + $0x6b0] sm:$0xff] }
  0x81   : > { %6996 = vmatprep.mubr.msk.f32.mxu0 %vm581_vm0, %v331_v35  ;;  %7073 = vmatprep.mubr.msk.f32.mxu1 %vm581_vm0, %v485_v36  ;;  %v363_v35 = vld [vmem:[%s11260_s0 + $0x1f8] sm:$0xff]  ;;  %v517_v36 = vld [vmem:[%s11260_s0 + $0x6c8] sm:$0xff] }
  0x84   : > { %1110 = vmatmul.mubr.f32.gmra.mrb[30].mxu0 %v330_v37  ;;  %1495 = vmatmul.mubr.f32.gmra.mrb[30].mxu1 %v484_v38  ;;  %v362_v37 = vld [vmem:[%s11260_s0 + $0x1f0] sm:$0xff]  ;;  %v516_v38 = vld [vmem:[%s11260_s0 + $0x6c0] sm:$0xff] }
  0x85   : > { %6997 = vmatprep.mubr.msk.f32.mxu0 %vm581_vm0, %v333_v39  ;;  %7074 = vmatprep.mubr.msk.f32.mxu1 %vm581_vm0, %v487_v40  ;;  %v365_v39 = vld [vmem:[%s11260_s0 + $0x208] sm:$0xff]  ;;  %v519_v40 = vld [vmem:[%s11260_s0 + $0x6d8] sm:$0xff] }
  0x88   : > { %1115 = vmatmul.mubr.f32.gmra.mrb[32].mxu0 %v332_v41  ;;  %1500 = vmatmul.mubr.f32.gmra.mrb[32].mxu1 %v486_v42  ;;  %v364_v41 = vld [vmem:[%s11260_s0 + $0x200] sm:$0xff]  ;;  %v518_v42 = vld [vmem:[%s11260_s0 + $0x6d0] sm:$0xff] }
  0x89   : > { %6998 = vmatprep.mubr.msk.f32.mxu0 %vm581_vm0, %v335_v43  ;;  %7075 = vmatprep.mubr.msk.f32.mxu1 %vm581_vm0, %v489_v44  ;;  %v367_v43 = vld [vmem:[%s11260_s0 + $0x218] sm:$0xff]  ;;  %v521_v44 = vld [vmem:[%s11260_s0 + $0x6e8] sm:$0xff] }
  0x8c   : > { %1120 = vmatmul.mubr.f32.gmra.mrb[34].mxu0 %v334_v45  ;;  %1505 = vmatmul.mubr.f32.gmra.mrb[34].mxu1 %v488_v46  ;;  %v366_v45 = vld [vmem:[%s11260_s0 + $0x210] sm:$0xff]  ;;  %v520_v46 = vld [vmem:[%s11260_s0 + $0x6e0] sm:$0xff] }
  0x8d   : > { %6999 = vmatprep.mubr.msk.f32.mxu0 %vm581_vm0, %v337_v47  ;;  %7076 = vmatprep.mubr.msk.f32.mxu1 %vm581_vm0, %v491_v48  ;;  %v369_v47 = vld [vmem:[%s11260_s0 + $0x228] sm:$0xff]  ;;  %v523_v48 = vld [vmem:[%s11260_s0 + $0x6f8] sm:$0xff] }
  0x90   : > { %1125 = vmatmul.mubr.f32.gmra.mrb[36].mxu0 %v336_v49  ;;  %1510 = vmatmul.mubr.f32.gmra.mrb[36].mxu1 %v490_v50  ;;  %v368_v49 = vld [vmem:[%s11260_s0 + $0x220] sm:$0xff]  ;;  %v522_v50 = vld [vmem:[%s11260_s0 + $0x6f0] sm:$0xff] }
  0x91   : > { %7000 = vmatprep.mubr.msk.f32.mxu0 %vm581_vm0, %v339_v51  ;;  %7077 = vmatprep.mubr.msk.f32.mxu1 %vm581_vm0, %v493_v52  ;;  %v371_v51 = vld [vmem:[%s11260_s0 + $0x238] sm:$0xff]  ;;  %v525_v52 = vld [vmem:[%s11260_s0 + $0x708] sm:$0xff] }
  0x94   : > { %1130 = vmatmul.mubr.f32.gmra.mrb[38].mxu0 %v338_v53  ;;  %1515 = vmatmul.mubr.f32.gmra.mrb[38].mxu1 %v492_v54  ;;  %v370_v53 = vld [vmem:[%s11260_s0 + $0x230] sm:$0xff]  ;;  %v524_v54 = vld [vmem:[%s11260_s0 + $0x700] sm:$0xff] }
  0x95   : > { %7001 = vmatprep.mubr.msk.f32.mxu0 %vm581_vm0, %v341_v55  ;;  %7078 = vmatprep.mubr.msk.f32.mxu1 %vm581_vm0, %v495_v56  ;;  %v373_v55 = vld [vmem:[%s11260_s0 + $0x248] sm:$0xff]  ;;  %v527_v56 = vld [vmem:[%s11260_s0 + $0x718] sm:$0xff] }
  0x98   : > { %1135 = vmatmul.mubr.f32.gmra.mrb[40].mxu0 %v340_v57  ;;  %1520 = vmatmul.mubr.f32.gmra.mrb[40].mxu1 %v494_v58  ;;  %v372_v57 = vld [vmem:[%s11260_s0 + $0x240] sm:$0xff]  ;;  %v526_v58 = vld [vmem:[%s11260_s0 + $0x710] sm:$0xff] }
  0x99   : > { %7002 = vmatprep.mubr.msk.f32.mxu0 %vm581_vm0, %v343_v59  ;;  %7079 = vmatprep.mubr.msk.f32.mxu1 %vm581_vm0, %v497_v60  ;;  %v375_v59 = vld [vmem:[%s11260_s0 + $0x258] sm:$0xff]  ;;  %v529_v60 = vld [vmem:[%s11260_s0 + $0x728] sm:$0xff] }
  0x9c   : > { %1140 = vmatmul.mubr.f32.gmra.mrb[42].mxu0 %v342_v61  ;;  %1525 = vmatmul.mubr.f32.gmra.mrb[42].mxu1 %v496_v62  ;;  %v374_v61 = vld [vmem:[%s11260_s0 + $0x250] sm:$0xff]  ;;  %v528_v62 = vld [vmem:[%s11260_s0 + $0x720] sm:$0xff] }
  0x9d   : > { %7003 = vmatprep.mubr.msk.f32.mxu0 %vm581_vm0, %v345_v63  ;;  %7080 = vmatprep.mubr.msk.f32.mxu1 %vm581_vm0, %v499_v0  ;;  %v377_v63 = vld [vmem:[%s11260_s0 + $0x268] sm:$0xff]  ;;  %v531_v0 = vld [vmem:[%s11260_s0 + $0x738] sm:$0xff] }
  0xa0   : > { %1145 = vmatmul.mubr.f32.gmra.mrb[44].mxu0 %v344_v1  ;;  %1530 = vmatmul.mubr.f32.gmra.mrb[44].mxu1 %v498_v2  ;;  %v376_v1 = vld [vmem:[%s11260_s0 + $0x260] sm:$0xff]  ;;  %v530_v2 = vld [vmem:[%s11260_s0 + $0x730] sm:$0xff] }
  0xa1   : > { %7004 = vmatprep.mubr.msk.f32.mxu0 %vm581_vm0, %v347_v3  ;;  %7081 = vmatprep.mubr.msk.f32.mxu1 %vm581_vm0, %v501_v4  ;;  %v379_v3 = vld [vmem:[%s11260_s0 + $0x278] sm:$0xff]  ;;  %v533_v4 = vld [vmem:[%s11260_s0 + $0x748] sm:$0xff] }
  0xa4   : > { %1150 = vmatmul.mubr.f32.gmra.mrb[46].mxu0 %v346_v5  ;;  %1535 = vmatmul.mubr.f32.gmra.mrb[46].mxu1 %v500_v6  ;;  %v378_v5 = vld [vmem:[%s11260_s0 + $0x270] sm:$0xff]  ;;  %v532_v6 = vld [vmem:[%s11260_s0 + $0x740] sm:$0xff] }
  0xa5   : > { %7005 = vmatprep.mubr.msk.f32.mxu0 %vm581_vm0, %v349_v7  ;;  %7082 = vmatprep.mubr.msk.f32.mxu1 %vm581_vm0, %v503_v8  ;;  %v381_v7 = vld [vmem:[%s11260_s0 + $0x288] sm:$0xff]  ;;  %v535_v8 = vld [vmem:[%s11260_s0 + $0x758] sm:$0xff] }
  0xa8   : > { %1155 = vmatmul.mubr.f32.gmra.mrb[48].mxu0 %v348_v9  ;;  %1540 = vmatmul.mubr.f32.gmra.mrb[48].mxu1 %v502_v10  ;;  %v380_v9 = vld [vmem:[%s11260_s0 + $0x280] sm:$0xff]  ;;  %v534_v10 = vld [vmem:[%s11260_s0 + $0x750] sm:$0xff] }
  0xa9   : > { %7006 = vmatprep.mubr.msk.f32.mxu0 %vm581_vm0, %v351_v11  ;;  %7083 = vmatprep.mubr.msk.f32.mxu1 %vm581_vm0, %v505_v12  ;;  %v383_v11 = vld [vmem:[%s11260_s0 + $0x298] sm:$0xff]  ;;  %v537_v12 = vld [vmem:[%s11260_s0 + $0x768] sm:$0xff] }
  0xac   : > { %1160 = vmatmul.mubr.f32.gmra.mrb[50].mxu0 %v350_v13  ;;  %1545 = vmatmul.mubr.f32.gmra.mrb[50].mxu1 %v504_v14  ;;  %v382_v13 = vld [vmem:[%s11260_s0 + $0x290] sm:$0xff]  ;;  %v536_v14 = vld [vmem:[%s11260_s0 + $0x760] sm:$0xff] }
  0xad   : > { %7007 = vmatprep.mubr.msk.f32.mxu0 %vm581_vm0, %v353_v15  ;;  %7084 = vmatprep.mubr.msk.f32.mxu1 %vm581_vm0, %v507_v16  ;;  %v385_v15 = vld [vmem:[%s11260_s0 + $0x2a8] sm:$0xff]  ;;  %v539_v16 = vld [vmem:[%s11260_s0 + $0x778] sm:$0xff] }
  0xb0   : > { %1165 = vmatmul.mubr.f32.gmra.mrb[52].mxu0 %v352_v17  ;;  %1550 = vmatmul.mubr.f32.gmra.mrb[52].mxu1 %v506_v18  ;;  %v384_v17 = vld [vmem:[%s11260_s0 + $0x2a0] sm:$0xff]  ;;  %v538_v18 = vld [vmem:[%s11260_s0 + $0x770] sm:$0xff] }
  0xb1   : > { %7008 = vmatprep.mubr.msk.f32.mxu0 %vm581_vm0, %v355_v19  ;;  %7085 = vmatprep.mubr.msk.f32.mxu1 %vm581_vm0, %v509_v20  ;;  %v387_v19 = vld [vmem:[%s11260_s0 + $0x2b8] sm:$0xff]  ;;  %v541_v20 = vld [vmem:[%s11260_s0 + $0x788] sm:$0xff] }
  0xb4   : > { %1170 = vmatmul.mubr.f32.gmra.mrb[54].mxu0 %v354_v21  ;;  %1555 = vmatmul.mubr.f32.gmra.mrb[54].mxu1 %v508_v22  ;;  %v386_v21 = vld [vmem:[%s11260_s0 + $0x2b0] sm:$0xff]  ;;  %v540_v22 = vld [vmem:[%s11260_s0 + $0x780] sm:$0xff] }
  0xb5   : > { %7009 = vmatprep.mubr.msk.f32.mxu0 %vm581_vm0, %v357_v23  ;;  %7086 = vmatprep.mubr.msk.f32.mxu1 %vm581_vm0, %v511_v24  ;;  %v389_v23 = vld [vmem:[%s11260_s0 + $0x2c8] sm:$0xff]  ;;  %v543_v24 = vld [vmem:[%s11260_s0 + $0x798] sm:$0xff] }
  0xb8   : > { %1175 = vmatmul.mubr.f32.gmra.mrb[56].mxu0 %v356_v25  ;;  %1560 = vmatmul.mubr.f32.gmra.mrb[56].mxu1 %v510_v26  ;;  %v388_v25 = vld [vmem:[%s11260_s0 + $0x2c0] sm:$0xff]  ;;  %v542_v26 = vld [vmem:[%s11260_s0 + $0x790] sm:$0xff] }
  0xb9   : > { %7010 = vmatprep.mubr.msk.f32.mxu0 %vm581_vm0, %v359_v27  ;;  %7087 = vmatprep.mubr.msk.f32.mxu1 %vm581_vm0, %v513_v28  ;;  %v391_v27 = vld [vmem:[%s11260_s0 + $0x2d8] sm:$0xff]  ;;  %v545_v28 = vld [vmem:[%s11260_s0 + $0x7a8] sm:$0xff] }
  0xbc   : > { %1180 = vmatmul.mubr.f32.gmra.mrb[58].mxu0 %v358_v29  ;;  %1565 = vmatmul.mubr.f32.gmra.mrb[58].mxu1 %v512_v30  ;;  %v390_v29 = vld [vmem:[%s11260_s0 + $0x2d0] sm:$0xff]  ;;  %v544_v30 = vld [vmem:[%s11260_s0 + $0x7a0] sm:$0xff] }
  0xbd   : > { %7011 = vmatprep.mubr.msk.f32.mxu0 %vm581_vm0, %v361_v31  ;;  %7088 = vmatprep.mubr.msk.f32.mxu1 %vm581_vm0, %v515_v32  ;;  %v393_v31 = vld [vmem:[%s11260_s0 + $0x2e8] sm:$0xff]  ;;  %v547_v32 = vld [vmem:[%s11260_s0 + $0x7b8] sm:$0xff] }
  0xc0   : > { %1185 = vmatmul.mubr.f32.gmra.mrb[60].mxu0 %v360_v33  ;;  %1570 = vmatmul.mubr.f32.gmra.mrb[60].mxu1 %v514_v34  ;;  %v392_v33 = vld [vmem:[%s11260_s0 + $0x2e0] sm:$0xff]  ;;  %v546_v34 = vld [vmem:[%s11260_s0 + $0x7b0] sm:$0xff] }
  0xc1   : > { %7012 = vmatprep.mubr.msk.f32.mxu0 %vm581_vm0, %v363_v35  ;;  %7089 = vmatprep.mubr.msk.f32.mxu1 %vm581_vm0, %v517_v36  ;;  %v395_v35 = vld [vmem:[%s11260_s0 + $0x2f8] sm:$0xff]  ;;  %v549_v36 = vld [vmem:[%s11260_s0 + $0x7c8] sm:$0xff] }
  0xc4   : > { %1190 = vmatmul.mubr.f32.gmra.mrb[62].mxu0 %v362_v37  ;;  %1575 = vmatmul.mubr.f32.gmra.mrb[62].mxu1 %v516_v38  ;;  %v394_v37 = vld [vmem:[%s11260_s0 + $0x2f0] sm:$0xff]  ;;  %v548_v38 = vld [vmem:[%s11260_s0 + $0x7c0] sm:$0xff] }
  0xc5   : > { %7013 = vmatprep.mubr.msk.f32.mxu0 %vm581_vm0, %v365_v39  ;;  %7090 = vmatprep.mubr.msk.f32.mxu1 %vm581_vm0, %v519_v40  ;;  %v397_v39 = vld [vmem:[%s11260_s0 + $0x308] sm:$0xff]  ;;  %v551_v40 = vld [vmem:[%s11260_s0 + $0x7d8] sm:$0xff] }
  0xc8   : > { %1195 = vmatmul.mubr.f32.gmra.mrb[64].mxu0 %v364_v41  ;;  %1580 = vmatmul.mubr.f32.gmra.mrb[64].mxu1 %v518_v42  ;;  %v396_v41 = vld [vmem:[%s11260_s0 + $0x300] sm:$0xff]  ;;  %v550_v42 = vld [vmem:[%s11260_s0 + $0x7d0] sm:$0xff] }
  0xc9   : > { %7014 = vmatprep.mubr.msk.f32.mxu0 %vm581_vm0, %v367_v43  ;;  %7091 = vmatprep.mubr.msk.f32.mxu1 %vm581_vm0, %v521_v44  ;;  %v399_v43 = vld [vmem:[%s11260_s0 + $0x318] sm:$0xff]  ;;  %v553_v44 = vld [vmem:[%s11260_s0 + $0x7e8] sm:$0xff] }
  0xcc   : > { %1200 = vmatmul.mubr.f32.gmra.mrb[66].mxu0 %v366_v45  ;;  %1585 = vmatmul.mubr.f32.gmra.mrb[66].mxu1 %v520_v46  ;;  %v398_v45 = vld [vmem:[%s11260_s0 + $0x310] sm:$0xff]  ;;  %v552_v46 = vld [vmem:[%s11260_s0 + $0x7e0] sm:$0xff] }
  0xcd   : > { %7015 = vmatprep.mubr.msk.f32.mxu0 %vm581_vm0, %v369_v47  ;;  %7092 = vmatprep.mubr.msk.f32.mxu1 %vm581_vm0, %v523_v48  ;;  %v401_v47 = vld [vmem:[%s11260_s0 + $0x328] sm:$0xff]  ;;  %v555_v48 = vld [vmem:[%s11260_s0 + $0x7f8] sm:$0xff] }
  0xd0   : > { %1205 = vmatmul.mubr.f32.gmra.mrb[68].mxu0 %v368_v49  ;;  %1590 = vmatmul.mubr.f32.gmra.mrb[68].mxu1 %v522_v50  ;;  %v400_v49 = vld [vmem:[%s11260_s0 + $0x320] sm:$0xff]  ;;  %v554_v50 = vld [vmem:[%s11260_s0 + $0x7f0] sm:$0xff] }
  0xd1   : > { %7016 = vmatprep.mubr.msk.f32.mxu0 %vm581_vm0, %v371_v51  ;;  %7093 = vmatprep.mubr.msk.f32.mxu1 %vm581_vm0, %v525_v52  ;;  %v403_v51 = vld [vmem:[%s11260_s0 + $0x338] sm:$0xff]  ;;  %v402_v52 = vld [vmem:[%s11260_s0 + $0x330] sm:$0xff] }
  0xd4   : > { %1210 = vmatmul.mubr.f32.gmra.mrb[70].mxu0 %v370_v53  ;;  %1595 = vmatmul.mubr.f32.gmra.mrb[70].mxu1 %v524_v54  ;;  %v405_v53 = vld [vmem:[%s11260_s0 + $0x348] sm:$0xff]  ;;  %v1691_v54 = vld [vmem:[%s11262_s2 + $0x80] sm:$0xff] }
  0xd5   : > { %7017 = vmatprep.mubr.msk.f32.mxu0 %vm581_vm0, %v373_v55  ;;  %7094 = vmatprep.mubr.msk.f32.mxu1 %vm581_vm0, %v527_v56  ;;  %v1692_v55 = vld [vmem:[%s11262_s2 + $0x88] sm:$0xff]  ;;  %v1675_v56 = vld [vmem:[%s11262_s2] sm:$0xff] }
  0xd8   : > { %1215 = vmatmul.mubr.f32.gmra.mrb[72].mxu0 %v372_v57  ;;  %1600 = vmatmul.mubr.f32.gmra.mrb[72].mxu1 %v526_v58  ;;  %v404_v57 = vld [vmem:[%s11260_s0 + $0x340] sm:$0xff]  ;;  %v9409_v58 = vpack.c.bf16 %v1692_v55, %v1691_v54 }
  0xd9   : > { %7018 = vmatprep.mubr.msk.f32.mxu0 %vm581_vm0, %v375_v59  ;;  %7095 = vmatprep.mubr.msk.f32.mxu1 %vm581_vm0, %v529_v60  ;;  %v1676_v59 = vld [vmem:[%s11262_s2 + $0x8] sm:$0xff]  ;;  %v407_v60 = vld [vmem:[%s11260_s0 + $0x358] sm:$0xff] }
  0xda   : > { %7980 = vmatprep.subr.bf16.mxu1 %v9409_v58 }
  0xdc   : > { %1220 = vmatmul.mubr.f32.gmra.mrb[74].mxu0 %v374_v61  ;;  %1605 = vmatmul.mubr.f32.gmra.mrb[74].mxu1 %v528_v62  ;;  %v9417_v61 = vpack.c.bf16 %v1676_v59, %v1675_v56  ;;  %v406_v62 = vld [vmem:[%s11260_s0 + $0x350] sm:$0xff]  ;;  %v424_v59 = vld [vmem:[%s11260_s0 + $0x3e0] sm:$0xff] }
  0xdd   : > { %7019 = vmatprep.mubr.msk.f32.mxu0 %vm581_vm0, %v377_v63  ;;  %7096 = vmatprep.mubr.msk.f32.mxu1 %vm581_vm0, %v531_v0  ;;  %v409_v63 = vld [vmem:[%s11260_s0 + $0x368] sm:$0xff] }
  0xde   : > { %11304 = vst [vmem:[#allocation4_spill] sm:$0xff] %v9417_v61  ;;  %7982 = vmatpush3.bf16.msra.mxu1 %v9417_v61 }
  0xe0   : > { %1225 = vmatmul.mubr.f32.gmra.mrb[76].mxu0 %v376_v1  ;;  %1610 = vmatmul.mubr.f32.gmra.mrb[76].mxu1 %v530_v2 }
  0xe1   : > { %7020 = vmatprep.mubr.msk.f32.mxu0 %vm581_vm0, %v379_v3  ;;  %7097 = vmatprep.mubr.msk.f32.mxu1 %vm581_vm0, %v533_v4  ;;  %v408_v4 = vld [vmem:[%s11260_s0 + $0x360] sm:$0xff] }
  0xe4   : > { %1230 = vmatmul.mubr.f32.gmra.mrb[78].mxu0 %v378_v5  ;;  %1615 = vmatmul.mubr.f32.gmra.mrb[78].mxu1 %v532_v6  ;;  %v411_v5 = vld [vmem:[%s11260_s0 + $0x378] sm:$0xff] }
  0xe5   : > { %7021 = vmatprep.mubr.msk.f32.mxu0 %vm581_vm0, %v381_v7  ;;  %7098 = vmatprep.mubr.msk.f32.mxu1 %vm581_vm0, %v535_v8 }
  0xe8   : > { %1235 = vmatmul.mubr.f32.gmra.mrb[80].mxu0 %v380_v9  ;;  %1620 = vmatmul.mubr.f32.gmra.mrb[80].mxu1 %v534_v10  ;;  %v410_v10 = vld [vmem:[%s11260_s0 + $0x370] sm:$0xff] }
  0xe9   : > { %7022 = vmatprep.mubr.msk.f32.mxu0 %vm581_vm0, %v383_v11  ;;  %7099 = vmatprep.mubr.msk.f32.mxu1 %vm581_vm0, %v537_v12  ;;  %v413_v11 = vld [vmem:[%s11260_s0 + $0x388] sm:$0xff] }
  0xec   : > { %1240 = vmatmul.mubr.f32.gmra.mrb[82].mxu0 %v382_v13  ;;  %1625 = vmatmul.mubr.f32.gmra.mrb[82].mxu1 %v536_v14 }
  0xed   : > { %7023 = vmatprep.mubr.msk.f32.mxu0 %vm581_vm0, %v385_v15  ;;  %7100 = vmatprep.mubr.msk.f32.mxu1 %vm581_vm0, %v539_v16  ;;  %v412_v16 = vld [vmem:[%s11260_s0 + $0x380] sm:$0xff] }
  0xf0   : > { %1245 = vmatmul.mubr.f32.gmra.mrb[84].mxu0 %v384_v17  ;;  %1630 = vmatmul.mubr.f32.gmra.mrb[84].mxu1 %v538_v18  ;;  %v415_v17 = vld [vmem:[%s11260_s0 + $0x398] sm:$0xff] }
  0xf1   : > { %7024 = vmatprep.mubr.msk.f32.mxu0 %vm581_vm0, %v387_v19  ;;  %7101 = vmatprep.mubr.msk.f32.mxu1 %vm581_vm0, %v541_v20 }
  0xf4   : > { %1250 = vmatmul.mubr.f32.gmra.mrb[86].mxu0 %v386_v21  ;;  %1635 = vmatmul.mubr.f32.gmra.mrb[86].mxu1 %v540_v22  ;;  %v414_v22 = vld [vmem:[%s11260_s0 + $0x390] sm:$0xff] }
  0xf5   : > { %7025 = vmatprep.mubr.msk.f32.mxu0 %vm581_vm0, %v389_v23  ;;  %7102 = vmatprep.mubr.msk.f32.mxu1 %vm581_vm0, %v543_v24  ;;  %v417_v23 = vld [vmem:[%s11260_s0 + $0x3a8] sm:$0xff] }
  0xf8   : > { %1255 = vmatmul.mubr.f32.gmra.mrb[88].mxu0 %v388_v25  ;;  %1640 = vmatmul.mubr.f32.gmra.mrb[88].mxu1 %v542_v26 }
  0xf9   : > { %7026 = vmatprep.mubr.msk.f32.mxu0 %vm581_vm0, %v391_v27  ;;  %7103 = vmatprep.mubr.msk.f32.mxu1 %vm581_vm0, %v545_v28  ;;  %v416_v28 = vld [vmem:[%s11260_s0 + $0x3a0] sm:$0xff] }
  0xfc   : > { %1260 = vmatmul.mubr.f32.gmra.mrb[90].mxu0 %v390_v29  ;;  %1645 = vmatmul.mubr.f32.gmra.mrb[90].mxu1 %v544_v30  ;;  %v419_v29 = vld [vmem:[%s11260_s0 + $0x3b8] sm:$0xff] }
  0xfd   : > { %7027 = vmatprep.mubr.msk.f32.mxu0 %vm581_vm0, %v393_v31  ;;  %7104 = vmatprep.mubr.msk.f32.mxu1 %vm581_vm0, %v547_v32  ;;  %v1693_v32 = vld [vmem:[%s11262_s2 + $0x90] sm:$0xff] }
 0x100   : > { %1265 = vmatmul.mubr.f32.gmra.mrb[92].mxu0 %v392_v33  ;;  %1650 = vmatmul.mubr.f32.gmra.mrb[92].mxu1 %v546_v34  ;;  %v1694_v33 = vld [vmem:[%s11262_s2 + $0x98] sm:$0xff] }
 0x101   : > { %7028 = vmatprep.mubr.msk.f32.mxu0 %vm581_vm0, %v395_v35  ;;  %7105 = vmatprep.mubr.msk.f32.mxu1 %vm581_vm0, %v549_v36  ;;  %v9493_v36 = vpack.c.bf16 %v1694_v33, %v1693_v32  ;;  %v433_v32 = vld [vmem:[%s11260_s0 + $0x428] sm:$0xff] }
 0x103   : > { %11308 = vst [vmem:[#allocation8_spill] sm:$0xff] %v9493_v36  ;;  %7984 = vmatprep.subr.bf16.mxu1 %v9493_v36 }
 0x104   : > { %1270 = vmatmul.mubr.f32.gmra.mrb[94].mxu0 %v394_v37  ;;  %1655 = vmatmul.mubr.f32.gmra.mrb[94].mxu1 %v548_v38  ;;  %v1677_v37 = vld [vmem:[%s11262_s2 + $0x10] sm:$0xff]  ;;  %v1678_v38 = vld [vmem:[%s11262_s2 + $0x18] sm:$0xff] }
 0x105   : > { %7029 = vmatprep.mubr.msk.f32.mxu0 %vm581_vm0, %v397_v39  ;;  %7106 = vmatprep.mubr.msk.f32.mxu1 %vm581_vm0, %v551_v40  ;;  %v418_v39 = vld [vmem:[%s11260_s0 + $0x3b0] sm:$0xff]  ;;  %v9505_v40 = vpack.c.bf16 %v1678_v38, %v1677_v37 }
 0x107   : > { %11309 = vst [vmem:[#allocation9_spill] sm:$0xff] %v9505_v40  ;;  %7986 = vmatpush3.bf16.msra.mxu1 %v9505_v40 }
 0x108   : > { %1275 = vmatmul.mubr.f32.gmra.mrb[96].mxu0 %v396_v41  ;;  %1660 = vmatmul.mubr.f32.gmra.mrb[96].mxu1 %v550_v42  ;;  %v421_v41 = vld [vmem:[%s11260_s0 + $0x3c8] sm:$0xff] }
 0x109   : > { %7030 = vmatprep.mubr.msk.f32.mxu0 %vm581_vm0, %v399_v43  ;;  %7107 = vmatprep.mubr.msk.f32.mxu1 %vm581_vm0, %v553_v44 }
 0x10c   : > { %1280 = vmatmul.mubr.f32.gmra.mrb[98].mxu0 %v398_v45  ;;  %1665 = vmatmul.mubr.f32.gmra.mrb[98].mxu1 %v552_v46  ;;  %v420_v46 = vld [vmem:[%s11260_s0 + $0x3c0] sm:$0xff] }
 0x10d   : > { %7031 = vmatprep.mubr.msk.f32.mxu0 %vm581_vm0, %v401_v47  ;;  %7108 = vmatprep.mubr.msk.f32.mxu1 %vm581_vm0, %v555_v48  ;;  %v423_v47 = vld [vmem:[%s11260_s0 + $0x3d8] sm:$0xff] }
 0x110   : > { %1285 = vmatmul.mubr.f32.gmra.mrb[100].mxu0 %v400_v49  ;;  %1670 = vmatmul.mubr.f32.gmra.mrb[100].mxu1 %v554_v50 }
 0x111   : > { %7032 = vmatprep.mubr.msk.f32.mxu0 %vm581_vm0, %v403_v51 }
 0x114   : > { %1290 = vmatmul.mubr.f32.gmra.mrb[102].mxu0 %v402_v52  ;;  %v422_v52 = vld [vmem:[%s11260_s0 + $0x3d0] sm:$0xff] }
 0x115   : > { %7033 = vmatprep.mubr.msk.f32.mxu0 %vm581_vm0, %v405_v53  ;;  %v425_v53 = vld [vmem:[%s11260_s0 + $0x3e8] sm:$0xff] }
 0x118   : > { %1295 = vmatmul.mubr.f32.gmra.mrb[104].mxu0 %v404_v57 }
 0x119   : > { %7034 = vmatprep.mubr.msk.f32.mxu0 %vm581_vm0, %v407_v60  ;;  %v427_v60 = vld [vmem:[%s11260_s0 + $0x3f8] sm:$0xff] }
 0x11b   : > { %v9428_v0 = vpop.f32.mrb[0].mxu0  ;;  %v9430_v1 = vpop.f32.mrb[0].mxu1 }
 0x11c   : > { %11305 = vst [vmem:[#allocation5_spill] sm:$0xff] %v9430_v1  ;;  %v1038_v2 = vpop.f32.mrb[1].mxu0  ;;  %1300 = vmatmul.mubr.f32.gmra.mrb[106].mxu0 %v406_v62  ;;  %v1423_v3 = vpop.f32.mrb[1].mxu1 }
 0x11d   : > { %7035 = vmatprep.mubr.msk.f32.mxu0 %vm581_vm0, %v409_v63 }
 0x11f   : > { %v9439_v6 = vpop.f32.mrb[2].mxu0  ;;  %v9441_v7 = vpop.f32.mrb[2].mxu1 }
 0x120   : > { %11306 = vst [vmem:[#allocation6_spill] sm:$0xff] %v9441_v7  ;;  %v1043_v8 = vpop.f32.mrb[3].mxu0  ;;  %1305 = vmatmul.mubr.f32.gmra.mrb[108].mxu0 %v408_v4  ;;  %v1428_v9 = vpop.f32.mrb[3].mxu1  ;;  %v426_v4 = vld [vmem:[%s11260_s0 + $0x3f0] sm:$0xff] }
 0x121   : > { %7036 = vmatprep.mubr.msk.f32.mxu0 %vm581_vm0, %v411_v5  ;;  %v429_v5 = vld [vmem:[%s11260_s0 + $0x408] sm:$0xff] }
 0x123   : > { %v9450_v12 = vpop.f32.mrb[4].mxu0  ;;  %v9452_v13 = vpop.f32.mrb[4].mxu1 }
 0x124   : > { %11307 = vst [vmem:[#allocation7_spill] sm:$0xff] %v9452_v13  ;;  %v1048_v14 = vpop.f32.mrb[5].mxu0  ;;  %1310 = vmatmul.mubr.f32.gmra.mrb[110].mxu0 %v410_v10  ;;  %v1433_v15 = vpop.f32.mrb[5].mxu1 }
 0x125   : > { %7037 = vmatprep.mubr.msk.f32.mxu0 %vm581_vm0, %v413_v11  ;;  %v428_v14 = vld [vmem:[%s11260_s0 + $0x400] sm:$0xff]  ;;  %v431_v15 = vld [vmem:[%s11260_s0 + $0x418] sm:$0xff] }
 0x127   : > { %v9461_v18 = vpop.f32.mrb[6].mxu0  ;;  %v9463_v19 = vpop.f32.mrb[6].mxu1 }
 0x128   : > { %v1053_v20 = vpop.f32.mrb[7].mxu0  ;;  %1315 = vmatmul.mubr.f32.gmra.mrb[112].mxu0 %v412_v16  ;;  %v1438_v21 = vpop.f32.mrb[7].mxu1 }
 0x129   : > { %7038 = vmatprep.mubr.msk.f32.mxu0 %vm581_vm0, %v415_v17 }
 0x12b   : > { %v9472_v24 = vpop.f32.mrb[8].mxu0  ;;  %v9474_v25 = vpop.f32.mrb[8].mxu1 }
 0x12c   : > { %v1058_v26 = vpop.f32.mrb[9].mxu0  ;;  %1320 = vmatmul.mubr.f32.gmra.mrb[114].mxu0 %v414_v22  ;;  %v1443_v27 = vpop.f32.mrb[9].mxu1  ;;  %v1695_v22 = vld [vmem:[%s11262_s2 + $0xa0] sm:$0xff] }
 0x12d   : > { %7039 = vmatprep.mubr.msk.f32.mxu0 %vm581_vm0, %v417_v23  ;;  %v1696_v23 = vld [vmem:[%s11262_s2 + $0xa8] sm:$0xff]  ;;  %v1679_v26 = vld [vmem:[%s11262_s2 + $0x20] sm:$0xff]  ;;  %v430_v27 = vld [vmem:[%s11260_s0 + $0x410] sm:$0xff] }
 0x12f   : > { %v9483_v30 = vpop.f32.mrb[10].mxu0  ;;  %v9485_v31 = vpop.f32.mrb[10].mxu1 }
 0x130   : > { %v1063_v34 = vpop.f32.mrb[11].mxu0  ;;  %1325 = vmatmul.mubr.f32.gmra.mrb[116].mxu0 %v416_v28  ;;  %v1448_v35 = vpop.f32.mrb[11].mxu1  ;;  %v9584_v28 = vpack.c.bf16 %v1696_v23, %v1695_v22 }
 0x131   : > { %7040 = vmatprep.mubr.msk.f32.mxu0 %vm581_vm0, %v419_v29  ;;  %v1680_v29 = vld [vmem:[%s11262_s2 + $0x28] sm:$0xff] }
 0x132   : > { %11310 = vst [vmem:[#allocation10_spill] sm:$0xff] %v9584_v28  ;;  %v9592_v33 = vpack.c.bf16 %v1680_v29, %v1679_v26  ;;  %7988 = vmatprep.subr.bf16.mxu1 %v9584_v28  ;;  %v440_v26 = vld [vmem:[%s11260_s0 + $0x460] sm:$0xff] }
 0x133   : > { %v9511_v42 = vpop.f32.mrb[12].mxu0  ;;  %v9513_v43 = vpop.f32.mrb[12].mxu1 }
 0x134   : > { %v1068_v44 = vpop.f32.mrb[13].mxu0  ;;  %1330 = vmatmul.mubr.f32.gmra.mrb[118].mxu0 %v418_v39  ;;  %v1453_v45 = vpop.f32.mrb[13].mxu1  ;;  %11311 = vst [vmem:[#allocation11_spill] sm:$0xff] %v9592_v33  ;;  %7990 = vmatpush3.bf16.msra.mxu1 %v9592_v33  ;;  %v432_v39 = vld [vmem:[%s11260_s0 + $0x420] sm:$0xff] }
 0x135   : > { %7041 = vmatprep.mubr.msk.f32.mxu0 %vm581_vm0, %v421_v41  ;;  %v435_v41 = vld [vmem:[%s11260_s0 + $0x438] sm:$0xff] }
 0x137   : > { %v9523_v48 = vpop.f32.mrb[14].mxu0  ;;  %v9525_v49 = vpop.f32.mrb[14].mxu1 }
 0x138   : > { %v1073_v50 = vpop.f32.mrb[15].mxu0  ;;  %1335 = vmatmul.mubr.f32.gmra.mrb[120].mxu0 %v420_v46  ;;  %v1458_v51 = vpop.f32.mrb[15].mxu1 }
 0x139   : > { %7042 = vmatprep.mubr.msk.f32.mxu0 %vm581_vm0, %v423_v47  ;;  %v434_v50 = vld [vmem:[%s11260_s0 + $0x430] sm:$0xff]  ;;  %v437_v51 = vld [vmem:[%s11260_s0 + $0x448] sm:$0xff] }
 0x13b   : > { %v9534_v54 = vpop.f32.mrb[16].mxu0  ;;  %v9536_v55 = vpop.f32.mrb[16].mxu1 }
 0x13c   : > { %v1078_v56 = vpop.f32.mrb[17].mxu0  ;;  %1340 = vmatmul.mubr.f32.gmra.mrb[122].mxu0 %v422_v52  ;;  %v1463_v57 = vpop.f32.mrb[17].mxu1 }
 0x13d   : > { %7043 = vmatprep.mubr.msk.f32.mxu0 %vm581_vm0, %v425_v53 }
 0x13f   : > { %v9545_v62 = vpop.f32.mrb[18].mxu0  ;;  %v9547_v63 = vpop.f32.mrb[18].mxu1 }
 0x140   : > { %v1083_v2 = vpop.f32.mrb[19].mxu0  ;;  %1345 = vmatmul.mubr.f32.gmra.mrb[124].mxu0 %v424_v59  ;;  %v1468_v3 = vpop.f32.mrb[19].mxu1  ;;  %v436_v59 = vld [vmem:[%s11260_s0 + $0x440] sm:$0xff] }
 0x141   : > { %7044 = vmatprep.mubr.msk.f32.mxu0 %vm581_vm0, %v427_v60  ;;  %v439_v60 = vld [vmem:[%s11260_s0 + $0x458] sm:$0xff] }
 0x143   : > { %v9556_v8 = vpop.f32.mrb[20].mxu0  ;;  %v9558_v9 = vpop.f32.mrb[20].mxu1 }
 0x144   : > { %v1088_v10 = vpop.f32.mrb[21].mxu0  ;;  %1350 = vmatmul.mubr.f32.gmra.mrb[126].mxu0 %v426_v4  ;;  %v1473_v11 = vpop.f32.mrb[21].mxu1 }
 0x145   : > { %7045 = vmatprep.mubr.msk.f32.mxu0 %vm581_vm0, %v429_v5  ;;  %v438_v10 = vld [vmem:[%s11260_s0 + $0x450] sm:$0xff]  ;;  %v441_v11 = vld [vmem:[%s11260_s0 + $0x468] sm:$0xff] }
 0x147   : > { %v9567_v16 = vpop.f32.mrb[22].mxu0  ;;  %v9569_v17 = vpop.f32.mrb[22].mxu1 }
 0x148   : > { %v1093_v20 = vpop.f32.mrb[23].mxu0  ;;  %1355 = vmatmul.mubr.f32.gmra.mrb[128].mxu0 %v428_v14  ;;  %v1478_v21 = vpop.f32.mrb[23].mxu1 }
 0x149   : > { %7046 = vmatprep.mubr.msk.f32.mxu0 %vm581_vm0, %v431_v15 }
 0x14b   : > { %v9594_v34 = vpop.f32.mrb[24].mxu0  ;;  %v9596_v35 = vpop.f32.mrb[24].mxu1 }
 0x14c   : > { %v1098_v37 = vpop.f32.mrb[25].mxu0  ;;  %1360 = vmatmul.mubr.f32.gmra.mrb[130].mxu0 %v430_v27  ;;  %v1483_v38 = vpop.f32.mrb[25].mxu1  ;;  %v443_v27 = vld [vmem:[%s11260_s0 + $0x478] sm:$0xff] }
 0x14d   : > { %7047 = vmatprep.mubr.msk.f32.mxu0 %vm581_vm0, %v433_v32 }
 0x14f   : > { %v9607_v44 = vpop.f32.mrb[26].mxu0  ;;  %v9609_v45 = vpop.f32.mrb[26].mxu1 }
 0x150   : > { %11312 = vst [vmem:[#allocation12_spill] sm:$0xff] %v9609_v45  ;;  %v1103_v46 = vpop.f32.mrb[27].mxu0  ;;  %1365 = vmatmul.mubr.f32.gmra.mrb[132].mxu0 %v432_v39  ;;  %v1488_v47 = vpop.f32.mrb[27].mxu1 }
 0x151   : > { %7048 = vmatprep.mubr.msk.f32.mxu0 %vm581_vm0, %v435_v41  ;;  %v1697_v41 = vld [vmem:[%s11262_s2 + $0xb0] sm:$0xff]  ;;  %v1698_v46 = vld [vmem:[%s11262_s2 + $0xb8] sm:$0xff] }
 0x152   : > { %v9667_v47 = vpack.c.bf16 %v1698_v46, %v1697_v41 }
 0x153   : > { %v9618_v52 = vpop.f32.mrb[28].mxu0  ;;  %v9620_v53 = vpop.f32.mrb[28].mxu1 }
 0x154   : > { %11313 = vst [vmem:[#allocation13_spill] sm:$0xff] %v9620_v53  ;;  %v1108_v56 = vpop.f32.mrb[29].mxu0  ;;  %1370 = vmatmul.mubr.f32.gmra.mrb[134].mxu0 %v434_v50  ;;  %v1493_v57 = vpop.f32.mrb[29].mxu1  ;;  %11317 = vst [vmem:[#allocation17_spill] sm:$0xff] %v9667_v47  ;;  %v445_v50 = vld [vmem:[%s11260_s0 + $0x488] sm:$0xff]  ;;  %7992 = vmatprep.subr.bf16.mxu1 %v9667_v47 }
 0x155   : > { %7049 = vmatprep.mubr.msk.f32.mxu0 %vm581_vm0, %v437_v51 }
 0x157   : > { %v9629_v2 = vpop.f32.mrb[30].mxu0  ;;  %v9631_v3 = vpop.f32.mrb[30].mxu1 }
 0x158   : > { %11314 = vst [vmem:[#allocation14_spill] sm:$0xff] %v9631_v3  ;;  %v1113_v4 = vpop.f32.mrb[31].mxu0  ;;  %1375 = vmatmul.mubr.f32.gmra.mrb[136].mxu0 %v436_v59  ;;  %v1498_v5 = vpop.f32.mrb[31].mxu1 }
 0x159   : > { %7050 = vmatprep.mubr.msk.f32.mxu0 %vm581_vm0, %v439_v60  ;;  %v1681_v5 = vld [vmem:[%s11262_s2 + $0x30] sm:$0xff] }
 0x15b   : > { %v1116_v14 = vpop.f32.mrb[32].mxu0  ;;  %v9640_v15 = vpop.f32.mrb[32].mxu1 }
 0x15c   : > { %11315 = vst [vmem:[#allocation15_spill] sm:$0xff] %v9640_v15  ;;  %v1118_v20 = vpop.f32.mrb[33].mxu0  ;;  %1380 = vmatmul.mubr.f32.gmra.mrb[138].mxu0 %v438_v10  ;;  %v8321_v21 = vpack.i.bf16 %v9428_v0, %v1116_v14  ;;  %v1503_v23 = vpop.f32.mrb[33].mxu1  ;;  %v1682_v10 = vld [vmem:[%s11262_s2 + $0x38] sm:$0xff] }
 0x15d   : > { %7051 = vmatprep.mubr.msk.f32.mxu0 %vm581_vm0, %v441_v11  ;;  %v9688_v11 = vpack.c.bf16 %v1682_v10, %v1681_v5  ;;  %v447_v14 = vld [vmem:[%s11260_s0 + $0x498] sm:$0xff]  ;;  %v450_v5 = vld [vmem:[%s11260_s0 + $0x4b0] sm:$0xff]  ;;  %v453_v10 = vld [vmem:[%s11260_s0 + $0x4c8] sm:$0xff] }
 0x15e   : > { %8322 = vxpose.xlu0.b32.start [1/16] (narrow) %v8321_v21, 16 }
 0x15f   : > { %v1121_v29 = vpop.f32.mrb[34].mxu0  ;;  %v9652_v32 = vpop.f32.mrb[34].mxu1  ;;  %11319 = vst [vmem:[#allocation19_spill] sm:$0xff] %v9688_v11  ;;  %7994 = vmatpush3.bf16.msra.mxu1 %v9688_v11 }
 0x160   : > { %11316 = vst [vmem:[#allocation16_spill] sm:$0xff] %v9652_v32  ;;  %v8323_v0 = vpack.i.bf16 %v9439_v6, %v1121_v29  ;;  %v1123_v37 = vpop.f32.mrb[35].mxu0  ;;  %1385 = vmatmul.mubr.f32.gmra.mrb[140].mxu0 %v440_v26  ;;  %v1508_v39 = vpop.f32.mrb[35].mxu1  ;;  %v442_v6 = vld [vmem:[%s11260_s0 + $0x470] sm:$0xff] }
 0x161   : > { %7052 = vmatprep.mubr.msk.f32.mxu0 %vm581_vm0, %v443_v27  ;;  %v446_v29 = vld [vmem:[%s11260_s0 + $0x490] sm:$0xff] }
 0x162   : > { %8324 = vxpose.xlu0.b32.cont [2/16] (narrow) %v8323_v0, 16  ;;  %v449_v0 = vld [vmem:[%s11260_s0 + $0x4a8] sm:$0xff] }
 0x163   : > { %v1126_v51 = vpop.f32.mrb[36].mxu0  ;;  %v9672_v56 = vpop.f32.mrb[36].mxu1 }
 0x164   : > { %11318 = vst [vmem:[#allocation18_spill] sm:$0xff] %v9672_v56  ;;  %v8325_v57 = vpack.i.bf16 %v9450_v12, %v1126_v51  ;;  %v1128_v59 = vpop.f32.mrb[37].mxu0  ;;  %1390 = vmatmul.mubr.f32.gmra.mrb[142].mxu0 %v442_v6  ;;  %v1513_v4 = vpop.f32.mrb[37].mxu1  ;;  %v444_v12 = vld [vmem:[%s11260_s0 + $0x480] sm:$0xff] }
 0x165   : > { %7053 = vmatprep.mubr.msk.f32.mxu0 %vm581_vm0, %v445_v50  ;;  %v448_v6 = vld [vmem:[%s11260_s0 + $0x4a0] sm:$0xff]  ;;  %v451_v50 = vld [vmem:[%s11260_s0 + $0x4b8] sm:$0xff] }
 0x166   : > { %8326 = vxpose.xlu0.b32.cont [3/16] (narrow) %v8325_v57, 16 }
 0x167   : > { %v1131_v20 = vpop.f32.mrb[38].mxu0  ;;  %v9693_v21 = vpop.f32.mrb[38].mxu1 }
 0x168   : > { %v8327_v23 = vpack.i.bf16 %v9461_v18, %v1131_v20  ;;  %v1133_v26 = vpop.f32.mrb[39].mxu0  ;;  %1395 = vmatmul.mubr.f32.gmra.mrb[144].mxu0 %v444_v12  ;;  %v1518_v27 = vpop.f32.mrb[39].mxu1 }
 0x169   : > { %7054 = vmatprep.mubr.msk.f32.mxu0 %vm581_vm0, %v447_v14  ;;  %v452_v26 = vld [vmem:[%s11260_s0 + $0x4c0] sm:$0xff] }
 0x16a   : > { %8328 = vxpose.xlu0.b32.cont [4/16] (narrow) %v8327_v23, 16 }
 0x16b   : > { %v1136_v37 = vpop.f32.mrb[40].mxu0  ;;  %v9704_v39 = vpop.f32.mrb[40].mxu1 }
 0x16c   : > { %v8329_v41 = vpack.i.bf16 %v9472_v24, %v1136_v37  ;;  %v1138_v18 = vpop.f32.mrb[41].mxu0  ;;  %1400 = vmatmul.mubr.f32.gmra.mrb[146].mxu0 %v446_v29  ;;  %v1523_v46 = vpop.f32.mrb[41].mxu1 }
 0x16d   : > { %7055 = vmatprep.mubr.msk.f32.mxu0 %vm581_vm0, %v449_v0 }
 0x16e   : > { %8330 = vxpose.xlu0.b32.cont [5/16] (narrow) %v8329_v41, 16 }
 0x16f   : > { %v1141_v51 = vpop.f32.mrb[42].mxu0  ;;  %v9714_v57 = vpop.f32.mrb[42].mxu1 }
 0x170   : > { %v8331_v59 = vpack.i.bf16 %v9483_v30, %v1141_v51  ;;  %v1143_v24 = vpop.f32.mrb[43].mxu0  ;;  %1405 = vmatmul.mubr.f32.gmra.mrb[148].mxu0 %v448_v6  ;;  %v1528_v4 = vpop.f32.mrb[43].mxu1  ;;  %v1699_v51 = vld [vmem:[%s11262_s2 + $0xc0] sm:$0xff] }
 0x171   : > { %7056 = vmatprep.mubr.msk.f32.mxu0 %vm581_vm0, %v451_v50 }
 0x172   : > { %8332 = vxpose.xlu0.b32.cont [6/16] (narrow) %v8331_v59, 16  ;;  %v1700_v59 = vld [vmem:[%s11262_s2 + $0xc8] sm:$0xff] }
 0x173   : > { %v1146_v12 = vpop.f32.mrb[44].mxu0  ;;  %v9724_v14 = vpop.f32.mrb[44].mxu1  ;;  %v9746_v24 = vpack.c.bf16 %v1700_v59, %v1699_v51 }
 0x174   : > { %v8333_v20 = vpack.i.bf16 %v9511_v42, %v1146_v12  ;;  %v1148_v30 = vpop.f32.mrb[45].mxu0  ;;  %1410 = vmatmul.mubr.f32.gmra.mrb[150].mxu0 %v450_v5  ;;  %v1533_v23 = vpop.f32.mrb[45].mxu1 }
 0x175   : > { %7057 = vmatprep.mubr.msk.f32.mxu0 %vm581_vm0, %v453_v10  ;;  %11320 = vst [vmem:[#allocation20_spill] sm:$0xff] %v9746_v24  ;;  %7996 = vmatprep.subr.bf16.mxu1 %v9746_v24 }
 0x176   : > { %8334 = vxpose.xlu0.b32.cont [7/16] (narrow) %v8333_v20, 16 }
 0x177   : > { %v1151_v27 = vpop.f32.mrb[46].mxu0  ;;  %v9731_v29 = vpop.f32.mrb[46].mxu1 }
 0x178   : > { %v8335_v0 = vpack.i.bf16 %v9523_v48, %v1151_v27  ;;  %v1153_v37 = vpop.f32.mrb[47].mxu0  ;;  %1415 = vmatmul.mubr.f32.gmra.mrb[152].mxu0 %v452_v26  ;;  %v1538_v41 = vpop.f32.mrb[47].mxu1  ;;  %v1683_v48 = vld [vmem:[%s11262_s2 + $0x40] sm:$0xff] }
 0x17a   : > { %8336 = vxpose.xlu0.b32.cont [8/16] (narrow) %v8335_v0, 16 }
 0x17b   : > { %v1156_v42 = vpop.f32.mrb[48].mxu0  ;;  %v9734_v18 = vpop.f32.mrb[48].mxu1 }
 0x17c   : > { %v8337_v46 = vpack.i.bf16 %v9534_v54, %v1156_v42  ;;  %v1158_v6 = vpop.f32.mrb[49].mxu0  ;;  %v1543_v50 = vpop.f32.mrb[49].mxu1  ;;  %v1684_v54 = vld [vmem:[%s11262_s2 + $0x48] sm:$0xff] }
 0x17d   : > { %v9751_v4 = vpack.c.bf16 %v1684_v54, %v1683_v48 }
 0x17e   : > { %8338 = vxpose.xlu0.b32.cont [9/16] (narrow) %v8337_v46, 16 }
 0x17f   : > { %11321 = vst [vmem:[#allocation21_spill] sm:$0xff] %v9751_v4  ;;  %v1161_v5 = vpop.f32.mrb[50].mxu0  ;;  %v9753_v10 = vpop.f32.mrb[50].mxu1  ;;  %7998 = vmatpush3.bf16.msra.mxu1 %v9751_v4 }
 0x180   : > { %v8339_v12 = vpack.i.bf16 %v9545_v62, %v1161_v5  ;;  %v1163_v20 = vpop.f32.mrb[51].mxu0  ;;  %v1548_v30 = vpop.f32.mrb[51].mxu1 }
 0x182   : > { %8340 = vxpose.xlu0.b32.cont [10/16] (narrow) %v8339_v12, 16 }
 0x183   : > { %v1166_v23 = vpop.f32.mrb[52].mxu0  ;;  %v9758_v26 = vpop.f32.mrb[52].mxu1 }
 0x184   : > { %v8341_v27 = vpack.i.bf16 %v9556_v8, %v1166_v23  ;;  %v1168_v0 = vpop.f32.mrb[53].mxu0  ;;  %v1553_v37 = vpop.f32.mrb[53].mxu1 }
 0x186   : > { %8342 = vxpose.xlu0.b32.cont [11/16] (narrow) %v8341_v27, 16 }
 0x187   : > { %v1171_v41 = vpop.f32.mrb[54].mxu0  ;;  %v9761_v42 = vpop.f32.mrb[54].mxu1 }
 0x188   : > { %v8343_v46 = vpack.i.bf16 %v9567_v16, %v1171_v41  ;;  %v1173_v6 = vpop.f32.mrb[55].mxu0  ;;  %v1558_v62 = vpop.f32.mrb[55].mxu1  ;;  %v1702_v41 = vld [vmem:[%s11262_s2 + $0xd8] sm:$0xff] }
 0x18a   : > { %8344 = vxpose.xlu0.b32.cont [12/16] (narrow) %v8343_v46, 16 }
 0x18b   : > { %v1176_v50 = vpop.f32.mrb[56].mxu0  ;;  %v9764_v51 = vpop.f32.mrb[56].mxu1 }
 0x18c   : > { %v8345_v59 = vpack.i.bf16 %v9594_v34, %v1176_v50  ;;  %v1178_v48 = vpop.f32.mrb[57].mxu0  ;;  %v1563_v54 = vpop.f32.mrb[57].mxu1  ;;  %v1701_v34 = vld [vmem:[%s11262_s2 + $0xd0] sm:$0xff] }
 0x18d   : > { %v9782_v46 = vpack.c.bf16 %v1702_v41, %v1701_v34 }
 0x18e   : > { %8346 = vxpose.xlu0.b32.cont [13/16] (narrow) %v8345_v59, 16 }
 0x18f   : > { %v1181_v8 = vpop.f32.mrb[58].mxu0  ;;  %v9767_v5 = vpop.f32.mrb[58].mxu1  ;;  %11324 = vst [vmem:[#allocation24_spill] sm:$0xff] %v9782_v46  ;;  %8000 = vmatprep.subr.bf16.mxu1 %v9782_v46 }
 0x190   : > { %11322 = vst [vmem:[#allocation22_spill] sm:$0xff] %v9767_v5  ;;  %v8347_v12 = vpack.i.bf16 %v9607_v44, %v1181_v8  ;;  %v1183_v20 = vpop.f32.mrb[59].mxu0  ;;  %v1568_v30 = vpop.f32.mrb[59].mxu1  ;;  %v1685_v44 = vld [vmem:[%s11262_s2 + $0x50] sm:$0xff]  ;;  %v1728_v5 = vld [vmem:[%s11262_s2 + $0x1a8] sm:$0xff] }
 0x192   : > { %8348 = vxpose.xlu0.b32.cont [14/16] (narrow) %v8347_v12, 16 }
 0x193   : > { %v1186_v16 = vpop.f32.mrb[60].mxu0  ;;  %v9770_v23 = vpop.f32.mrb[60].mxu1 }
 0x194   : > { %11323 = vst [vmem:[#allocation23_spill] sm:$0xff] %v9770_v23  ;;  %v8349_v27 = vpack.i.bf16 %v9618_v52, %v1186_v16  ;;  %v1188_v0 = vpop.f32.mrb[61].mxu0  ;;  %v1573_v37 = vpop.f32.mrb[61].mxu1  ;;  %v1686_v52 = vld [vmem:[%s11262_s2 + $0x58] sm:$0xff] }
 0x195   : > { %v9787_v6 = vpack.c.bf16 %v1686_v52, %v1685_v44 }
 0x196   : > { %8350 = vxpose.xlu0.b32.cont [15/16] (narrow) %v8349_v27, 16 }
 0x197   : > { %11325 = vst [vmem:[#allocation25_spill] sm:$0xff] %v9787_v6  ;;  %v1191_v62 = vpop.f32.mrb[62].mxu0  ;;  %v9789_v50 = vpop.f32.mrb[62].mxu1  ;;  %8002 = vmatpush3.bf16.msra.mxu1 %v9787_v6 }
 0x198   : > { %11326 = vst [vmem:[#allocation26_spill] sm:$0xff] %v9789_v50  ;;  %v8351_v59 = vpack.i.bf16 %v9629_v2, %v1191_v62  ;;  %v1193_v48 = vpop.f32.mrb[63].mxu0  ;;  %v1578_v54 = vpop.f32.mrb[63].mxu1 }
 0x19a   : > { %8352 = vxpose.xlu0.b32.end [16/16] (narrow) %v8351_v59, 16 }
 0x19b   : > { %v9794_v8 = vpop.f32.mrb[64].mxu0  ;;  %v9796_v12 = vpop.f32.mrb[64].mxu1 }
 0x19c   : > { %11327 = vst [vmem:[#allocation27_spill] sm:$0xff] %v9796_v12  ;;  %v1198_v20 = vpop.f32.mrb[65].mxu0  ;;  %v1583_v30 = vpop.f32.mrb[65].mxu1 }
 0x19f   : > { %v9798_v16 = vpop.f32.mrb[66].mxu0  ;;  %v9800_v27 = vpop.f32.mrb[66].mxu1 }
 0x1a0   : > { %v1203_v0 = vpop.f32.mrb[67].mxu0  ;;  %v1588_v37 = vpop.f32.mrb[67].mxu1 }
 0x1a1   : > { %v1687_v37 = vld [vmem:[%s11262_s2 + $0x60] sm:$0xff] }
 0x1a3   : > { %v9802_v34 = vpop.f32.mrb[68].mxu0  ;;  %v9804_v2 = vpop.f32.mrb[68].mxu1 }
 0x1a4   : > { %v1208_v41 = vpop.f32.mrb[69].mxu0  ;;  %v1593_v44 = vpop.f32.mrb[69].mxu1 }
 0x1a5   : > { %v1703_v41 = vld [vmem:[%s11262_s2 + $0xe0] sm:$0xff]  ;;  %v1704_v44 = vld [vmem:[%s11262_s2 + $0xe8] sm:$0xff] }
 0x1a7   : > { %v9806_v52 = vpop.f32.mrb[70].mxu0  ;;  %v9808_v62 = vpop.f32.mrb[70].mxu1 }
 0x1a8   : > { %v1213_v59 = vpop.f32.mrb[71].mxu0  ;;  %v1598_v54 = vpop.f32.mrb[71].mxu1 }
 0x1a9   : > { %v9824_v59 = vpack.c.bf16 %v1704_v44, %v1703_v41  ;;  %v1688_v41 = vld [vmem:[%s11262_s2 + $0x68] sm:$0xff] }
 0x1aa   : > { %v9839_v44 = vpack.c.bf16 %v1688_v41, %v1687_v37  ;;  %v1690_v37 = vld [vmem:[%s11262_s2 + $0x78] sm:$0xff] }
 0x1ab   : > { %v9812_v20 = vpop.f32.mrb[72].mxu0  ;;  %v9814_v30 = vpop.f32.mrb[72].mxu1  ;;  %11328 = vst [vmem:[#allocation28_spill] sm:$0xff] %v9824_v59  ;;  %8004 = vmatprep.subr.bf16.mxu1 %v9824_v59 }
 0x1ac   : > { %v1218_v0 = vpop.f32.mrb[73].mxu0  ;;  %v1603_v60 = vpop.f32.mrb[73].mxu1  ;;  %11329 = vst [vmem:[#allocation29_spill] sm:$0xff] %v9839_v44  ;;  %8006 = vmatpush3.bf16.msra.mxu1 %v9839_v44 }
 0x1af   : > { %v9826_v54 = vpop.f32.mrb[74].mxu0  ;;  %v9828_v38 = vpop.f32.mrb[74].mxu1 }
 0x1b0   : > { %v1223_v0 = vpop.f32.mrb[75].mxu0  ;;  %v1608_v22 = vpop.f32.mrb[75].mxu1 }
 0x1b3   : > { %v9841_v48 = vpop.f32.mrb[76].mxu0  ;;  %v9843_v6 = vpop.f32.mrb[76].mxu1 }
 0x1b4   : > { %v1228_v0 = vpop.f32.mrb[77].mxu0  ;;  %v1613_v60 = vpop.f32.mrb[77].mxu1 }
 0x1b5   : > { %v1705_v0 = vld [vmem:[%s11262_s2 + $0xf0] sm:$0xff]  ;;  %v1706_v60 = vld [vmem:[%s11262_s2 + $0xf8] sm:$0xff] }
 0x1b6   : > { %v9866_v47 = vpack.c.bf16 %v1706_v60, %v1705_v0  ;;  %v1724_v0 = vld [vmem:[%s11262_s2 + $0x188] sm:$0xff] }
 0x1b7   : > { %v9848_v59 = vpop.f32.mrb[78].mxu0  ;;  %v9850_v46 = vpop.f32.mrb[78].mxu1 }
 0x1b8   : > { %v1233_v4 = vpop.f32.mrb[79].mxu0  ;;  %v1618_v41 = vpop.f32.mrb[79].mxu1  ;;  %11330 = vst [vmem:[#allocation30_spill] sm:$0xff] %v9866_v47  ;;  %8008 = vmatprep.subr.bf16.mxu1 %v9866_v47 }
 0x1b9   : > { %v1689_v41 = vld [vmem:[%s11262_s2 + $0x70] sm:$0xff] }
 0x1ba   : > { %v9874_v33 = vpack.c.bf16 %v1690_v37, %v1689_v41 }
 0x1bb   : > { %v9854_v24 = vpop.f32.mrb[80].mxu0  ;;  %v9856_v11 = vpop.f32.mrb[80].mxu1 }
 0x1bc   : > { %v1238_v22 = vpop.f32.mrb[81].mxu0  ;;  %v1623_v44 = vpop.f32.mrb[81].mxu1  ;;  %11331 = vst [vmem:[#allocation31_spill] sm:$0xff] %v9874_v33  ;;  %8010 = vmatpush3.bf16.msra.mxu1 %v9874_v33 }
 0x1bd   : > { %v1723_v44 = vld [vmem:[%s11262_s2 + $0x180] sm:$0xff] }
 0x1be   : > { %v9890_v4 = vpack.c.bf16 %v1724_v0, %v1723_v44 }
 0x1bf   : > { %v9877_v28 = vpop.f32.mrb[82].mxu0  ;;  %v9879_v22 = vpop.f32.mrb[82].mxu1 }
 0x1c0   : > { %v1243_v60 = vpop.f32.mrb[83].mxu0  ;;  %v1628_v41 = vpop.f32.mrb[83].mxu1  ;;  %11332 = vst [vmem:[#allocation32_spill] sm:$0xff] %v9890_v4  ;;  %8012 = vmatprep.subr.bf16.mxu1 %v9890_v4 }
 0x1c3   : > { %v9893_v47 = vpop.f32.mrb[84].mxu0  ;;  %v9895_v33 = vpop.f32.mrb[84].mxu1 }
 0x1c4   : > { %v1248_v40 = vpop.f32.mrb[85].mxu0  ;;  %v1633_v61 = vpop.f32.mrb[85].mxu1 }
 0x1c7   : > { %v9899_v56 = vpop.f32.mrb[86].mxu0  ;;  %v9901_v60 = vpop.f32.mrb[86].mxu1 }
 0x1c8   : > { %v1253_v13 = vpop.f32.mrb[87].mxu0  ;;  %v1638_v0 = vpop.f32.mrb[87].mxu1 }
 0x1cb   : > { %v9905_v41 = vpop.f32.mrb[88].mxu0  ;;  %v9907_v37 = vpop.f32.mrb[88].mxu1 }
 0x1cc   : > { %11333 = vst [vmem:[#allocation33_spill] sm:$0xff] %v9907_v37  ;;  %v1258_v4 = vpop.f32.mrb[89].mxu0  ;;  %v1643_v32 = vpop.f32.mrb[89].mxu1 }
 0x1cf   : > { %v9911_v36 = vpop.f32.mrb[90].mxu0  ;;  %v9913_v61 = vpop.f32.mrb[90].mxu1 }
 0x1d0   : > { %11334 = vst [vmem:[#allocation34_spill] sm:$0xff] %v9913_v61  ;;  %v1263_v7 = vpop.f32.mrb[91].mxu0  ;;  %v1648_v15 = vpop.f32.mrb[91].mxu1 }
 0x1d1   : > { %v1726_v7 = vld [vmem:[%s11262_s2 + $0x198] sm:$0xff] }
 0x1d3   : > { %v9917_v44 = vpop.f32.mrb[92].mxu0  ;;  %v9919_v0 = vpop.f32.mrb[92].mxu1 }
 0x1d4   : > { %11335 = vst [vmem:[#allocation35_spill] sm:$0xff] %v9919_v0  ;;  %v1268_v1 = vpop.f32.mrb[93].mxu0  ;;  %v1653_v3 = vpop.f32.mrb[93].mxu1 }
 0x1d5   : > { %v1707_v1 = vld [vmem:[%s11262_s2 + $0x100] sm:$0xff]  ;;  %v1708_v3 = vld [vmem:[%s11262_s2 + $0x108] sm:$0xff] }
 0x1d6   : > { %v9946_v50 = vpack.c.bf16 %v1708_v3, %v1707_v1 }
 0x1d7   : > { %v9923_v40 = vpop.f32.mrb[94].mxu0  ;;  %v9925_v32 = vpop.f32.mrb[94].mxu1 }
 0x1d8   : > { %11336 = vst [vmem:[#allocation36_spill] sm:$0xff] %v9925_v32  ;;  %v1273_v53 = vpop.f32.mrb[95].mxu0  ;;  %v1658_v45 = vpop.f32.mrb[95].mxu1 }
 0x1d9   : > { %v1725_v45 = vld [vmem:[%s11262_s2 + $0x190] sm:$0xff]  ;;  %v1710_v53 = vld [vmem:[%s11262_s2 + $0x118] sm:$0xff] }
 0x1da   : > { %v9959_v3 = vpack.c.bf16 %v1726_v7, %v1725_v45 }
 0x1db   : > { %v1276_v13 = vpop.f32.mrb[96].mxu0  ;;  %v9929_v15 = vpop.f32.mrb[96].mxu1 }
 0x1dc   : > { %11337 = vst [vmem:[#allocation37_spill] sm:$0xff] %v9929_v15  ;;  %v1278_v4 = vpop.f32.mrb[97].mxu0  ;;  %v8363_v0 = vpack.i.bf16 %v9794_v8, %v1276_v13  ;;  %v1663_v23 = vpop.f32.mrb[97].mxu1 }
 0x1dd   : > { %v1709_v23 = vld [vmem:[%s11262_s2 + $0x110] sm:$0xff] }
 0x1de   : > { %8364 = vxpose.xlu1.b32.start [1/16] (narrow) %v8363_v0, 16  ;;  %v8353_v32 = vpop.trf.xlu0  ;;  %v9967_v37 = vpack.c.bf16 %v1710_v53, %v1709_v23  ;;  %v1711_v53 = vld [vmem:[%s11262_s2 + $0x120] sm:$0xff]  ;;  %v1713_v0 = vld [vmem:[%s11262_s2 + $0x130] sm:$0xff] }
 0x1df   : > { %v1281_v61 = vpop.f32.mrb[98].mxu0  ;;  %v9948_v4 = vpop.f32.mrb[98].mxu1  ;;  %v8357_v8 = vunpack.i.h.bf16 %v8353_v32  ;;  %v8354_v13 = vunpack.i.l.bf16 %v8353_v32  ;;  %v1727_v32 = vld [vmem:[%s11262_s2 + $0x1a0] sm:$0xff] }
 0x1e0   : > { %v8365_v15 = vpack.i.bf16 %v9798_v16, %v1281_v61  ;;  %v1283_v12 = vpop.f32.mrb[99].mxu0  ;;  %v1668_v1 = vpop.f32.mrb[99].mxu1 }
 0x1e1   : > { %1938 = vmatprep.mubr.f32.mxu1 %v8354_v13 }
 0x1e2   : > { %8366 = vxpose.xlu1.b32.cont [2/16] (narrow) %v8365_v15, 16  ;;  %1939 = vmatmul.mubr.f32.vlgmr.msra.gmra.mrb[102].mxu1 %v8357_v8  ;;  %v8358_v12 = vpop.trf.xlu0  ;;  %v9976_v15 = vpack.c.bf16 %v1728_v5, %v1727_v32  ;;  %v1712_v8 = vld [vmem:[%s11262_s2 + $0x128] sm:$0xff] }
 0x1e3   : > { %v1286_v16 = vpop.f32.mrb[100].mxu0  ;;  %v9969_v61 = vpop.f32.mrb[100].mxu1  ;;  %8014 = vmatpush3.bf16.msra.mxu1 %v9946_v50  ;;  %v8359_v7 = vunpack.i.l.bf16 %v8358_v12  ;;  %v8362_v45 = vunpack.i.h.bf16 %v8358_v12  ;;  %v1730_v12 = vld [vmem:[%s11262_s2 + $0x1b8] sm:$0xff]  ;;  %v9991_v32 = vpack.c.bf16 %v1712_v8, %v1711_v53 }
 0x1e4   : > { %v8367_v13 = vpack.i.bf16 %v9802_v34, %v1286_v16  ;;  %v1288_v1 = vpop.f32.mrb[101].mxu0  ;;  %8016 = vmatprep.subr.bf16.mxu1 %v9959_v3  ;;  %v1673_v23 = vpop.f32.mrb[101].mxu1  ;;  %v1729_v34 = vld [vmem:[%s11262_s2 + $0x1b0] sm:$0xff] }
 0x1e5   : > { %1943 = vmatprep.mubr.f32.mxu1 %v8359_v7  ;;  %v9995_v23 = vpack.c.bf16 %v1730_v12, %v1729_v34  ;;  %v1714_v7 = vld [vmem:[%s11262_s2 + $0x138] sm:$0xff] }
 0x1e6   : > { %8368 = vxpose.xlu1.b32.cont [3/16] (narrow) %v8367_v13, 16  ;;  %1944 = vmatmul.mubr.f32.gmra.mrb[104].mxu1 %v8362_v45  ;;  %v1731_v45 = vld [vmem:[%s11262_s2 + $0x1c0] sm:$0xff]  ;;  %v10010_v53 = vpack.c.bf16 %v1714_v7, %v1713_v0  ;;  %v1733_v0 = vld [vmem:[%s11262_s2 + $0x1d0] sm:$0xff] }
 0x1e7   : > { %v1291_v5 = vpop.f32.mrb[102].mxu0  ;;  %8018 = vmatpush3.bf16.msra.mxu1 %v9967_v37 }
 0x1e8   : > { %v8369_v16 = vpack.i.bf16 %v9806_v52, %v1291_v5  ;;  %v1293_v1 = vpop.f32.mrb[103].mxu0  ;;  %8020 = vmatprep.subr.bf16.mxu1 %v9976_v15  ;;  %v1732_v52 = vld [vmem:[%s11262_s2 + $0x1c8] sm:$0xff]  ;;  %v1715_v5 = vld [vmem:[%s11262_s2 + $0x140] sm:$0xff] }
 0x1e9   : > { %v10014_v12 = vpack.c.bf16 %v1732_v52, %v1731_v45 }
 0x1ea   : > { %8370 = vxpose.xlu1.b32.cont [4/16] (narrow) %v8369_v16, 16  ;;  %v1716_v16 = vld [vmem:[%s11262_s2 + $0x148] sm:$0xff] }
 0x1eb   : > { %v1296_v13 = vpop.f32.mrb[104].mxu0  ;;  %8022 = vmatpush3.bf16.msra.mxu1 %v9991_v32  ;;  %11338 = vst [vmem:[#allocation38_spill] sm:$0xff] %v10014_v12  ;;  %v10029_v7 = vpack.c.bf16 %v1716_v16, %v1715_v5  ;;  %v1735_v5 = vld [vmem:[%s11262_s2 + $0x1e0] sm:$0xff] }
 0x1ec   : > { %v8371_v8 = vpack.i.bf16 %v9812_v20, %v1296_v13  ;;  %v1298_v34 = vpop.f32.mrb[105].mxu0  ;;  %8024 = vmatprep.subr.bf16.mxu1 %v9995_v23  ;;  %v1734_v20 = vld [vmem:[%s11262_s2 + $0x1d8] sm:$0xff] }
 0x1ed   : > { %11339 = vst [vmem:[#allocation39_spill] sm:$0xff] %v10029_v7  ;;  %v10033_v13 = vpack.c.bf16 %v1734_v20, %v1733_v0  ;;  %v1717_v34 = vld [vmem:[%s11262_s2 + $0x150] sm:$0xff] }
 0x1ee   : > { %8372 = vxpose.xlu1.b32.cont [5/16] (narrow) %v8371_v8, 16  ;;  %v1718_v8 = vld [vmem:[%s11262_s2 + $0x158] sm:$0xff] }
 0x1ef   : > { %v1301_v1 = vpop.f32.mrb[106].mxu0  ;;  %8026 = vmatpush3.bf16.msra.mxu1 %v10010_v53  ;;  %11340 = vst [vmem:[#allocation40_spill] sm:$0xff] %v10033_v13  ;;  %v10048_v0 = vpack.c.bf16 %v1718_v8, %v1717_v34  ;;  %v1737_v34 = vld [vmem:[%s11262_s2 + $0x1f0] sm:$0xff] }
 0x1f0   : > { %v8373_v45 = vpack.i.bf16 %v9826_v54, %v1301_v1  ;;  %v1303_v52 = vpop.f32.mrb[107].mxu0  ;;  %8028 = vmatprep.subr.bf16.mxu1 %v10014_v12  ;;  %v1736_v54 = vld [vmem:[%s11262_s2 + $0x1e8] sm:$0xff]  ;;  %v1719_v12 = vld [vmem:[%s11262_s2 + $0x160] sm:$0xff] }
 0x1f1   : > { %v10052_v52 = vpack.c.bf16 %v1736_v54, %v1735_v5 }
 0x1f2   : > { %8374 = vxpose.xlu1.b32.cont [6/16] (narrow) %v8373_v45, 16  ;;  %v1720_v45 = vld [vmem:[%s11262_s2 + $0x168] sm:$0xff] }
 0x1f3   : > { %v1306_v16 = vpop.f32.mrb[108].mxu0  ;;  %8030 = vmatpush3.bf16.msra.mxu1 %v10029_v7  ;;  %v10067_v5 = vpack.c.bf16 %v1720_v45, %v1719_v12 }
 0x1f4   : > { %v8375_v20 = vpack.i.bf16 %v9841_v48, %v1306_v16  ;;  %v1308_v1 = vpop.f32.mrb[109].mxu0  ;;  %8032 = vmatprep.subr.bf16.mxu1 %v10033_v13  ;;  %v1738_v48 = vld [vmem:[%s11262_s2 + $0x1f8] sm:$0xff]  ;;  %v1721_v13 = vld [vmem:[%s11262_s2 + $0x170] sm:$0xff] }
 0x1f5   : > { %v10071_v1 = vpack.c.bf16 %v1738_v48, %v1737_v34 }
 0x1f6   : > { %8376 = vxpose.xlu1.b32.cont [7/16] (narrow) %v8375_v20, 16  ;;  %v1722_v20 = vld [vmem:[%s11262_s2 + $0x178] sm:$0xff] }
 0x1f7   : > { %v1311_v8 = vpop.f32.mrb[110].mxu0  ;;  %8034 = vmatpush3.bf16.msra.mxu1 %v10048_v0  ;;  %v10080_v12 = vpack.c.bf16 %v1722_v20, %v1721_v13 }
 0x1f8   : > { %v8377_v54 = vpack.i.bf16 %v9848_v59, %v1311_v8  ;;  %v1313_v16 = vpop.f32.mrb[111].mxu0  ;;  %8036 = vmatprep.subr.bf16.mxu1 %v10052_v52 }
 0x1f9   : > { %11341 = vst [vmem:[#allocation41_spill] sm:$0xff] %v10080_v12 }
 0x1fa   : > { %8378 = vxpose.xlu1.b32.cont [8/16] (narrow) %v8377_v54, 16 }
 0x1fb   : > { %v1316_v7 = vpop.f32.mrb[112].mxu0  ;;  %8038 = vmatpush3.bf16.msra.mxu1 %v10067_v5 }
 0x1fc   : > { %v8379_v59 = vpack.i.bf16 %v9854_v24, %v1316_v7  ;;  %v1318_v45 = vpop.f32.mrb[113].mxu0  ;;  %8040 = vmatprep.subr.bf16.mxu1 %v10071_v1 }
 0x1fe   : > { %8380 = vxpose.xlu1.b32.cont [9/16] (narrow) %v8379_v59, 16 }
 0x1ff   : > { %v1321_v34 = vpop.f32.mrb[114].mxu0  ;;  %8042 = vmatpush3.bf16.msra.mxu1 %v10080_v12 }
 0x200   : > { %v8381_v48 = vpack.i.bf16 %v9877_v28, %v1321_v34  ;;  %v1323_v8 = vpop.f32.mrb[115].mxu0  ;;  %8044 = vmatprep.subr.bf16.mxu1 %v9409_v58 }
 0x202   : > { %8382 = vxpose.xlu1.b32.cont [10/16] (narrow) %v8381_v48, 16 }
 0x203   : > { %v1326_v54 = vpop.f32.mrb[116].mxu0 }
 0x204   : > { %v8383_v16 = vpack.i.bf16 %v9893_v47, %v1326_v54  ;;  %v1328_v13 = vpop.f32.mrb[117].mxu0 }
 0x206   : > { %8384 = vxpose.xlu1.b32.cont [11/16] (narrow) %v8383_v16, 16 }
 0x207   : > { %v1331_v20 = vpop.f32.mrb[118].mxu0 }
 0x208   : > { %v8385_v24 = vpack.i.bf16 %v9899_v56, %v1331_v20  ;;  %v1333_v7 = vpop.f32.mrb[119].mxu0  ;;  %v11342_v20 = vpack.i.bf16 %v9693_v21, %v9808_v62 }
 0x209   : > { %v11343_v7 = vpack.i.bf16 %v9704_v39, %v9814_v30 }
 0x20a   : > { %8386 = vxpose.xlu1.b32.cont [12/16] (narrow) %v8385_v24, 16 }
 0x20b   : > { %v1336_v59 = vpop.f32.mrb[120].mxu0 }
 0x20c   : > { %v8387_v45 = vpack.i.bf16 %v9905_v41, %v1336_v59  ;;  %v1338_v12 = vpop.f32.mrb[121].mxu0 }
 0x20e   : > { %8388 = vxpose.xlu1.b32.cont [13/16] (narrow) %v8387_v45, 16 }
 0x20f   : > { %v1341_v28 = vpop.f32.mrb[122].mxu0 }
 0x210   : > { %v8389_v34 = vpack.i.bf16 %v9911_v36, %v1341_v28  ;;  %v1343_v58 = vpop.f32.mrb[123].mxu0 }
 0x212   : > { %8390 = vxpose.xlu1.b32.cont [14/16] (narrow) %v8389_v34, 16 }
 0x213   : > { %v1346_v48 = vpop.f32.mrb[124].mxu0 }
 0x214   : > { %v8391_v47 = vpack.i.bf16 %v9917_v44, %v1346_v48  ;;  %v1348_v8 = vpop.f32.mrb[125].mxu0 }
 0x216   : > { %8392 = vxpose.xlu1.b32.cont [15/16] (narrow) %v8391_v47, 16 }
 0x217   : > { %v1351_v54 = vpop.f32.mrb[126].mxu0 }
 0x218   : > { %v8393_v56 = vpack.i.bf16 %v9923_v40, %v1351_v54  ;;  %v1353_v16 = vpop.f32.mrb[127].mxu0 }
 0x21a   : > { %8394 = vxpose.xlu1.b32.end [16/16] (narrow) %v8393_v56, 16 }
 0x21b   : > { %v1356_v13 = vpop.f32.mrb[128].mxu0 }
 0x21c   : > { %v8405_v41 = vpack.i.bf16 %v1356_v13, %v9463_v19  ;;  %v1358_v12 = vpop.f32.mrb[129].mxu0  ;;  %v11344_v19 = vpack.i.bf16 %v9714_v57, %v9828_v38 }
 0x21e   : > { %8448 = vxpose.xlu1.b32.start [1/16] (narrow) %v11342_v20, 16  ;;  %8406 = vxpose.xlu0.b32.start [1/16] (narrow) %v8405_v41, 16  ;;  %v11355_v41 = vld [vmem:[#allocation34_spill] sm:$0xff] }
 0x21f   : > { %v1361_v36 = vpop.f32.mrb[130].mxu0 }
 0x220   : > { %v8407_v24 = vpack.i.bf16 %v1361_v36, %v9474_v25  ;;  %v1363_v44 = vpop.f32.mrb[131].mxu0  ;;  %v11345_v25 = vpack.i.bf16 %v9724_v14, %v9843_v6 }
 0x222   : > { %8450 = vxpose.xlu1.b32.cont [2/16] (narrow) %v11343_v7, 16  ;;  %8408 = vxpose.xlu0.b32.cont [2/16] (narrow) %v8407_v24, 16  ;;  %v11359_v24 = vld [vmem:[#allocation35_spill] sm:$0xff]  ;;  %v11361_v7 = vld [vmem:[#allocation14_spill] sm:$0xff] }
 0x223   : > { %v1366_v40 = vpop.f32.mrb[132].mxu0 }
 0x224   : > { %v8409_v59 = vpack.i.bf16 %v1366_v40, %v9485_v31  ;;  %v1368_v45 = vpop.f32.mrb[133].mxu0  ;;  %v11346_v31 = vpack.i.bf16 %v9731_v29, %v9850_v46 }
 0x225   : > { %v11362_v45 = vld [vmem:[#allocation26_spill] sm:$0xff] }
 0x226   : > { %8452 = vxpose.xlu1.b32.cont [3/16] (narrow) %v11344_v19, 16  ;;  %8410 = vxpose.xlu0.b32.cont [3/16] (narrow) %v8409_v59, 16  ;;  %v11363_v19 = vld [vmem:[#allocation36_spill] sm:$0xff] }
 0x227   : > { %v1371_v21 = vpop.f32.mrb[134].mxu0 }
 0x228   : > { %v8411_v62 = vpack.i.bf16 %v1371_v21, %v9513_v43  ;;  %v1373_v28 = vpop.f32.mrb[135].mxu0  ;;  %v11347_v43 = vpack.i.bf16 %v9734_v18, %v9856_v11  ;;  %v11364_v21 = vpack.i.bf16 %v11362_v45, %v11363_v19  ;;  %v8505_v19 = vmov 1983009808  }
 0x229   : > { %v11366_v28 = vld [vmem:[#allocation37_spill] sm:$0xff] }
 0x22a   : > { %8454 = vxpose.xlu1.b32.cont [4/16] (narrow) %v11345_v25, 16  ;;  %8412 = vxpose.xlu0.b32.cont [4/16] (narrow) %v8411_v62, 16  ;;  %v11365_v62 = vld [vmem:[#allocation27_spill] sm:$0xff] }
 0x22b   : > { %v1376_v39 = vpop.f32.mrb[136].mxu0  ;;  %v11367_v25 = vpack.i.bf16 %v11365_v62, %v11366_v28 }
 0x22c   : > { %v8413_v30 = vpack.i.bf16 %v1376_v39, %v9525_v49  ;;  %v1378_v34 = vpop.f32.mrb[137].mxu0  ;;  %v11348_v49 = vpack.i.bf16 %v9753_v10, %v9879_v22  ;;  %v11368_v39 = vld [vmem:[#allocation5_spill] sm:$0xff] }
 0x22e   : > { %8456 = vxpose.xlu1.b32.cont [5/16] (narrow) %v11346_v31, 16  ;;  %8414 = vxpose.xlu0.b32.cont [5/16] (narrow) %v8413_v30, 16  ;;  %v11369_v30 = vld [vmem:[#allocation15_spill] sm:$0xff]  ;;  %v11371_v31 = vpack.i.bf16 %v9800_v27, %v9948_v4 }
 0x22f   : > { %v1381_v38 = vpop.f32.mrb[138].mxu0  ;;  %v11370_v34 = vpack.i.bf16 %v11368_v39, %v11369_v30 }
 0x230   : > { %v8415_v57 = vpack.i.bf16 %v1381_v38, %v9536_v55  ;;  %v1383_v58 = vpop.f32.mrb[139].mxu0  ;;  %v11349_v55 = vpack.i.bf16 %v9758_v26, %v9895_v33  ;;  %v11353_v26 = vld [vmem:[#allocation12_spill] sm:$0xff]  ;;  %v11372_v38 = vld [vmem:[#allocation6_spill] sm:$0xff] }
 0x232   : > { %8458 = vxpose.xlu1.b32.cont [6/16] (narrow) %v11347_v43, 16  ;;  %8416 = vxpose.xlu0.b32.cont [6/16] (narrow) %v8415_v57, 16  ;;  %v11373_v57 = vld [vmem:[#allocation16_spill] sm:$0xff]  ;;  %v11375_v43 = vpack.i.bf16 %v9804_v2, %v9969_v61  ;;  %v11381_v2 = vld [vmem:[#allocation9_spill] sm:$0xff]  ;;  %v11382_v61 = vld [vmem:[#allocation10_spill] sm:$0xff] }
 0x233   : > { %v1386_v14 = vpop.f32.mrb[140].mxu0  ;;  %v11374_v58 = vpack.i.bf16 %v11372_v38, %v11373_v57 }
 0x234   : > { %v8417_v6 = vpack.i.bf16 %v1386_v14, %v9547_v63  ;;  %v1388_v48 = vpop.f32.mrb[141].mxu0  ;;  %v11350_v63 = vpack.i.bf16 %v9761_v42, %v9901_v60  ;;  %v11357_v60 = vld [vmem:[#allocation13_spill] sm:$0xff]  ;;  %v11376_v14 = vld [vmem:[#allocation7_spill] sm:$0xff] }
 0x236   : > { %8460 = vxpose.xlu1.b32.cont [7/16] (narrow) %v11348_v49, 16  ;;  %8418 = vxpose.xlu0.b32.cont [7/16] (narrow) %v8417_v6, 16  ;;  %v11377_v6 = vld [vmem:[#allocation18_spill] sm:$0xff] }
 0x237   : > { %v1391_v29 = vpop.f32.mrb[142].mxu0  ;;  %v11378_v48 = vpack.i.bf16 %v11376_v14, %v11377_v6 }
 0x238   : > { %v8419_v46 = vpack.i.bf16 %v1391_v29, %v9558_v9  ;;  %v1393_v47 = vpop.f32.mrb[143].mxu0  ;;  %v11351_v9 = vld [vmem:[#allocation33_spill] sm:$0xff] }
 0x239   : > { %v11352_v56 = vpack.i.bf16 %v9764_v51, %v11351_v9  ;;  %v11389_v9 = vld [vmem:[#allocation25_spill] sm:$0xff] }
 0x23a   : > { %8462 = vxpose.xlu1.b32.cont [8/16] (narrow) %v11349_v55, 16  ;;  %8420 = vxpose.xlu0.b32.cont [8/16] (narrow) %v8419_v46, 16  ;;  %v11379_v55 = vld [vmem:[#allocation4_spill] sm:$0xff] }
 0x23b   : > { %v1396_v11 = vpop.f32.mrb[144].mxu0 }
 0x23c   : > { %v8421_v18 = vpack.i.bf16 %v1396_v11, %v9569_v17  ;;  %v1398_v8 = vpop.f32.mrb[145].mxu0  ;;  %v11354_v17 = vld [vmem:[#allocation22_spill] sm:$0xff]  ;;  %v11380_v11 = vld [vmem:[#allocation8_spill] sm:$0xff] }
 0x23d   : > { %v11356_v12 = vpack.i.bf16 %v11354_v17, %v11355_v41  ;;  %v11384_v8 = vld [vmem:[#allocation17_spill] sm:$0xff] }
 0x23e   : > { %8464 = vxpose.xlu1.b32.cont [9/16] (narrow) %v11350_v63, 16  ;;  %8422 = vxpose.xlu0.b32.cont [9/16] (narrow) %v8421_v18, 16  ;;  %v11383_v18 = vld [vmem:[#allocation11_spill] sm:$0xff] }
 0x23f   : > { %v1401_v10 = vpop.f32.mrb[146].mxu0  ;;  %v11385_v63 = vld [vmem:[#allocation19_spill] sm:$0xff] }
 0x240   : > { %v8423_v22 = vpack.i.bf16 %v1401_v10, %v9596_v35  ;;  %v1403_v54 = vpop.f32.mrb[147].mxu0  ;;  %v11358_v35 = vld [vmem:[#allocation23_spill] sm:$0xff]  ;;  %v11386_v10 = vld [vmem:[#allocation20_spill] sm:$0xff] }
 0x241   : > { %v11360_v44 = vpack.i.bf16 %v11358_v35, %v11359_v24  ;;  %v11388_v54 = vld [vmem:[#allocation24_spill] sm:$0xff] }
 0x242   : > { %8466 = vxpose.xlu1.b32.cont [10/16] (narrow) %v11352_v56, 16  ;;  %8424 = vxpose.xlu0.b32.cont [10/16] (narrow) %v8423_v22, 16  ;;  %v11387_v22 = vld [vmem:[#allocation21_spill] sm:$0xff]  ;;  %v11390_v56 = vld [vmem:[#allocation28_spill] sm:$0xff] }
 0x243   : > { %v1406_v33 = vpop.f32.mrb[148].mxu0 }
 0x244   : > { %v8425_v16 = vpack.i.bf16 %v1406_v33, %v11353_v26  ;;  %v1408_v13 = vpop.f32.mrb[149].mxu0  ;;  %v11391_v33 = vld [vmem:[#allocation29_spill] sm:$0xff]  ;;  %v11392_v26 = vld [vmem:[#allocation30_spill] sm:$0xff] }
 0x245   : > { %v11394_v13 = vld [vmem:[#allocation32_spill] sm:$0xff] }
 0x246   : > { %8468 = vxpose.xlu1.b32.cont [11/16] (narrow) %v11356_v12, 16  ;;  %8426 = vxpose.xlu0.b32.cont [11/16] (narrow) %v8425_v16, 16  ;;  %v11393_v16 = vld [vmem:[#allocation31_spill] sm:$0xff] }
 0x247   : > { %v1411_v42 = vpop.f32.mrb[150].mxu0 }
 0x248   : > { %v8427_v20 = vpack.i.bf16 %v1411_v42, %v11357_v60  ;;  %v1413_v36 = vpop.f32.mrb[151].mxu0 }
 0x24a   : > { %8470 = vxpose.xlu1.b32.cont [12/16] (narrow) %v11360_v44, 16  ;;  %8428 = vxpose.xlu0.b32.cont [12/16] (narrow) %v8427_v20, 16  ;;  %v11395_v44 = vld [vmem:[#allocation38_spill] sm:$0xff] }
 0x24b   : > { %v1416_v51 = vpop.f32.mrb[152].mxu0 }
 0x24c   : > { %v8429_v40 = vpack.i.bf16 %v1416_v51, %v11361_v7  ;;  %v1418_v59 = vpop.f32.mrb[153].mxu0  ;;  %v11397_v51 = vld [vmem:[#allocation40_spill] sm:$0xff] }
 0x24e   : > { %8472 = vxpose.xlu1.b32.cont [13/16] (narrow) %v11364_v21, 16  ;;  %8430 = vxpose.xlu0.b32.cont [13/16] (narrow) %v8429_v40, 16  ;;  %v2031_v21 = vlaneseq }
 0x250   : > { %v2032_v28 = vshrl.u32 %v2031_v21, 7 }
 0x252   : > { %8474 = vxpose.xlu1.b32.cont [14/16] (narrow) %v11367_v25, 16  ;;  %8432 = vxpose.xlu0.b32.cont [14/16] (narrow) %v11370_v34, 16 }
 0x256   : > { %8476 = vxpose.xlu1.b32.cont [15/16] (narrow) %v11371_v31, 16  ;;  %8434 = vxpose.xlu0.b32.cont [15/16] (narrow) %v11374_v58, 16 }
 0x25a   : > { %8478 = vxpose.xlu1.b32.end [16/16] (narrow) %v11375_v43, 16  ;;  %8436 = vxpose.xlu0.b32.end [16/16] (narrow) %v11378_v48, 16 }
 0x25e   : > { %v8395_v49 = vpop.trf.xlu1 }
 0x25f   : > { %v8399_v29 = vunpack.i.h.bf16 %v8395_v49  ;;  %v8396_v46 = vunpack.i.l.bf16 %v8395_v49 }
 0x261   : > { %2013 = vmatprep.mubr.f32.mxu1 %v8396_v46 }
 0x262   : > { %2014 = vmatmul.mubr.f32.vlgmr.msra.gmra.mrb[106].mxu1 %v8399_v29  ;;  %v8400_v47 = vpop.trf.xlu1 }
 0x263   : > { %v8401_v27 = vunpack.i.l.bf16 %v8400_v47  ;;  %v8404_v4 = vunpack.i.h.bf16 %v8400_v47  ;;  %8046 = vmatpush3.bf16.msra.mxu1 %v11379_v55 }
 0x264   : > { %8048 = vmatprep.subr.bf16.mxu1 %v11380_v11 }
 0x265   : > { %2018 = vmatprep.mubr.f32.mxu1 %v8401_v27 }
 0x266   : > { %2019 = vmatmul.mubr.f32.gmra.mrb[108].mxu1 %v8404_v4 }
 0x267   : > { %8050 = vmatpush3.bf16.msra.mxu1 %v11381_v2 }
 0x268   : > { %8052 = vmatprep.subr.bf16.mxu1 %v11382_v61 }
 0x26b   : > { %8054 = vmatpush3.bf16.msra.mxu1 %v11383_v18 }
 0x26c   : > { %8056 = vmatprep.subr.bf16.mxu1 %v11384_v8 }
 0x26f   : > { %8058 = vmatpush3.bf16.msra.mxu1 %v11385_v63 }
 0x270   : > { %8060 = vmatprep.subr.bf16.mxu1 %v11386_v10 }
 0x273   : > { %8062 = vmatpush3.bf16.msra.mxu1 %v11387_v22 }
 0x274   : > { %8064 = vmatprep.subr.bf16.mxu1 %v11388_v54 }
 0x277   : > { %8066 = vmatpush3.bf16.msra.mxu1 %v11389_v9 }
 0x278   : > { %8068 = vmatprep.subr.bf16.mxu1 %v11390_v56 }
 0x27b   : > { %8070 = vmatpush3.bf16.msra.mxu1 %v11391_v33 }
 0x27c   : > { %8072 = vmatprep.subr.bf16.mxu1 %v11392_v26 }
 0x27f   : > { %8074 = vmatpush3.bf16.msra.mxu1 %v11393_v16 }
 0x280   : > { %8076 = vmatprep.subr.bf16.mxu1 %v11394_v13 }
 0x29e   : > { %v8437_v17 = vpop.trf.xlu0  ;;  %v8479_v41 = vpop.trf.xlu1 }
 0x29f   : > { %v8441_v12 = vunpack.i.h.bf16 %v8437_v17  ;;  %v8438_v42 = vunpack.i.l.bf16 %v8437_v17  ;;  %v8480_v20 = vunpack.i.l.bf16 %v8479_v41 }
 0x2a1   : > { %2372 = vmatprep.mubr.f32.mxu1 %v8438_v42 }
 0x2a2   : > { %2373 = vmatmul.mubr.f32.vlgmr.msra.gmra.mrb[110].mxu1 %v8441_v12  ;;  %v8442_v60 = vpop.trf.xlu0  ;;  %v8484_v36 = vpop.trf.xlu1 }
 0x2a3   : > { %8078 = vmatpush3.bf16.msra.mxu1 %v9946_v50  ;;  %v8446_v35 = vunpack.i.h.bf16 %v8442_v60  ;;  %v8443_v24 = vunpack.i.l.bf16 %v8442_v60  ;;  %v11396_v50 = vld [vmem:[#allocation39_spill] sm:$0xff]  ;;  %v8485_v59 = vunpack.i.l.bf16 %v8484_v36  ;;  %v8488_v45 = vunpack.i.h.bf16 %v8484_v36 }
 0x2a4   : > { %8080 = vmatprep.subr.bf16.mxu1 %v9959_v3 }
 0x2a5   : > { %2377 = vmatprep.mubr.f32.mxu1 %v8443_v24 }
 0x2a6   : > { %2378 = vmatmul.mubr.f32.gmra.mrb[112].mxu1 %v8446_v35 }
 0x2a7   : > { %8082 = vmatpush3.bf16.msra.mxu1 %v9967_v37  ;;  %2447 = vmatprep.mubr.f32.mxu1 %v8480_v20 }
 0x2a8   : > { %8084 = vmatprep.subr.bf16.mxu1 %v9976_v15 }
 0x2ab   : > { %8086 = vmatpush3.bf16.msra.mxu1 %v9991_v32 }
 0x2ac   : > { %8088 = vmatprep.subr.bf16.mxu1 %v9995_v23  ;;  %v8483_v23 = vunpack.i.h.bf16 %v8479_v41 }
 0x2af   : > { %8090 = vmatpush3.bf16.msra.mxu1 %v10010_v53  ;;  %v11398_v53 = vld [vmem:[#allocation41_spill] sm:$0xff] }
 0x2b0   : > { %8092 = vmatprep.subr.bf16.mxu1 %v11395_v44 }
 0x2b3   : > { %8094 = vmatpush3.bf16.msra.mxu1 %v11396_v50 }
 0x2b4   : > { %8096 = vmatprep.subr.bf16.mxu1 %v11397_v51 }
 0x2b5   : > { %v7683_v3 = vpop.f32.mrb[102].mxu1 }
 0x2b6   : > { %v7684_v7 = vpop.f32.mrb[103].mxu1 }
 0x2b7   : > { %8098 = vmatpush3.bf16.msra.mxu1 %v10048_v0  ;;  %v7685_v37 = vadd.f32 %v7684_v7, %v7683_v3  ;;  %v2029_v0 = vunpack.c.l.s4 %v8505_v19 }
 0x2b8   : > { %8100 = vmatprep.subr.bf16.mxu1 %v10052_v52  ;;  %v10197_v52 = vld [vmem:[%s11263_s3] ss:$0 sm:$0xff] }
 0x2b9   : > { %v7686_v15 = vpop.f32.mrb[104].mxu1 }
 0x2ba   : > { %v7687_v40 = vpop.f32.mrb[105].mxu1 }
 0x2bb   : > { %8102 = vmatpush3.bf16.msra.mxu1 %v10067_v5  ;;  %v7688_v32 = vadd.f32 %v7687_v40, %v7686_v15  ;;  %v1941_v5 = vadd.f32 %v7685_v37, %v10197_v52 }
 0x2bc   : > { %8104 = vmatprep.subr.bf16.mxu1 %v10071_v1  ;;  %v2030_v1 = vunpack.c.0.s8 %v2029_v0 }
 0x2bd   : > { %v1946_v30 = vadd.f32 %v7688_v32, %v10197_v52 }
 0x2be   : > { %v10201_v31 = vsub.s32 %v2030_v1, %v2032_v28 }
 0x2bf   : > { %8106 = vmatpush3.bf16.msra.mxu1 %v11398_v53 }
 0x2c2   : > { %2448 = vmatmul.mubr.f32.vlgmr.msra.gmra.mrb[114].mxu1 %v8483_v23 }
 0x2c3   : > { %2452 = vmatprep.mubr.f32.mxu1 %v8485_v59 }
 0x2c6   : > { %2453 = vmatmul.mubr.f32.gmra.mrb[116].mxu1 %v8488_v45 }
 0x335   : > { %v7721_v62 = vpop.f32.mrb[106].mxu1 }
 0x336   : > { %v7722_v25 = vpop.f32.mrb[107].mxu1 }
 0x337   : > { %v7723_v39 = vadd.f32 %v7722_v25, %v7721_v62 }
 0x339   : > { %v2016_v34 = vadd.f32 %v7723_v39, %v1941_v5  ;;  %v7724_v38 = vpop.f32.mrb[108].mxu1 }
 0x33a   : > { %v7725_v57 = vpop.f32.mrb[109].mxu1 }
 0x33b   : > { %v2024_v58 = vmax.f32 %v2016_v34, 0.0  ;;  %v7726_v43 = vadd.f32 %v7725_v57, %v7724_v38 }
 0x33d   : > { %2026 = vst [vmem:[#allocation2] sm:$0x1] %v2024_v58  ;;  %v2034_v14 = vrot.slane %v2024_v58, %v10201_v31  ;;  %v2046_v6 = vcombine.high %v2024_v58, %v2024_v58  ;;  %v2021_v48 = vadd.f32 %v7726_v43, %v1946_v30 }
 0x33f   : > { %v7110_v49 = vrot.slane %v2034_v14, 9  ;;  %v2039_v29 = vcombine.high %v2034_v14, %v2034_v14  ;;  %v2053_v46 = vrot.slane %v2046_v6, %v10201_v31  ;;  %7112 = vst.sshfl [vmem:[#allocation2 + $0x8] sm:$0x1 pattern:$0x76325410] %v2046_v6  ;;  %v2025_v47 = vmax.f32 %v2021_v48, 0.0 }
 0x341   : > { %2038 = vst [vmem:[#allocation2 + $0x2] sm:$0x1] %v7110_v49  ;;  %2041 = vst [vmem:[#allocation2 + $0x4] sm:$0x1] %v2039_v29  ;;  %v7111_v27 = vrot.slane %v2039_v29, 9  ;;  %v7113_v4 = vrot.slane %v2053_v46, 9  ;;  %v2060_v55 = vcombine.high %v2053_v46, %v2053_v46  ;;  %v2076_v11 = vrot.slane %v2025_v47, %v10201_v31 }
 0x342   : > { %2068 = vst [vmem:[#allocation2 + $0x10] sm:$0x1] %v2025_v47  ;;  %v2088_v2 = vcombine.high %v2025_v47, %v2025_v47 }
 0x343   : > { %2045 = vst [vmem:[#allocation2 + $0x6] sm:$0x1] %v7111_v27  ;;  %2059 = vst [vmem:[#allocation2 + $0xa] sm:$0x1] %v7113_v4  ;;  %v7114_v61 = vrot.slane %v2060_v55, 9  ;;  %v7115_v18 = vrot.slane %v2076_v11, 9  ;;  %v2081_v8 = vcombine.high %v2076_v11, %v2076_v11 }
 0x344   : > { %2062 = vst [vmem:[#allocation2 + $0xc] sm:$0x1] %v2060_v55  ;;  %v2095_v63 = vrot.slane %v2088_v2, %v10201_v31  ;;  %7117 = vst.sshfl [vmem:[#allocation2 + $0x18] sm:$0x1 pattern:$0x76325410] %v2088_v2 }
 0x345   : > { %2066 = vst [vmem:[#allocation2 + $0xe] sm:$0x1] %v7114_v61  ;;  %2080 = vst [vmem:[#allocation2 + $0x12] sm:$0x1] %v7115_v18  ;;  %v7116_v10 = vrot.slane %v2081_v8, 9 }
 0x346   : > { %2083 = vst [vmem:[#allocation2 + $0x14] sm:$0x1] %v2081_v8  ;;  %v7118_v22 = vrot.slane %v2095_v63, 9  ;;  %v2102_v54 = vcombine.high %v2095_v63, %v2095_v63 }
 0x347   : > { %2087 = vst [vmem:[#allocation2 + $0x16] sm:$0x1] %v7116_v10 }
 0x348   : > { %2101 = vst [vmem:[#allocation2 + $0x1a] sm:$0x1] %v7118_v22  ;;  %2104 = vst [vmem:[#allocation2 + $0x1c] sm:$0x1] %v2102_v54  ;;  %v7119_v9 = vrot.slane %v2102_v54, 9 }
 0x34a   : > { %2108 = vst [vmem:[#allocation2 + $0x1e] sm:$0x1] %v7119_v9 }
 0x375   : > { %v7759_v56 = vpop.f32.mrb[110].mxu1 }
 0x376   : > { %v7760_v33 = vpop.f32.mrb[111].mxu1 }
 0x377   : > { %v7761_v26 = vadd.f32 %v7760_v33, %v7759_v56 }
 0x379   : > { %v7762_v16 = vpop.f32.mrb[112].mxu1  ;;  %v2375_v42 = vadd.f32 %v7761_v26, %v10197_v52 }
 0x37a   : > { %v7763_v13 = vpop.f32.mrb[113].mxu1 }
 0x37b   : > { %v7764_v17 = vadd.f32 %v7763_v13, %v7762_v16 }
 0x37d   : > { %v2380_v24 = vadd.f32 %v7764_v17, %v10197_v52 }
 0x395   : > { %v7797_v41 = vpop.f32.mrb[114].mxu1 }
 0x396   : > { %v7798_v12 = vpop.f32.mrb[115].mxu1 }
 0x397   : > { %v7799_v60 = vadd.f32 %v7798_v12, %v7797_v41 }
 0x399   : > { %v2450_v20 = vadd.f32 %v7799_v60, %v2375_v42  ;;  %v7800_v36 = vpop.f32.mrb[116].mxu1 }
 0x39a   : > { %v7801_v35 = vpop.f32.mrb[117].mxu1 }
 0x39b   : > { %v2458_v44 = vmax.f32 %v2450_v20, 0.0  ;;  %v7802_v50 = vadd.f32 %v7801_v35, %v7800_v36 }
 0x39d   : > { %2460 = vst [vmem:[#allocation2 + $0x1] sm:$0x1] %v2458_v44  ;;  %v2468_v51 = vrot.slane %v2458_v44, %v10201_v31  ;;  %v2480_v3 = vcombine.high %v2458_v44, %v2458_v44  ;;  %v2455_v7 = vadd.f32 %v7802_v50, %v2380_v24 }
 0x39f   : > { %v7121_v37 = vrot.slane %v2468_v51, 9  ;;  %v2473_v15 = vcombine.high %v2468_v51, %v2468_v51  ;;  %v2487_v40 = vrot.slane %v2480_v3, %v10201_v31  ;;  %7123 = vst.sshfl [vmem:[#allocation2 + $0x9] sm:$0x1 pattern:$0x76325410] %v2480_v3  ;;  %v2459_v32 = vmax.f32 %v2455_v7, 0.0 }
 0x3a1   : > { %2472 = vst [vmem:[#allocation2 + $0x3] sm:$0x1] %v7121_v37  ;;  %2475 = vst [vmem:[#allocation2 + $0x5] sm:$0x1] %v2473_v15  ;;  %v7122_v23 = vrot.slane %v2473_v15, 9  ;;  %v7124_v53 = vrot.slane %v2487_v40, 9  ;;  %v2494_v59 = vcombine.high %v2487_v40, %v2487_v40  ;;  %v2509_v45 = vrot.slane %v2459_v32, %v10201_v31 }
 0x3a2   : > { %2501 = vst [vmem:[#allocation2 + $0x11] sm:$0x1] %v2459_v32  ;;  %v2521_v19 = vcombine.high %v2459_v32, %v2459_v32 }
 0x3a3   : > { %2479 = vst [vmem:[#allocation2 + $0x7] sm:$0x1] %v7122_v23  ;;  %2493 = vst [vmem:[#allocation2 + $0xb] sm:$0x1] %v7124_v53  ;;  %v7125_v0 = vrot.slane %v2494_v59, 9  ;;  %v7126_v21 = vrot.slane %v2509_v45, 9  ;;  %v2514_v52 = vcombine.high %v2509_v45, %v2509_v45 }
 0x3a4   : > { %2496 = vst [vmem:[#allocation2 + $0xd] sm:$0x1] %v2494_v59  ;;  %v2528_v5 = vrot.slane %v2521_v19, %v10201_v31  ;;  %7128 = vst.sshfl [vmem:[#allocation2 + $0x19] sm:$0x1 pattern:$0x76325410] %v2521_v19 }
 0x3a5   : > { %2500 = vst [vmem:[#allocation2 + $0xf] sm:$0x1] %v7125_v0  ;;  %2513 = vst [vmem:[#allocation2 + $0x13] sm:$0x1] %v7126_v21  ;;  %v7127_v62 = vrot.slane %v2514_v52, 9 }
 0x3a6   : > { %2516 = vst [vmem:[#allocation2 + $0x15] sm:$0x1] %v2514_v52  ;;  %v7129_v1 = vrot.slane %v2528_v5, 9  ;;  %v2535_v28 = vcombine.high %v2528_v5, %v2528_v5 }
 0x3a7   : > { %2520 = vst [vmem:[#allocation2 + $0x17] sm:$0x1] %v7127_v62 }
 0x3a8   : > { %2534 = vst [vmem:[#allocation2 + $0x1b] sm:$0x1] %v7129_v1  ;;  %2537 = vst [vmem:[#allocation2 + $0x1d] sm:$0x1] %v2535_v28  ;;  %v7130_v25 = vrot.slane %v2535_v28, 9 }
 0x3aa   : > { %2541 = vst [vmem:[#allocation2 + $0x1f] sm:$0x1] %v7130_v25 }
 0x3ab PF: > { %v2603_v39 = vld [vmem:[%s8566_s11] sm:$0xff]  ;;  %v2604_v34 = vld [vmem:[%s8566_s11 + $0x8] sm:$0xff]  ;;  %v8506_v13 = vmov 1983009808   ;;  %v2555_v41 = vlaneseq  ;;  %s7650_s20 = sshll.u32 %s8558_s28, 4  ;;  %p7645_p5 = scmp.ne.s32.totalorder %s8558_s28, 1 }
 0x3ac   : > { %v2607_v30 = vld [vmem:[%s8566_s11 + $0x20] sm:$0xff]  ;;  %v2608_v38 = vld [vmem:[%s8566_s11 + $0x28] sm:$0xff]  ;;  %v2553_v17 = vunpack.c.l.s4 %v8506_v13  ;;  %s10248_s21 = scalar_lea.vmem [#allocation2], %s7650_s20  ;;  %vm6925_vm5 = vcmask (!%p7645_p5), 58368  }
 0x3ad   : > { %v7134_v31 = vcombine.high %v2603_v39, %v2607_v30  ;;  %v7133_v57 = vcombine.low %v2603_v39, %v2607_v30  ;;  %v2611_v58 = vld [vmem:[%s8566_s11 + $0x40] sm:$0xff]  ;;  %v7136_v14 = vcombine.high %v2604_v34, %v2608_v38  ;;  %v7135_v6 = vcombine.low %v2604_v34, %v2608_v38  ;;  %v2612_v49 = vld [vmem:[%s8566_s11 + $0x48] sm:$0xff] }
 0x3ae   : > { %v2615_v43 = vld [vmem:[%s8566_s11 + $0x60] sm:$0xff]  ;;  %v2616_v29 = vld [vmem:[%s8566_s11 + $0x68] sm:$0xff]  ;;  %v2554_v50 = vunpack.c.0.s8 %v2553_v17  ;;  %v10236_v51 = vshrl.u32 %v2555_v41, 7 }
 0x3af   : > { %v7142_v48 = vcombine.high %v2611_v58, %v2615_v43  ;;  %v2619_v46 = vld [vmem:[%s8566_s11 + $0x80] sm:$0xff]  ;;  %5675 = vmatprep.subr.bf16.mxu0 %v7134_v31  ;;  %v7144_v47 = vcombine.high %v2612_v49, %v2616_v29  ;;  %v2620_v4 = vld [vmem:[%s8566_s11 + $0x88] sm:$0xff]  ;;  %5839 = vmatprep.subr.bf16.mxu1 %v7136_v14  ;;  %v7141_v11 = vcombine.low %v2611_v58, %v2615_v43 }
 0x3b0   : > { %v2623_v27 = vld [vmem:[%s8566_s11 + $0xa0] sm:$0xff]  ;;  %v2624_v55 = vld [vmem:[%s8566_s11 + $0xa8] sm:$0xff]  ;;  %5676 = vmatpush1.bf16.msra.mxu0 %v7133_v57  ;;  %5840 = vmatpush1.bf16.msra.mxu1 %v7135_v6  ;;  %v7143_v2 = vcombine.low %v2612_v49, %v2616_v29  ;;  %v10244_v59 = vsub.s32 %v2554_v50, %v10236_v51 }
 0x3b1   : > { %5677 = vmatprep.subr.bf16.mxu0 %v7142_v48  ;;  %v7150_v61 = vcombine.high %v2619_v46, %v2623_v27  ;;  %5841 = vmatprep.subr.bf16.mxu1 %v7144_v47  ;;  %v7152_v18 = vcombine.high %v2620_v4, %v2624_v55  ;;  %v2627_v8 = vld [vmem:[%s8566_s11 + $0xc0] sm:$0xff]  ;;  %v2628_v10 = vld [vmem:[%s8566_s11 + $0xc8] sm:$0xff]  ;;  %v7149_v54 = vcombine.low %v2619_v46, %v2623_v27 }
 0x3b2   : > { %v2631_v63 = vld [vmem:[%s8566_s11 + $0xe0] sm:$0xff]  ;;  %v2632_v22 = vld [vmem:[%s8566_s11 + $0xe8] sm:$0xff]  ;;  %v7151_v9 = vcombine.low %v2620_v4, %v2624_v55 }
 0x3b3   : > { %v7158_v56 = vcombine.high %v2627_v8, %v2631_v63  ;;  %v7160_v33 = vcombine.high %v2628_v10, %v2632_v22  ;;  %v2635_v26 = vld [vmem:[%s8566_s11 + $0x100] sm:$0xff]  ;;  %v2636_v12 = vld [vmem:[%s8566_s11 + $0x108] sm:$0xff]  ;;  %v7157_v60 = vcombine.low %v2627_v8, %v2631_v63  ;;  %v7159_v20 = vcombine.low %v2628_v10, %v2632_v22 }
 0x3b4   : > { %5678 = vmatpush1.bf16.msra.mxu0 %v7141_v11  ;;  %5842 = vmatpush1.bf16.msra.mxu1 %v7143_v2  ;;  %v2639_v16 = vld [vmem:[%s8566_s11 + $0x120] sm:$0xff]  ;;  %v2640_v42 = vld [vmem:[%s8566_s11 + $0x128] sm:$0xff] }
 0x3b5   : > { %5679 = vmatprep.subr.bf16.mxu0 %v7150_v61  ;;  %5843 = vmatprep.subr.bf16.mxu1 %v7152_v18  ;;  %v7166_v36 = vcombine.high %v2635_v26, %v2639_v16  ;;  %v7168_v35 = vcombine.high %v2636_v12, %v2640_v42  ;;  %v2643_v24 = vld [vmem:[%s8566_s11 + $0x140] sm:$0xff]  ;;  %v2644_v3 = vld [vmem:[%s8566_s11 + $0x148] sm:$0xff]  ;;  %v7165_v37 = vcombine.low %v2635_v26, %v2639_v16 }
 0x3b6   : > { %v2647_v44 = vld [vmem:[%s8566_s11 + $0x160] sm:$0xff]  ;;  %v2648_v7 = vld [vmem:[%s8566_s11 + $0x168] sm:$0xff]  ;;  %v7167_v15 = vcombine.low %v2636_v12, %v2640_v42 }
 0x3b7   : > { %v7174_v40 = vcombine.high %v2643_v24, %v2647_v44  ;;  %v7176_v32 = vcombine.high %v2644_v3, %v2648_v7  ;;  %v2651_v23 = vld [vmem:[%s8566_s11 + $0x180] sm:$0xff]  ;;  %v2652_v45 = vld [vmem:[%s8566_s11 + $0x188] sm:$0xff]  ;;  %v7173_v0 = vcombine.low %v2643_v24, %v2647_v44  ;;  %v7175_v21 = vcombine.low %v2644_v3, %v2648_v7 }
 0x3b8   : > { %5680 = vmatpush1.bf16.msra.mxu0 %v7149_v54  ;;  %5844 = vmatpush1.bf16.msra.mxu1 %v7151_v9  ;;  %v2655_v53 = vld [vmem:[%s8566_s11 + $0x1a0] sm:$0xff]  ;;  %v2656_v19 = vld [vmem:[%s8566_s11 + $0x1a8] sm:$0xff] }
 0x3b9   : > { %5681 = vmatprep.subr.bf16.mxu0 %v7158_v56  ;;  %5845 = vmatprep.subr.bf16.mxu1 %v7160_v33  ;;  %v7182_v52 = vcombine.high %v2651_v23, %v2655_v53  ;;  %v10251_v5 = vld [vmem:[%s10248_s21] sm:$0xff]  ;;  %v7184_v62 = vcombine.high %v2652_v45, %v2656_v19  ;;  %v2660_v39 = vld [vmem:[%s8566_s11 + $0x1c8] sm:$0xff]  ;;  %v7181_v34 = vcombine.low %v2651_v23, %v2655_v53 }
 0x3ba   : > { %v2659_v1 = vld [vmem:[%s8566_s11 + $0x1c0] sm:$0xff]  ;;  %v10257_v25 = vrot.slane %v10251_v5, %v10244_v59  ;;  %v2664_v30 = vld [vmem:[%s8566_s11 + $0x1e8] sm:$0xff]  ;;  %v7183_v38 = vcombine.low %v2652_v45, %v2656_v19 }
 0x3bb   : > { %v2663_v28 = vld [vmem:[%s8566_s11 + $0x1e0] sm:$0xff]  ;;  %v7192_v58 = vcombine.high %v2660_v39, %v2664_v30  ;;  %v2668_v48 = vld [vmem:[%s8566_s11 + $0x208] sm:$0xff]  ;;  %v7191_v46 = vcombine.low %v2660_v39, %v2664_v30 }
 0x3bc   : > { %5682 = vmatpush1.bf16.msra.mxu0 %v7157_v60  ;;  %5846 = vmatpush1.bf16.msra.mxu1 %v7159_v20  ;;  %v2566_v31 = vcombine.high %v10257_v25, %v10257_v25  ;;  %v7190_v57 = vcombine.high %v2659_v1, %v2663_v28  ;;  %v2667_v43 = vld [vmem:[%s8566_s11 + $0x200] sm:$0xff]  ;;  %v2672_v49 = vld [vmem:[%s8566_s11 + $0x228] sm:$0xff]  ;;  %v7189_v29 = vcombine.low %v2659_v1, %v2663_v28 }
 0x3bd   : > { %5683 = vmatprep.subr.bf16.mxu0 %v7166_v36  ;;  %5847 = vmatprep.subr.bf16.mxu1 %v7168_v35  ;;  %v2671_v14 = vld [vmem:[%s8566_s11 + $0x220] sm:$0xff]  ;;  %v7200_v27 = vcombine.high %v2668_v48, %v2672_v49  ;;  %v2676_v11 = vld [vmem:[%s8566_s11 + $0x248] sm:$0xff]  ;;  %v7199_v18 = vcombine.low %v2668_v48, %v2672_v49 }
 0x3be   : > { %v10265_v6 = vpack.c.bf16 %v2566_v31, %v2566_v31  ;;  %v7198_v47 = vcombine.high %v2667_v43, %v2671_v14  ;;  %v2675_v4 = vld [vmem:[%s8566_s11 + $0x240] sm:$0xff]  ;;  %v2680_v2 = vld [vmem:[%s8566_s11 + $0x268] sm:$0xff]  ;;  %v7197_v61 = vcombine.low %v2667_v43, %v2671_v14  ;;  %v2551_v43 = vcombine.high %v10251_v5, %v10251_v5 }
 0x3bf   : > { %v2679_v55 = vld [vmem:[%s8566_s11 + $0x260] sm:$0xff]  ;;  %v7208_v63 = vcombine.high %v2676_v11, %v2680_v2  ;;  %v2684_v54 = vld [vmem:[%s8566_s11 + $0x288] sm:$0xff]  ;;  %v7207_v33 = vcombine.low %v2676_v11, %v2680_v2 }
 0x3c0   : > { %5684 = vmatpush1.bf16.msra.mxu0 %v7165_v37  ;;  %5848 = vmatpush1.bf16.msra.mxu1 %v7167_v15  ;;  %v7206_v8 = vcombine.high %v2675_v4, %v2679_v55  ;;  %v2683_v10 = vld [vmem:[%s8566_s11 + $0x280] sm:$0xff]  ;;  %v2688_v9 = vld [vmem:[%s8566_s11 + $0x2a8] sm:$0xff]  ;;  %v7205_v56 = vcombine.low %v2675_v4, %v2679_v55  ;;  %v10304_v55 = vrot.slane %v2551_v43, %v10244_v59 }
 0x3c1   : > { %5685 = vmatprep.subr.bf16.mxu0 %v7174_v40  ;;  %5849 = vmatprep.subr.bf16.mxu1 %v7176_v32  ;;  %v2687_v22 = vld [vmem:[%s8566_s11 + $0x2a0] sm:$0xff]  ;;  %v7216_v16 = vcombine.high %v2684_v54, %v2688_v9  ;;  %v2692_v12 = vld [vmem:[%s8566_s11 + $0x2c8] sm:$0xff]  ;;  %v7215_v20 = vcombine.low %v2684_v54, %v2688_v9  ;;  %v10314_v54 = vpack.c.bf16 %v10257_v25, %v10257_v25 }
 0x3c2   : > { %5707 = vmatprep.mubr.bf16.mxu0 %v10265_v6  ;;  %5871 = vmatprep.mubr.bf16.mxu1 %v10265_v6  ;;  %v7214_v26 = vcombine.high %v2683_v10, %v2687_v22  ;;  %v2691_v13 = vld [vmem:[%s8566_s11 + $0x2c0] sm:$0xff]  ;;  %v2696_v42 = vld [vmem:[%s8566_s11 + $0x2e8] sm:$0xff]  ;;  %v7213_v60 = vcombine.low %v2683_v10, %v2687_v22  ;;  %v2567_v22 = vcombine.high %v10304_v55, %v10304_v55 }
 0x3c3   : > { %v2695_v17 = vld [vmem:[%s8566_s11 + $0x2e0] sm:$0xff]  ;;  %v7224_v35 = vcombine.high %v2692_v12, %v2696_v42  ;;  %v2700_v50 = vld [vmem:[%s8566_s11 + $0x308] sm:$0xff]  ;;  %v7223_v37 = vcombine.low %v2692_v12, %v2696_v42 }
 0x3c4   : > { %5686 = vmatpush1.bf16.msra.mxu0 %v7173_v0  ;;  %5850 = vmatpush1.bf16.msra.mxu1 %v7175_v21  ;;  %v7222_v36 = vcombine.high %v2691_v13, %v2695_v17  ;;  %v2699_v24 = vld [vmem:[%s8566_s11 + $0x300] sm:$0xff]  ;;  %v2704_v3 = vld [vmem:[%s8566_s11 + $0x328] sm:$0xff]  ;;  %v7221_v7 = vcombine.low %v2691_v13, %v2695_v17  ;;  %v10320_v42 = vpack.c.bf16 %v2567_v22, %v2567_v22 }
 0x3c5   : > { %5687 = vmatprep.subr.bf16.mxu0 %v7182_v52  ;;  %5851 = vmatprep.subr.bf16.mxu1 %v7184_v62  ;;  %v2703_v44 = vld [vmem:[%s8566_s11 + $0x320] sm:$0xff]  ;;  %v7232_v40 = vcombine.high %v2700_v50, %v2704_v3  ;;  %v2708_v53 = vld [vmem:[%s8566_s11 + $0x348] sm:$0xff]  ;;  %v7231_v0 = vcombine.low %v2700_v50, %v2704_v3 }
 0x3c6   : > { %v7230_v15 = vcombine.high %v2699_v24, %v2703_v44  ;;  %v2707_v32 = vld [vmem:[%s8566_s11 + $0x340] sm:$0xff]  ;;  %v2712_v45 = vld [vmem:[%s8566_s11 + $0x368] sm:$0xff]  ;;  %v7229_v19 = vcombine.low %v2699_v24, %v2703_v44 }
 0x3c7   : > { %v2711_v23 = vld [vmem:[%s8566_s11 + $0x360] sm:$0xff]  ;;  %v7240_v52 = vcombine.high %v2708_v53, %v2712_v45  ;;  %v2716_v28 = vld [vmem:[%s8566_s11 + $0x388] sm:$0xff] }
 0x3c8   : > { %5688 = vmatpush1.bf16.msra.mxu0 %v7181_v34  ;;  %5852 = vmatpush1.bf16.msra.mxu1 %v7183_v38  ;;  %v7238_v21 = vcombine.high %v2707_v32, %v2711_v23  ;;  %v2715_v62 = vld [vmem:[%s8566_s11 + $0x380] sm:$0xff]  ;;  %v2720_v39 = vld [vmem:[%s8566_s11 + $0x3a8] sm:$0xff]  ;;  %v7237_v30 = vcombine.low %v2707_v32, %v2711_v23  ;;  %v7239_v34 = vcombine.low %v2708_v53, %v2712_v45 }
 0x3c9   : > { %5689 = vmatprep.subr.bf16.mxu0 %v7190_v57  ;;  %5853 = vmatprep.subr.bf16.mxu1 %v7192_v58  ;;  %v2719_v1 = vld [vmem:[%s8566_s11 + $0x3a0] sm:$0xff]  ;;  %v7248_v38 = vcombine.high %v2716_v28, %v2720_v39  ;;  %v2724_v14 = vld [vmem:[%s8566_s11 + $0x3c8] sm:$0xff] }
 0x3ca   : > { %v7246_v31 = vcombine.high %v2715_v62, %v2719_v1  ;;  %v2723_v57 = vld [vmem:[%s8566_s11 + $0x3c0] sm:$0xff]  ;;  %v2728_v48 = vld [vmem:[%s8566_s11 + $0x3e8] sm:$0xff]  ;;  %v7245_v49 = vcombine.low %v2715_v62, %v2719_v1 }
 0x3cb   : > { %v2727_v58 = vld [vmem:[%s8566_s11 + $0x3e0] sm:$0xff]  ;;  %v2732_v5 = vld [vmem:[%s8566_s11 + $0x408] sm:$0xff] }
 0x3cc   : > { %5690 = vmatpush1.bf16.msra.mxu0 %v7189_v29  ;;  %5854 = vmatpush1.bf16.msra.mxu1 %v7191_v46  ;;  %v7247_v29 = vcombine.low %v2716_v28, %v2720_v39  ;;  %v7254_v46 = vcombine.high %v2723_v57, %v2727_v58  ;;  %v2735_v4 = vld [vmem:[%s8566_s11 + $0x420] sm:$0xff]  ;;  %v2736_v11 = vld [vmem:[%s8566_s11 + $0x428] sm:$0xff]  ;;  %v7253_v2 = vcombine.low %v2723_v57, %v2727_v58 }
 0x3cd   : > { %5691 = vmatprep.subr.bf16.mxu0 %v7198_v47  ;;  %5855 = vmatprep.subr.bf16.mxu1 %v7200_v27  ;;  %v7256_v47 = vcombine.high %v2724_v14, %v2728_v48  ;;  %v2731_v27 = vld [vmem:[%s8566_s11 + $0x400] sm:$0xff]  ;;  %v2740_v9 = vld [vmem:[%s8566_s11 + $0x448] sm:$0xff] }
 0x3ce   : > { %v2743_v10 = vld [vmem:[%s8566_s11 + $0x460] sm:$0xff]  ;;  %v2748_v25 = vld [vmem:[%s8566_s11 + $0x488] sm:$0xff] }
 0x3cf   : > { %v2747_v17 = vld [vmem:[%s8566_s11 + $0x480] sm:$0xff]  ;;  %v2756_v3 = vld [vmem:[%s8566_s11 + $0x4c8] sm:$0xff] }
 0x3d0   : > { %5692 = vmatpush1.bf16.msra.mxu0 %v7197_v61  ;;  %5856 = vmatpush1.bf16.msra.mxu1 %v7199_v18  ;;  %v7255_v61 = vcombine.low %v2724_v14, %v2728_v48  ;;  %v7262_v18 = vcombine.high %v2731_v27, %v2735_v4  ;;  %v2751_v12 = vld [vmem:[%s8566_s11 + $0x4a0] sm:$0xff]  ;;  %v2764_v45 = vld [vmem:[%s8566_s11 + $0x508] sm:$0xff] }
 0x3d1   : > { %5693 = vmatprep.subr.bf16.mxu0 %v7206_v8  ;;  %5857 = vmatprep.subr.bf16.mxu1 %v7208_v63  ;;  %v7264_v8 = vcombine.high %v2732_v5, %v2736_v11  ;;  %v2739_v63 = vld [vmem:[%s8566_s11 + $0x440] sm:$0xff]  ;;  %v2772_v39 = vld [vmem:[%s8566_s11 + $0x548] sm:$0xff] }
 0x3d2   : > { %v2755_v44 = vld [vmem:[%s8566_s11 + $0x4c0] sm:$0xff]  ;;  %v2780_v14 = vld [vmem:[%s8566_s11 + $0x588] sm:$0xff] }
 0x3d3   : > { %v2759_v50 = vld [vmem:[%s8566_s11 + $0x4e0] sm:$0xff]  ;;  %v2784_v48 = vld [vmem:[%s8566_s11 + $0x5a8] sm:$0xff] }
 0x3d4   : > { %5694 = vmatpush1.bf16.msra.mxu0 %v7205_v56  ;;  %5858 = vmatpush1.bf16.msra.mxu1 %v7207_v33  ;;  %v2744_v56 = vld [vmem:[%s8566_s11 + $0x468] sm:$0xff]  ;;  %v7261_v33 = vcombine.low %v2731_v27, %v2735_v4  ;;  %v2763_v23 = vld [vmem:[%s8566_s11 + $0x500] sm:$0xff] }
 0x3d5   : > { %5695 = vmatprep.subr.bf16.mxu0 %v7214_v26  ;;  %5859 = vmatprep.subr.bf16.mxu1 %v7216_v16  ;;  %v7263_v26 = vcombine.low %v2732_v5, %v2736_v11  ;;  %v7270_v16 = vcombine.high %v2739_v63, %v2743_v10  ;;  %v7272_v13 = vcombine.high %v2740_v9, %v2744_v56  ;;  %v2767_v53 = vld [vmem:[%s8566_s11 + $0x520] sm:$0xff]  ;;  %v2788_v5 = vld [vmem:[%s8566_s11 + $0x5c8] sm:$0xff] }
 0x3d6   : > { %v2771_v1 = vld [vmem:[%s8566_s11 + $0x540] sm:$0xff]  ;;  %v2792_v11 = vld [vmem:[%s8566_s11 + $0x5e8] sm:$0xff] }
 0x3d7   : > { %v2775_v28 = vld [vmem:[%s8566_s11 + $0x560] sm:$0xff]  ;;  %v2796_v22 = vld [vmem:[%s8566_s11 + $0x608] sm:$0xff] }
 0x3d8   : > { %5696 = vmatpush1.bf16.msra.mxu0 %v7213_v60  ;;  %5860 = vmatpush1.bf16.msra.mxu1 %v7215_v20  ;;  %v2752_v60 = vld [vmem:[%s8566_s11 + $0x4a8] sm:$0xff]  ;;  %v7269_v20 = vcombine.low %v2739_v63, %v2743_v10  ;;  %v2779_v58 = vld [vmem:[%s8566_s11 + $0x580] sm:$0xff] }
 0x3d9   : > { %5697 = vmatprep.subr.bf16.mxu0 %v7222_v36  ;;  %5861 = vmatprep.subr.bf16.mxu1 %v7224_v35  ;;  %v7271_v36 = vcombine.low %v2740_v9, %v2744_v56  ;;  %v7278_v35 = vcombine.high %v2747_v17, %v2751_v12  ;;  %v7280_v24 = vcombine.high %v2748_v25, %v2752_v60  ;;  %v2783_v43 = vld [vmem:[%s8566_s11 + $0x5a0] sm:$0xff]  ;;  %v2800_v9 = vld [vmem:[%s8566_s11 + $0x628] sm:$0xff] }
 0x3da   : > { %v2787_v27 = vld [vmem:[%s8566_s11 + $0x5c0] sm:$0xff] }
 0x3db   : > { %v2791_v4 = vld [vmem:[%s8566_s11 + $0x5e0] sm:$0xff] }
 0x3dc   : > { %5698 = vmatpush1.bf16.msra.mxu0 %v7221_v7  ;;  %5862 = vmatpush1.bf16.msra.mxu1 %v7223_v37  ;;  %v2760_v7 = vld [vmem:[%s8566_s11 + $0x4e8] sm:$0xff]  ;;  %v7277_v37 = vcombine.low %v2747_v17, %v2751_v12  ;;  %v2795_v63 = vld [vmem:[%s8566_s11 + $0x600] sm:$0xff]  ;;  %v7317_v56 = vcombine.low %v2787_v27, %v2791_v4 }
 0x3dd   : > { %5699 = vmatprep.subr.bf16.mxu0 %v7230_v15  ;;  %5863 = vmatprep.subr.bf16.mxu1 %v7232_v40  ;;  %v7279_v15 = vcombine.low %v2748_v25, %v2752_v60  ;;  %v7286_v40 = vcombine.high %v2755_v44, %v2759_v50  ;;  %v7288_v32 = vcombine.high %v2756_v3, %v2760_v7  ;;  %v2799_v10 = vld [vmem:[%s8566_s11 + $0x620] sm:$0xff]  ;;  %v2804_v12 = vld [vmem:[%s8566_s11 + $0x648] sm:$0xff] }
 0x3de   : > { %v2807_v17 = vld [vmem:[%s8566_s11 + $0x660] sm:$0xff]  ;;  %v2808_v25 = vld [vmem:[%s8566_s11 + $0x668] sm:$0xff]  ;;  %v7325_v60 = vcombine.low %v2795_v63, %v2799_v10 }
 0x3e0   : > { %5700 = vmatpush1.bf16.msra.mxu0 %v7229_v19  ;;  %5864 = vmatpush1.bf16.msra.mxu1 %v7231_v0  ;;  %v2768_v19 = vld [vmem:[%s8566_s11 + $0x528] sm:$0xff]  ;;  %v7285_v0 = vcombine.low %v2755_v44, %v2759_v50  ;;  %v2815_v44 = vld [vmem:[%s8566_s11 + $0x6a0] sm:$0xff] }
 0x3e1   : > { %5701 = vmatprep.subr.bf16.mxu0 %v7238_v21  ;;  %5865 = vmatprep.subr.bf16.mxu1 %v7240_v52  ;;  %v7287_v21 = vcombine.low %v2756_v3, %v2760_v7  ;;  %v7294_v52 = vcombine.high %v2763_v23, %v2767_v53  ;;  %v7296_v62 = vcombine.high %v2764_v45, %v2768_v19  ;;  %v2812_v50 = vld [vmem:[%s8566_s11 + $0x688] sm:$0xff] }
 0x3e2   : > { %v2816_v3 = vld [vmem:[%s8566_s11 + $0x6a8] sm:$0xff] }
 0x3e4   : > { %5702 = vmatpush1.bf16.msra.mxu0 %v7237_v30  ;;  %5866 = vmatpush1.bf16.msra.mxu1 %v7239_v34  ;;  %v2776_v30 = vld [vmem:[%s8566_s11 + $0x568] sm:$0xff]  ;;  %v7293_v34 = vcombine.low %v2763_v23, %v2767_v53  ;;  %v2823_v23 = vld [vmem:[%s8566_s11 + $0x6e0] sm:$0xff] }
 0x3e5   : > { %5703 = vmatprep.subr.bf16.mxu0 %v7246_v31  ;;  %5867 = vmatprep.subr.bf16.mxu1 %v7248_v38  ;;  %v7295_v31 = vcombine.low %v2764_v45, %v2768_v19  ;;  %v7302_v38 = vcombine.high %v2771_v1, %v2775_v28  ;;  %v7304_v57 = vcombine.high %v2772_v39, %v2776_v30  ;;  %v2820_v53 = vld [vmem:[%s8566_s11 + $0x6c8] sm:$0xff] }
 0x3e6   : > { %v2824_v45 = vld [vmem:[%s8566_s11 + $0x6e8] sm:$0xff] }
 0x3e8   : > { %5704 = vmatpush1.bf16.msra.mxu0 %v7245_v49  ;;  %5868 = vmatpush1.bf16.msra.mxu1 %v7247_v29  ;;  %v7301_v49 = vcombine.low %v2771_v1, %v2775_v28  ;;  %v7303_v29 = vcombine.low %v2772_v39, %v2776_v30  ;;  %v2831_v1 = vld [vmem:[%s8566_s11 + $0x720] sm:$0xff]  ;;  %v2828_v28 = vld [vmem:[%s8566_s11 + $0x708] sm:$0xff] }
 0x3e9   : > { %5705 = vmatprep.subr.bf16.mxu0 %v7254_v46  ;;  %5869 = vmatprep.subr.bf16.mxu1 %v7256_v47  ;;  %v7310_v46 = vcombine.high %v2779_v58, %v2783_v43  ;;  %v7312_v47 = vcombine.high %v2780_v14, %v2784_v48  ;;  %v2832_v39 = vld [vmem:[%s8566_s11 + $0x728] sm:$0xff] }
 0x3ec   : > { %5706 = vmatpush1.bf16.msra.mxu0 %v7253_v2  ;;  %5870 = vmatpush1.bf16.msra.mxu1 %v7255_v61  ;;  %v7309_v2 = vcombine.low %v2779_v58, %v2783_v43  ;;  %v7311_v61 = vcombine.low %v2780_v14, %v2784_v48  ;;  %v2839_v58 = vld [vmem:[%s8566_s11 + $0x760] sm:$0xff]  ;;  %v2836_v43 = vld [vmem:[%s8566_s11 + $0x748] sm:$0xff] }
 0x3ed   : > { %5716 = vmatprep.subr.bf16.mxu0 %v7262_v18  ;;  %5880 = vmatprep.subr.bf16.mxu1 %v7264_v8  ;;  %v7318_v18 = vcombine.high %v2787_v27, %v2791_v4  ;;  %v7320_v8 = vcombine.high %v2788_v5, %v2792_v11  ;;  %v2840_v14 = vld [vmem:[%s8566_s11 + $0x768] sm:$0xff]  ;;  %v2847_v27 = vld [vmem:[%s8566_s11 + $0x7a0] sm:$0xff] }
 0x3ee   : > { %v2844_v4 = vld [vmem:[%s8566_s11 + $0x788] sm:$0xff] }
 0x3ef   : > { %5708 = vmatmul.mubr.bf16.vlgmr.msra.gmra.mrb[0].mxu0 %v10314_v54  ;;  %5872 = vmatmul.mubr.bf16.vlgmr.msra.gmra.mrb[0].mxu1 %v10314_v54 }
 0x3f0   : > { %5717 = vmatpush1.bf16.msra.mxu0 %v7261_v33  ;;  %5881 = vmatpush1.bf16.msra.mxu1 %v7263_v26  ;;  %v7319_v33 = vcombine.low %v2788_v5, %v2792_v11  ;;  %v7326_v26 = vcombine.high %v2795_v63, %v2799_v10  ;;  %v2848_v5 = vld [vmem:[%s8566_s11 + $0x7a8] sm:$0xff]  ;;  %v2855_v63 = vld [vmem:[%s8566_s11 + $0x7e0] sm:$0xff] }
 0x3f1   : > { %5718 = vmatprep.subr.bf16.mxu0 %v7270_v16  ;;  %5882 = vmatprep.subr.bf16.mxu1 %v7272_v13  ;;  %v7328_v16 = vcombine.high %v2796_v22, %v2800_v9  ;;  %v2803_v13 = vld [vmem:[%s8566_s11 + $0x640] sm:$0xff]  ;;  %v2852_v10 = vld [vmem:[%s8566_s11 + $0x7c8] sm:$0xff] }
 0x3f2   : > { %5748 = vmatprep.mubr.bf16.mxu0 %v10320_v42  ;;  %5912 = vmatprep.mubr.bf16.mxu1 %v10320_v42  ;;  %v7333_v7 = vcombine.low %v2803_v13, %v2807_v17 }
 0x3f4   : > { %5719 = vmatpush1.bf16.msra.mxu0 %v7269_v20  ;;  %5883 = vmatpush1.bf16.msra.mxu1 %v7271_v36  ;;  %v7327_v20 = vcombine.low %v2796_v22, %v2800_v9  ;;  %v7334_v36 = vcombine.high %v2803_v13, %v2807_v17  ;;  %v2856_v22 = vld [vmem:[%s8566_s11 + $0x7e8] sm:$0xff]  ;;  %v2859_v13 = vld [vmem:[%s8566_s11 + $0x800] sm:$0xff] }
 0x3f5   : > { %5720 = vmatprep.subr.bf16.mxu0 %v7278_v35  ;;  %5884 = vmatprep.subr.bf16.mxu1 %v7280_v24  ;;  %v7336_v35 = vcombine.high %v2804_v12, %v2808_v25  ;;  %v2811_v24 = vld [vmem:[%s8566_s11 + $0x680] sm:$0xff]  ;;  %v10381_v9 = vld [vmem:[%s10248_s21 + $0x8] sm:$0xff] }
 0x3f6   : > { %v7341_v19 = vcombine.low %v2811_v24, %v2815_v44  ;;  %v2863_v17 = vld [vmem:[%s8566_s11 + $0x820] sm:$0xff] }
 0x3f8   : > { %5721 = vmatpush1.bf16.msra.mxu0 %v7277_v37  ;;  %5885 = vmatpush1.bf16.msra.mxu1 %v7279_v15  ;;  %v7335_v37 = vcombine.low %v2804_v12, %v2808_v25  ;;  %v7342_v15 = vcombine.high %v2811_v24, %v2815_v44  ;;  %v10387_v12 = vrot.slane %v10381_v9, %v10244_v59  ;;  %v2860_v25 = vld [vmem:[%s8566_s11 + $0x808] sm:$0xff]  ;;  %v2867_v44 = vld [vmem:[%s8566_s11 + $0x840] sm:$0xff] }
 0x3f9   : > { %5722 = vmatprep.subr.bf16.mxu0 %v7286_v40  ;;  %5886 = vmatprep.subr.bf16.mxu1 %v7288_v32  ;;  %v7344_v40 = vcombine.high %v2812_v50, %v2816_v3  ;;  %v2819_v32 = vld [vmem:[%s8566_s11 + $0x6c0] sm:$0xff] }
 0x3fa   : > { %v7349_v30 = vcombine.low %v2819_v32, %v2823_v23 }
 0x3fc   : > { %5723 = vmatpush1.bf16.msra.mxu0 %v7285_v0  ;;  %5887 = vmatpush1.bf16.msra.mxu1 %v7287_v21  ;;  %v7343_v0 = vcombine.low %v2812_v50, %v2816_v3  ;;  %v7350_v21 = vcombine.high %v2819_v32, %v2823_v23  ;;  %v2871_v50 = vld [vmem:[%s8566_s11 + $0x860] sm:$0xff]  ;;  %v2583_v3 = vcombine.high %v10387_v12, %v10387_v12 }
 0x3fd   : > { %5724 = vmatprep.subr.bf16.mxu0 %v7294_v52  ;;  %5888 = vmatprep.subr.bf16.mxu1 %v7296_v62  ;;  %v7352_v52 = vcombine.high %v2820_v53, %v2824_v45  ;;  %v2827_v62 = vld [vmem:[%s8566_s11 + $0x700] sm:$0xff]  ;;  %v7398_v23 = vcombine.high %v2867_v44, %v2871_v50 }
 0x3fe   : > { %v7357_v48 = vcombine.low %v2827_v62, %v2831_v1 }
 0x400   : > { %5725 = vmatpush1.bf16.msra.mxu0 %v7293_v34  ;;  %5889 = vmatpush1.bf16.msra.mxu1 %v7295_v31  ;;  %v7351_v34 = vcombine.low %v2820_v53, %v2824_v45  ;;  %v7358_v31 = vcombine.high %v2827_v62, %v2831_v1  ;;  %v2875_v45 = vld [vmem:[%s8566_s11 + $0x880] sm:$0xff] }
 0x401   : > { %5726 = vmatprep.subr.bf16.mxu0 %v7302_v38  ;;  %5890 = vmatprep.subr.bf16.mxu1 %v7304_v57  ;;  %v7360_v38 = vcombine.high %v2828_v28, %v2832_v39  ;;  %v2835_v57 = vld [vmem:[%s8566_s11 + $0x740] sm:$0xff] }
 0x402   : > { %v7365_v11 = vcombine.low %v2835_v57, %v2839_v58 }
 0x404   : > { %5727 = vmatpush1.bf16.msra.mxu0 %v7301_v49  ;;  %5891 = vmatpush1.bf16.msra.mxu1 %v7303_v29  ;;  %v7359_v49 = vcombine.low %v2828_v28, %v2832_v39  ;;  %v7366_v29 = vcombine.high %v2835_v57, %v2839_v58  ;;  %v2883_v39 = vld [vmem:[%s8566_s11 + $0x8c0] sm:$0xff] }
 0x405   : > { %5728 = vmatprep.subr.bf16.mxu0 %v7310_v46  ;;  %5892 = vmatprep.subr.bf16.mxu1 %v7312_v47  ;;  %v7368_v46 = vcombine.high %v2836_v43, %v2840_v14  ;;  %v2843_v47 = vld [vmem:[%s8566_s11 + $0x780] sm:$0xff] }
 0x408   : > { %5729 = vmatpush1.bf16.msra.mxu0 %v7309_v2  ;;  %5893 = vmatpush1.bf16.msra.mxu1 %v7311_v61  ;;  %v7367_v2 = vcombine.low %v2836_v43, %v2840_v14  ;;  %v7374_v61 = vcombine.high %v2843_v47, %v2847_v27  ;;  %v2891_v14 = vld [vmem:[%s8566_s11 + $0x900] sm:$0xff] }
 0x409   : > { %5730 = vmatprep.subr.bf16.mxu0 %v7318_v18  ;;  %5894 = vmatprep.subr.bf16.mxu1 %v7320_v8  ;;  %v7376_v18 = vcombine.high %v2844_v4, %v2848_v5  ;;  %v2851_v8 = vld [vmem:[%s8566_s11 + $0x7c0] sm:$0xff] }
 0x40c   : > { %5731 = vmatpush1.bf16.msra.mxu0 %v7317_v56  ;;  %5895 = vmatpush1.bf16.msra.mxu1 %v7319_v33  ;;  %v7373_v56 = vcombine.low %v2843_v47, %v2847_v27  ;;  %v7375_v33 = vcombine.low %v2844_v4, %v2848_v5  ;;  %v2899_v5 = vld [vmem:[%s8566_s11 + $0x940] sm:$0xff] }
 0x40d   : > { %5732 = vmatprep.subr.bf16.mxu0 %v7326_v26  ;;  %5896 = vmatprep.subr.bf16.mxu1 %v7328_v16  ;;  %v7382_v26 = vcombine.high %v2851_v8, %v2855_v63  ;;  %v7384_v16 = vcombine.high %v2852_v10, %v2856_v22 }
 0x410   : > { %5733 = vmatpush1.bf16.msra.mxu0 %v7325_v60  ;;  %5897 = vmatpush1.bf16.msra.mxu1 %v7327_v20  ;;  %v2864_v60 = vld [vmem:[%s8566_s11 + $0x828] sm:$0xff]  ;;  %v7381_v20 = vcombine.low %v2851_v8, %v2855_v63 }
 0x411   : > { %5734 = vmatprep.subr.bf16.mxu0 %v7334_v36  ;;  %5898 = vmatprep.subr.bf16.mxu1 %v7336_v35  ;;  %v7383_v36 = vcombine.low %v2852_v10, %v2856_v22  ;;  %v7390_v35 = vcombine.high %v2859_v13, %v2863_v17  ;;  %v7392_v24 = vcombine.high %v2860_v25, %v2864_v60  ;;  %v2907_v22 = vld [vmem:[%s8566_s11 + $0x980] sm:$0xff] }
 0x412   : > { %v7391_v32 = vcombine.low %v2860_v25, %v2864_v60  ;;  %v2915_v60 = vld [vmem:[%s8566_s11 + $0x9c0] sm:$0xff] }
 0x414   : > { %5735 = vmatpush1.bf16.msra.mxu0 %v7333_v7  ;;  %5899 = vmatpush1.bf16.msra.mxu1 %v7335_v37  ;;  %v10397_v7 = vpack.c.bf16 %v10304_v55, %v10304_v55  ;;  %v2868_v37 = vld [vmem:[%s8566_s11 + $0x848] sm:$0xff] }
 0x415   : > { %5736 = vmatprep.subr.bf16.mxu0 %v7342_v15  ;;  %5900 = vmatprep.subr.bf16.mxu1 %v7344_v40  ;;  %v2872_v15 = vld [vmem:[%s8566_s11 + $0x868] sm:$0xff]  ;;  %v7389_v40 = vcombine.low %v2859_v13, %v2863_v17 }
 0x416   : > { %v7400_v53 = vcombine.high %v2868_v37, %v2872_v15  ;;  %v2876_v55 = vld [vmem:[%s8566_s11 + $0x888] sm:$0xff]  ;;  %v7399_v62 = vcombine.low %v2868_v37, %v2872_v15  ;;  %v2923_v37 = vld [vmem:[%s8566_s11 + $0xa00] sm:$0xff] }
 0x417   : > { %v2927_v15 = vld [vmem:[%s8566_s11 + $0xa20] sm:$0xff] }
 0x418   : > { %5737 = vmatpush1.bf16.msra.mxu0 %v7341_v19  ;;  %5901 = vmatpush1.bf16.msra.mxu1 %v7343_v0  ;;  %v2879_v19 = vld [vmem:[%s8566_s11 + $0x8a0] sm:$0xff]  ;;  %v10403_v0 = vpack.c.bf16 %v2583_v3, %v2583_v3 }
 0x419   : > { %5738 = vmatprep.subr.bf16.mxu0 %v7350_v21  ;;  %5902 = vmatprep.subr.bf16.mxu1 %v7352_v52  ;;  %v2880_v21 = vld [vmem:[%s8566_s11 + $0x8a8] sm:$0xff]  ;;  %v7397_v52 = vcombine.low %v2867_v44, %v2871_v50  ;;  %v7406_v1 = vcombine.high %v2875_v45, %v2879_v19 }
 0x41a   : > { %v7408_v28 = vcombine.high %v2876_v55, %v2880_v21  ;;  %v7407_v57 = vcombine.low %v2876_v55, %v2880_v21  ;;  %v2931_v55 = vld [vmem:[%s8566_s11 + $0xa40] sm:$0xff] }
 0x41b   : > { %v2935_v21 = vld [vmem:[%s8566_s11 + $0xa60] sm:$0xff] }
 0x41c   : > { %5739 = vmatpush1.bf16.msra.mxu0 %v7349_v30  ;;  %5903 = vmatpush1.bf16.msra.mxu1 %v7351_v34  ;;  %v2887_v30 = vld [vmem:[%s8566_s11 + $0x8e0] sm:$0xff]  ;;  %v2884_v34 = vld [vmem:[%s8566_s11 + $0x8c8] sm:$0xff] }
 0x41d   : > { %5740 = vmatprep.subr.bf16.mxu0 %v7358_v31  ;;  %5904 = vmatprep.subr.bf16.mxu1 %v7360_v38  ;;  %v2888_v31 = vld [vmem:[%s8566_s11 + $0x8e8] sm:$0xff]  ;;  %v7405_v38 = vcombine.low %v2875_v45, %v2879_v19  ;;  %v7414_v58 = vcombine.high %v2883_v39, %v2887_v30  ;;  %v7454_v45 = vcombine.high %v2923_v37, %v2927_v15 }
 0x41e   : > { %v7416_v43 = vcombine.high %v2884_v34, %v2888_v31  ;;  %v7415_v47 = vcombine.low %v2884_v34, %v2888_v31  ;;  %v2939_v34 = vld [vmem:[%s8566_s11 + $0xa80] sm:$0xff] }
 0x41f   : > { %v2943_v31 = vld [vmem:[%s8566_s11 + $0xaa0] sm:$0xff] }
 0x420   : > { %5741 = vmatpush1.bf16.msra.mxu0 %v7357_v48  ;;  %5905 = vmatpush1.bf16.msra.mxu1 %v7359_v49  ;;  %v2895_v48 = vld [vmem:[%s8566_s11 + $0x920] sm:$0xff]  ;;  %v2892_v49 = vld [vmem:[%s8566_s11 + $0x908] sm:$0xff] }
 0x421   : > { %5742 = vmatprep.subr.bf16.mxu0 %v7366_v29  ;;  %5906 = vmatprep.subr.bf16.mxu1 %v7368_v46  ;;  %v2896_v29 = vld [vmem:[%s8566_s11 + $0x928] sm:$0xff]  ;;  %v7413_v46 = vcombine.low %v2883_v39, %v2887_v30  ;;  %v7422_v27 = vcombine.high %v2891_v14, %v2895_v48  ;;  %v7462_v39 = vcombine.high %v2931_v55, %v2935_v21 }
 0x422   : > { %v7424_v4 = vcombine.high %v2892_v49, %v2896_v29  ;;  %v7423_v8 = vcombine.low %v2892_v49, %v2896_v29  ;;  %v2947_v49 = vld [vmem:[%s8566_s11 + $0xac0] sm:$0xff] }
 0x423   : > { %v2951_v29 = vld [vmem:[%s8566_s11 + $0xae0] sm:$0xff] }
 0x424   : > { %5743 = vmatpush1.bf16.msra.mxu0 %v7365_v11  ;;  %5907 = vmatpush1.bf16.msra.mxu1 %v7367_v2  ;;  %v2903_v11 = vld [vmem:[%s8566_s11 + $0x960] sm:$0xff]  ;;  %v2900_v2 = vld [vmem:[%s8566_s11 + $0x948] sm:$0xff] }
 0x425   : > { %5744 = vmatprep.subr.bf16.mxu0 %v7374_v61  ;;  %5908 = vmatprep.subr.bf16.mxu1 %v7376_v18  ;;  %v2904_v61 = vld [vmem:[%s8566_s11 + $0x968] sm:$0xff]  ;;  %v7421_v18 = vcombine.low %v2891_v14, %v2895_v48  ;;  %v7430_v63 = vcombine.high %v2899_v5, %v2903_v11  ;;  %v7470_v14 = vcombine.high %v2939_v34, %v2943_v31 }
 0x426   : > { %v7432_v10 = vcombine.high %v2900_v2, %v2904_v61  ;;  %v7431_v13 = vcombine.low %v2900_v2, %v2904_v61  ;;  %v2955_v2 = vld [vmem:[%s8566_s11 + $0xb00] sm:$0xff] }
 0x427   : > { %v2959_v61 = vld [vmem:[%s8566_s11 + $0xb20] sm:$0xff] }
 0x428   : > { %5745 = vmatpush1.bf16.msra.mxu0 %v7373_v56  ;;  %5909 = vmatpush1.bf16.msra.mxu1 %v7375_v33  ;;  %v2911_v56 = vld [vmem:[%s8566_s11 + $0x9a0] sm:$0xff]  ;;  %v2908_v33 = vld [vmem:[%s8566_s11 + $0x988] sm:$0xff] }
 0x429   : > { %5746 = vmatprep.subr.bf16.mxu0 %v7382_v26  ;;  %5910 = vmatprep.subr.bf16.mxu1 %v7384_v16  ;;  %v2912_v26 = vld [vmem:[%s8566_s11 + $0x9a8] sm:$0xff]  ;;  %v7429_v16 = vcombine.low %v2899_v5, %v2903_v11  ;;  %v7438_v17 = vcombine.high %v2907_v22, %v2911_v56  ;;  %v7478_v5 = vcombine.high %v2947_v49, %v2951_v29 }
 0x42a   : > { %v7440_v25 = vcombine.high %v2908_v33, %v2912_v26  ;;  %v7439_v44 = vcombine.low %v2908_v33, %v2912_v26  ;;  %v2963_v33 = vld [vmem:[%s8566_s11 + $0xb40] sm:$0xff] }
 0x42b   : > { %v2967_v26 = vld [vmem:[%s8566_s11 + $0xb60] sm:$0xff] }
 0x42c   : > { %5747 = vmatpush1.bf16.msra.mxu0 %v7381_v20  ;;  %5911 = vmatpush1.bf16.msra.mxu1 %v7383_v36  ;;  %v2919_v20 = vld [vmem:[%s8566_s11 + $0x9e0] sm:$0xff]  ;;  %v2916_v36 = vld [vmem:[%s8566_s11 + $0x9c8] sm:$0xff] }
 0x42d   : > { %5757 = vmatprep.subr.bf16.mxu0 %v7390_v35  ;;  %5921 = vmatprep.subr.bf16.mxu1 %v7392_v24  ;;  %v2920_v35 = vld [vmem:[%s8566_s11 + $0x9e8] sm:$0xff]  ;;  %v7437_v24 = vcombine.low %v2907_v22, %v2911_v56  ;;  %v7446_v50 = vcombine.high %v2915_v60, %v2919_v20  ;;  %v7486_v22 = vcombine.high %v2955_v2, %v2959_v61 }
 0x42e   : > { %v7448_v3 = vcombine.high %v2916_v36, %v2920_v35 }
 0x42f   : > { %5749 = vmatmul.mubr.bf16.vlgmr.msra.gmra.mrb[0].mxu0 %v10397_v7  ;;  %5913 = vmatmul.mubr.bf16.vlgmr.msra.gmra.mrb[0].mxu1 %v10397_v7 }
 0x430   : > { %5758 = vmatpush1.bf16.msra.mxu0 %v7389_v40  ;;  %5922 = vmatpush1.bf16.msra.mxu1 %v7391_v32  ;;  %v2924_v40 = vld [vmem:[%s8566_s11 + $0xa08] sm:$0xff] }
 0x431   : > { %5759 = vmatprep.subr.bf16.mxu0 %v7398_v23  ;;  %5923 = vmatprep.subr.bf16.mxu1 %v7400_v53  ;;  %v2928_v32 = vld [vmem:[%s8566_s11 + $0xa28] sm:$0xff]  ;;  %v7445_v23 = vcombine.low %v2915_v60, %v2919_v20  ;;  %v7447_v53 = vcombine.low %v2916_v36, %v2920_v35  ;;  %v7494_v60 = vcombine.high %v2963_v33, %v2967_v26  ;;  %v2971_v36 = vld [vmem:[%s8566_s11 + $0xb80] sm:$0xff] }
 0x432   : > { %5789 = vmatprep.mubr.bf16.mxu0 %v10403_v0  ;;  %5953 = vmatprep.mubr.bf16.mxu1 %v10403_v0  ;;  %v7456_v19 = vcombine.high %v2924_v40, %v2928_v32  ;;  %v2975_v35 = vld [vmem:[%s8566_s11 + $0xba0] sm:$0xff] }
 0x434   : > { %5760 = vmatpush1.bf16.msra.mxu0 %v7397_v52  ;;  %5924 = vmatpush1.bf16.msra.mxu1 %v7399_v62  ;;  %v2932_v52 = vld [vmem:[%s8566_s11 + $0xa48] sm:$0xff] }
 0x435   : > { %5761 = vmatprep.subr.bf16.mxu0 %v7406_v1  ;;  %5925 = vmatprep.subr.bf16.mxu1 %v7408_v28  ;;  %v2936_v62 = vld [vmem:[%s8566_s11 + $0xa68] sm:$0xff]  ;;  %v7453_v1 = vcombine.low %v2923_v37, %v2927_v15  ;;  %v7455_v28 = vcombine.low %v2924_v40, %v2928_v32  ;;  %v7502_v37 = vcombine.high %v2971_v36, %v2975_v35  ;;  %v2979_v40 = vld [vmem:[%s8566_s11 + $0xbc0] sm:$0xff] }
 0x436   : > { %v7464_v30 = vcombine.high %v2932_v52, %v2936_v62  ;;  %v2983_v32 = vld [vmem:[%s8566_s11 + $0xbe0] sm:$0xff] }
 0x438   : > { %5762 = vmatpush1.bf16.msra.mxu0 %v7405_v38  ;;  %5926 = vmatpush1.bf16.msra.mxu1 %v7407_v57  ;;  %v2940_v38 = vld [vmem:[%s8566_s11 + $0xa88] sm:$0xff] }
 0x439   : > { %5763 = vmatprep.subr.bf16.mxu0 %v7414_v58  ;;  %5927 = vmatprep.subr.bf16.mxu1 %v7416_v43  ;;  %v2944_v57 = vld [vmem:[%s8566_s11 + $0xaa8] sm:$0xff]  ;;  %v7461_v58 = vcombine.low %v2931_v55, %v2935_v21  ;;  %v7463_v43 = vcombine.low %v2932_v52, %v2936_v62  ;;  %v7510_v21 = vcombine.high %v2979_v40, %v2983_v32  ;;  %v2987_v62 = vld [vmem:[%s8566_s11 + $0xc00] sm:$0xff] }
 0x43a   : > { %v7472_v48 = vcombine.high %v2940_v38, %v2944_v57 }
 0x43c   : > { %5764 = vmatpush1.bf16.msra.mxu0 %v7413_v46  ;;  %5928 = vmatpush1.bf16.msra.mxu1 %v7415_v47  ;;  %v2948_v46 = vld [vmem:[%s8566_s11 + $0xac8] sm:$0xff] }
 0x43d   : > { %5765 = vmatprep.subr.bf16.mxu0 %v7422_v27  ;;  %5929 = vmatprep.subr.bf16.mxu1 %v7424_v4  ;;  %v2952_v47 = vld [vmem:[%s8566_s11 + $0xae8] sm:$0xff]  ;;  %v7469_v27 = vcombine.low %v2939_v34, %v2943_v31  ;;  %v7471_v4 = vcombine.low %v2940_v38, %v2944_v57  ;;  %v2995_v57 = vld [vmem:[%s8566_s11 + $0xc40] sm:$0xff] }
 0x43e   : > { %v7480_v11 = vcombine.high %v2948_v46, %v2952_v47 }
 0x440   : > { %5766 = vmatpush1.bf16.msra.mxu0 %v7421_v18  ;;  %5930 = vmatpush1.bf16.msra.mxu1 %v7423_v8  ;;  %v2956_v18 = vld [vmem:[%s8566_s11 + $0xb08] sm:$0xff] }
 0x441   : > { %5767 = vmatprep.subr.bf16.mxu0 %v7430_v63  ;;  %5931 = vmatprep.subr.bf16.mxu1 %v7432_v10  ;;  %v2960_v8 = vld [vmem:[%s8566_s11 + $0xb28] sm:$0xff]  ;;  %v7477_v63 = vcombine.low %v2947_v49, %v2951_v29  ;;  %v7479_v10 = vcombine.low %v2948_v46, %v2952_v47 }
 0x442   : > { %v7488_v56 = vcombine.high %v2956_v18, %v2960_v8  ;;  %v3000_v49 = vld [vmem:[%s8566_s11 + $0xc68] sm:$0xff] }
 0x444   : > { %5768 = vmatpush1.bf16.msra.mxu0 %v7429_v16  ;;  %5932 = vmatpush1.bf16.msra.mxu1 %v7431_v13  ;;  %v2964_v16 = vld [vmem:[%s8566_s11 + $0xb48] sm:$0xff] }
 0x445   : > { %5769 = vmatprep.subr.bf16.mxu0 %v7438_v17  ;;  %5933 = vmatprep.subr.bf16.mxu1 %v7440_v25  ;;  %v2968_v13 = vld [vmem:[%s8566_s11 + $0xb68] sm:$0xff]  ;;  %v7485_v17 = vcombine.low %v2955_v2, %v2959_v61  ;;  %v7487_v25 = vcombine.low %v2956_v18, %v2960_v8 }
 0x446   : > { %v7496_v20 = vcombine.high %v2964_v16, %v2968_v13  ;;  %v3008_v2 = vld [vmem:[%s8566_s11 + $0xca8] sm:$0xff] }
 0x448   : > { %5770 = vmatpush1.bf16.msra.mxu0 %v7437_v24  ;;  %5934 = vmatpush1.bf16.msra.mxu1 %v7439_v44  ;;  %v2972_v24 = vld [vmem:[%s8566_s11 + $0xb88] sm:$0xff] }
 0x449   : > { %5771 = vmatprep.subr.bf16.mxu0 %v7446_v50  ;;  %5935 = vmatprep.subr.bf16.mxu1 %v7448_v3  ;;  %v2976_v44 = vld [vmem:[%s8566_s11 + $0xba8] sm:$0xff]  ;;  %v7493_v50 = vcombine.low %v2963_v33, %v2967_v26  ;;  %v7495_v3 = vcombine.low %v2964_v16, %v2968_v13 }
 0x44a   : > { %v7504_v15 = vcombine.high %v2972_v24, %v2976_v44  ;;  %v7503_v55 = vcombine.low %v2972_v24, %v2976_v44  ;;  %v3016_v33 = vld [vmem:[%s8566_s11 + $0xce8] sm:$0xff] }
 0x44c   : > { %5772 = vmatpush1.bf16.msra.mxu0 %v7445_v23  ;;  %5936 = vmatpush1.bf16.msra.mxu1 %v7447_v53  ;;  %v2568_v23 = vcombine.high %v10381_v9, %v10381_v9  ;;  %v2980_v53 = vld [vmem:[%s8566_s11 + $0xbc8] sm:$0xff] }
 0x44d   : > { %5773 = vmatprep.subr.bf16.mxu0 %v7454_v45  ;;  %5937 = vmatprep.subr.bf16.mxu1 %v7456_v19  ;;  %v2984_v45 = vld [vmem:[%s8566_s11 + $0xbe8] sm:$0xff]  ;;  %v7501_v19 = vcombine.low %v2971_v36, %v2975_v35 }
 0x44e   : > { %v7512_v52 = vcombine.high %v2980_v53, %v2984_v45  ;;  %v2988_v9 = vld [vmem:[%s8566_s11 + $0xc08] sm:$0xff]  ;;  %v7511_v34 = vcombine.low %v2980_v53, %v2984_v45 }
 0x44f   : > { %v3024_v36 = vld [vmem:[%s8566_s11 + $0xd28] sm:$0xff] }
 0x450   : > { %5774 = vmatpush1.bf16.msra.mxu0 %v7453_v1  ;;  %5938 = vmatpush1.bf16.msra.mxu1 %v7455_v28  ;;  %v2991_v1 = vld [vmem:[%s8566_s11 + $0xc20] sm:$0xff]  ;;  %v10468_v28 = vrot.slane %v2568_v23, %v10244_v59 }
 0x451   : > { %5775 = vmatprep.subr.bf16.mxu0 %v7462_v39  ;;  %5939 = vmatprep.subr.bf16.mxu1 %v7464_v30  ;;  %v2992_v39 = vld [vmem:[%s8566_s11 + $0xc28] sm:$0xff]  ;;  %v7509_v30 = vcombine.low %v2979_v40, %v2983_v32  ;;  %v7518_v31 = vcombine.high %v2987_v62, %v2991_v1  ;;  %v7517_v29 = vcombine.low %v2987_v62, %v2991_v1 }
 0x452   : > { %v7520_v38 = vcombine.high %v2988_v9, %v2992_v39  ;;  %v7519_v46 = vcombine.low %v2988_v9, %v2992_v39  ;;  %v3032_v40 = vld [vmem:[%s8566_s11 + $0xd68] sm:$0xff] }
 0x454   : > { %5776 = vmatpush1.bf16.msra.mxu0 %v7461_v58  ;;  %5940 = vmatpush1.bf16.msra.mxu1 %v7463_v43  ;;  %v2999_v58 = vld [vmem:[%s8566_s11 + $0xc60] sm:$0xff]  ;;  %v2584_v43 = vcombine.high %v10468_v28, %v10468_v28 }
 0x455   : > { %5777 = vmatprep.subr.bf16.mxu0 %v7470_v14  ;;  %5941 = vmatprep.subr.bf16.mxu1 %v7472_v48  ;;  %v10478_v14 = vpack.c.bf16 %v10387_v12, %v10387_v12  ;;  %v2996_v48 = vld [vmem:[%s8566_s11 + $0xc48] sm:$0xff]  ;;  %v7526_v47 = vcombine.high %v2995_v57, %v2999_v58  ;;  %v7525_v61 = vcombine.low %v2995_v57, %v2999_v58 }
 0x456   : > { %v3004_v12 = vld [vmem:[%s8566_s11 + $0xc88] sm:$0xff]  ;;  %v7527_v18 = vcombine.low %v2996_v48, %v3000_v49 }
 0x457   : > { %v7535_v16 = vcombine.low %v3004_v12, %v3008_v2 }
 0x458   : > { %5778 = vmatpush1.bf16.msra.mxu0 %v7469_v27  ;;  %5942 = vmatpush1.bf16.msra.mxu1 %v7471_v4  ;;  %v7528_v27 = vcombine.high %v2996_v48, %v3000_v49  ;;  %v3003_v4 = vld [vmem:[%s8566_s11 + $0xc80] sm:$0xff] }
 0x459   : > { %5779 = vmatprep.subr.bf16.mxu0 %v7478_v5  ;;  %5943 = vmatprep.subr.bf16.mxu1 %v7480_v11  ;;  %v3007_v5 = vld [vmem:[%s8566_s11 + $0xca0] sm:$0xff]  ;;  %v10484_v11 = vpack.c.bf16 %v2584_v43, %v2584_v43 }
 0x45a   : > { %v7534_v8 = vcombine.high %v3003_v4, %v3007_v5  ;;  %v7533_v26 = vcombine.low %v3003_v4, %v3007_v5  ;;  %v3051_v49 = vld [vmem:[%s8566_s11 + $0xe00] sm:$0xff] }
 0x45c   : > { %5780 = vmatpush1.bf16.msra.mxu0 %v7477_v63  ;;  %5944 = vmatpush1.bf16.msra.mxu1 %v7479_v10  ;;  %v7536_v63 = vcombine.high %v3004_v12, %v3008_v2  ;;  %v3011_v10 = vld [vmem:[%s8566_s11 + $0xcc0] sm:$0xff] }
 0x45d   : > { %5781 = vmatprep.subr.bf16.mxu0 %v7486_v22  ;;  %5945 = vmatprep.subr.bf16.mxu1 %v7488_v56  ;;  %v3015_v22 = vld [vmem:[%s8566_s11 + $0xce0] sm:$0xff]  ;;  %v3012_v56 = vld [vmem:[%s8566_s11 + $0xcc8] sm:$0xff] }
 0x45e   : > { %v7542_v13 = vcombine.high %v3011_v10, %v3015_v22  ;;  %v7541_v35 = vcombine.low %v3011_v10, %v3015_v22  ;;  %v7543_v24 = vcombine.low %v3012_v56, %v3016_v33  ;;  %v3059_v2 = vld [vmem:[%s8566_s11 + $0xe40] sm:$0xff] }
 0x460   : > { %5782 = vmatpush1.bf16.msra.mxu0 %v7485_v17  ;;  %5946 = vmatpush1.bf16.msra.mxu1 %v7487_v25  ;;  %v7544_v17 = vcombine.high %v3012_v56, %v3016_v33  ;;  %v3019_v25 = vld [vmem:[%s8566_s11 + $0xd00] sm:$0xff] }
 0x461   : > { %5783 = vmatprep.subr.bf16.mxu0 %v7494_v60  ;;  %5947 = vmatprep.subr.bf16.mxu1 %v7496_v20  ;;  %v3023_v60 = vld [vmem:[%s8566_s11 + $0xd20] sm:$0xff]  ;;  %v3020_v20 = vld [vmem:[%s8566_s11 + $0xd08] sm:$0xff] }
 0x462   : > { %v7550_v44 = vcombine.high %v3019_v25, %v3023_v60  ;;  %v7549_v32 = vcombine.low %v3019_v25, %v3023_v60  ;;  %v7551_v23 = vcombine.low %v3020_v20, %v3024_v36  ;;  %v3067_v33 = vld [vmem:[%s8566_s11 + $0xe80] sm:$0xff] }
 0x464   : > { %5784 = vmatpush1.bf16.msra.mxu0 %v7493_v50  ;;  %5948 = vmatpush1.bf16.msra.mxu1 %v7495_v3  ;;  %v7552_v50 = vcombine.high %v3020_v20, %v3024_v36  ;;  %v3027_v3 = vld [vmem:[%s8566_s11 + $0xd40] sm:$0xff] }
 0x465   : > { %5785 = vmatprep.subr.bf16.mxu0 %v7502_v37  ;;  %5949 = vmatprep.subr.bf16.mxu1 %v7504_v15  ;;  %v3031_v37 = vld [vmem:[%s8566_s11 + $0xd60] sm:$0xff]  ;;  %v3028_v15 = vld [vmem:[%s8566_s11 + $0xd48] sm:$0xff] }
 0x466   : > { %v7558_v53 = vcombine.high %v3027_v3, %v3031_v37  ;;  %v7560_v45 = vcombine.high %v3028_v15, %v3032_v40  ;;  %v7557_v62 = vcombine.low %v3027_v3, %v3031_v37  ;;  %v7559_v1 = vcombine.low %v3028_v15, %v3032_v40  ;;  %v3075_v36 = vld [vmem:[%s8566_s11 + $0xec0] sm:$0xff] }
 0x467   : > { %v3083_v40 = vld [vmem:[%s8566_s11 + $0xf00] sm:$0xff] }
 0x468   : > { %5786 = vmatpush1.bf16.msra.mxu0 %v7501_v19  ;;  %5950 = vmatpush1.bf16.msra.mxu1 %v7503_v55  ;;  %v3035_v19 = vld [vmem:[%s8566_s11 + $0xd80] sm:$0xff] }
 0x469   : > { %5787 = vmatprep.subr.bf16.mxu0 %v7510_v21  ;;  %5951 = vmatprep.subr.bf16.mxu1 %v7512_v52  ;;  %v3039_v55 = vld [vmem:[%s8566_s11 + $0xda0] sm:$0xff]  ;;  %v3036_v21 = vld [vmem:[%s8566_s11 + $0xd88] sm:$0xff] }
 0x46a   : > { %v3040_v52 = vld [vmem:[%s8566_s11 + $0xda8] sm:$0xff]  ;;  %v7566_v9 = vcombine.high %v3035_v19, %v3039_v55  ;;  %v7565_v57 = vcombine.low %v3035_v19, %v3039_v55 }
 0x46b   : > { %v7568_v39 = vcombine.high %v3036_v21, %v3040_v52  ;;  %v7567_v58 = vcombine.low %v3036_v21, %v3040_v52  ;;  %v3091_v52 = vld [vmem:[%s8566_s11 + $0xf40] sm:$0xff] }
 0x46c   : > { %5788 = vmatpush1.bf16.msra.mxu0 %v7509_v30  ;;  %5952 = vmatpush1.bf16.msra.mxu1 %v7511_v34  ;;  %v3043_v30 = vld [vmem:[%s8566_s11 + $0xdc0] sm:$0xff] }
 0x46d   : > { %5798 = vmatprep.subr.bf16.mxu0 %v7518_v31  ;;  %5962 = vmatprep.subr.bf16.mxu1 %v7520_v38  ;;  %v3047_v34 = vld [vmem:[%s8566_s11 + $0xde0] sm:$0xff]  ;;  %v3044_v31 = vld [vmem:[%s8566_s11 + $0xdc8] sm:$0xff] }
 0x46e   : > { %v3048_v38 = vld [vmem:[%s8566_s11 + $0xde8] sm:$0xff]  ;;  %v7574_v43 = vcombine.high %v3043_v30, %v3047_v34 }
 0x46f   : > { %5790 = vmatmul.mubr.bf16.vlgmr.msra.gmra.mrb[0].mxu0 %v10478_v14  ;;  %5954 = vmatmul.mubr.bf16.vlgmr.msra.gmra.mrb[0].mxu1 %v10478_v14  ;;  %v7576_v48 = vcombine.high %v3044_v31, %v3048_v38  ;;  %v7575_v4 = vcombine.low %v3044_v31, %v3048_v38  ;;  %v3099_v38 = vld [vmem:[%s8566_s11 + $0xf80] sm:$0xff] }
 0x470   : > { %5799 = vmatpush1.bf16.msra.mxu0 %v7517_v29  ;;  %5963 = vmatpush1.bf16.msra.mxu1 %v7519_v46  ;;  %v3055_v29 = vld [vmem:[%s8566_s11 + $0xe20] sm:$0xff]  ;;  %v3052_v46 = vld [vmem:[%s8566_s11 + $0xe08] sm:$0xff] }
 0x471   : > { %5800 = vmatprep.subr.bf16.mxu0 %v7526_v47  ;;  %5964 = vmatprep.subr.bf16.mxu1 %v7528_v27  ;;  %v3056_v47 = vld [vmem:[%s8566_s11 + $0xe28] sm:$0xff]  ;;  %v7573_v27 = vcombine.low %v3043_v30, %v3047_v34  ;;  %v7582_v5 = vcombine.high %v3051_v49, %v3055_v29 }
 0x472   : > { %5830 = vmatprep.mubr.bf16.mxu0 %v10484_v11  ;;  %5994 = vmatprep.mubr.bf16.mxu1 %v10484_v11  ;;  %v7584_v12 = vcombine.high %v3052_v46, %v3056_v47  ;;  %v7583_v10 = vcombine.low %v3052_v46, %v3056_v47  ;;  %v3107_v47 = vld [vmem:[%s8566_s11 + $0xfc0] sm:$0xff] }
 0x474   : > { %5801 = vmatpush1.bf16.msra.mxu0 %v7525_v61  ;;  %5965 = vmatpush1.bf16.msra.mxu1 %v7527_v18  ;;  %v3063_v61 = vld [vmem:[%s8566_s11 + $0xe60] sm:$0xff]  ;;  %v3060_v18 = vld [vmem:[%s8566_s11 + $0xe48] sm:$0xff] }
 0x475   : > { %5802 = vmatprep.subr.bf16.mxu0 %v7534_v8  ;;  %5966 = vmatprep.subr.bf16.mxu1 %v7536_v63  ;;  %v3064_v8 = vld [vmem:[%s8566_s11 + $0xe68] sm:$0xff]  ;;  %v7581_v63 = vcombine.low %v3051_v49, %v3055_v29  ;;  %v7590_v22 = vcombine.high %v3059_v2, %v3063_v61 }
 0x476   : > { %v7592_v56 = vcombine.high %v3060_v18, %v3064_v8  ;;  %v7591_v25 = vcombine.low %v3060_v18, %v3064_v8  ;;  %v2605_v8 = vld [vmem:[%s8566_s11 + $0x10] sm:$0xff] }
 0x478   : > { %5803 = vmatpush1.bf16.msra.mxu0 %v7533_v26  ;;  %5967 = vmatpush1.bf16.msra.mxu1 %v7535_v16  ;;  %v3071_v26 = vld [vmem:[%s8566_s11 + $0xea0] sm:$0xff]  ;;  %v3068_v16 = vld [vmem:[%s8566_s11 + $0xe88] sm:$0xff] }
 0x479   : > { %5804 = vmatprep.subr.bf16.mxu0 %v7542_v13  ;;  %5968 = vmatprep.subr.bf16.mxu1 %v7544_v17  ;;  %v3072_v13 = vld [vmem:[%s8566_s11 + $0xea8] sm:$0xff]  ;;  %v7589_v17 = vcombine.low %v3059_v2, %v3063_v61  ;;  %v7598_v60 = vcombine.high %v3067_v33, %v3071_v26 }
 0x47a   : > { %v7600_v20 = vcombine.high %v3068_v16, %v3072_v13  ;;  %v7599_v3 = vcombine.low %v3068_v16, %v3072_v13  ;;  %v2613_v13 = vld [vmem:[%s8566_s11 + $0x50] sm:$0xff] }
 0x47c   : > { %5805 = vmatpush1.bf16.msra.mxu0 %v7541_v35  ;;  %5969 = vmatpush1.bf16.msra.mxu1 %v7543_v24  ;;  %v3079_v35 = vld [vmem:[%s8566_s11 + $0xee0] sm:$0xff]  ;;  %v3076_v24 = vld [vmem:[%s8566_s11 + $0xec8] sm:$0xff] }
 0x47d   : > { %5806 = vmatprep.subr.bf16.mxu0 %v7550_v44  ;;  %5970 = vmatprep.subr.bf16.mxu1 %v7552_v50  ;;  %v3080_v44 = vld [vmem:[%s8566_s11 + $0xee8] sm:$0xff]  ;;  %v7597_v50 = vcombine.low %v3067_v33, %v3071_v26  ;;  %v7606_v37 = vcombine.high %v3075_v36, %v3079_v35 }
 0x47e   : > { %v7608_v15 = vcombine.high %v3076_v24, %v3080_v44  ;;  %v7607_v19 = vcombine.low %v3076_v24, %v3080_v44 }
 0x480   : > { %5807 = vmatpush1.bf16.msra.mxu0 %v7549_v32  ;;  %5971 = vmatpush1.bf16.msra.mxu1 %v7551_v23  ;;  %v3087_v32 = vld [vmem:[%s8566_s11 + $0xf20] sm:$0xff]  ;;  %v3084_v23 = vld [vmem:[%s8566_s11 + $0xf08] sm:$0xff] }
 0x481   : > { %5808 = vmatprep.subr.bf16.mxu0 %v7558_v53  ;;  %5972 = vmatprep.subr.bf16.mxu1 %v7560_v45  ;;  %v3088_v53 = vld [vmem:[%s8566_s11 + $0xf28] sm:$0xff]  ;;  %v7605_v45 = vcombine.low %v3075_v36, %v3079_v35  ;;  %v7614_v55 = vcombine.high %v3083_v40, %v3087_v32 }
 0x482   : > { %v7616_v21 = vcombine.high %v3084_v23, %v3088_v53  ;;  %v7615_v30 = vcombine.low %v3084_v23, %v3088_v53  ;;  %v2629_v53 = vld [vmem:[%s8566_s11 + $0xd0] sm:$0xff] }
 0x484   : > { %5809 = vmatpush1.bf16.msra.mxu0 %v7557_v62  ;;  %5973 = vmatpush1.bf16.msra.mxu1 %v7559_v1  ;;  %v3095_v62 = vld [vmem:[%s8566_s11 + $0xf60] sm:$0xff]  ;;  %v3092_v1 = vld [vmem:[%s8566_s11 + $0xf48] sm:$0xff] }
 0x485   : > { %5810 = vmatprep.subr.bf16.mxu0 %v7566_v9  ;;  %5974 = vmatprep.subr.bf16.mxu1 %v7568_v39  ;;  %v3096_v9 = vld [vmem:[%s8566_s11 + $0xf68] sm:$0xff]  ;;  %v7613_v39 = vcombine.low %v3083_v40, %v3087_v32  ;;  %v7622_v34 = vcombine.high %v3091_v52, %v3095_v62 }
 0x486   : > { %v7624_v31 = vcombine.high %v3092_v1, %v3096_v9  ;;  %v7623_v49 = vcombine.low %v3092_v1, %v3096_v9  ;;  %v2637_v9 = vld [vmem:[%s8566_s11 + $0x110] sm:$0xff] }
 0x488   : > { %5811 = vmatpush1.bf16.msra.mxu0 %v7565_v57  ;;  %5975 = vmatpush1.bf16.msra.mxu1 %v7567_v58  ;;  %v3103_v57 = vld [vmem:[%s8566_s11 + $0xfa0] sm:$0xff]  ;;  %v3100_v58 = vld [vmem:[%s8566_s11 + $0xf88] sm:$0xff] }
 0x489   : > { %5812 = vmatprep.subr.bf16.mxu0 %v7574_v43  ;;  %5976 = vmatprep.subr.bf16.mxu1 %v7576_v48  ;;  %v3104_v43 = vld [vmem:[%s8566_s11 + $0xfa8] sm:$0xff]  ;;  %v7621_v48 = vcombine.low %v3091_v52, %v3095_v62  ;;  %v7630_v29 = vcombine.high %v3099_v38, %v3103_v57 }
 0x48a   : > { %v7632_v46 = vcombine.high %v3100_v58, %v3104_v43  ;;  %v7631_v2 = vcombine.low %v3100_v58, %v3104_v43  ;;  %v2645_v58 = vld [vmem:[%s8566_s11 + $0x150] sm:$0xff] }
 0x48b   : > { %v2649_v43 = vld [vmem:[%s8566_s11 + $0x170] sm:$0xff] }
 0x48c   : > { %5813 = vmatpush1.bf16.msra.mxu0 %v7573_v27  ;;  %5977 = vmatpush1.bf16.msra.mxu1 %v7575_v4  ;;  %v3111_v27 = vld [vmem:[%s8566_s11 + $0xfe0] sm:$0xff]  ;;  %v3108_v4 = vld [vmem:[%s8566_s11 + $0xfc8] sm:$0xff] }
 0x48d   : > { %5814 = vmatprep.subr.bf16.mxu0 %v7582_v5  ;;  %5978 = vmatprep.subr.bf16.mxu1 %v7584_v12  ;;  %v3112_v5 = vld [vmem:[%s8566_s11 + $0xfe8] sm:$0xff]  ;;  %v7629_v12 = vcombine.low %v3099_v38, %v3103_v57  ;;  %v7638_v61 = vcombine.high %v3107_v47, %v3111_v27 }
 0x48e   : > { %v7640_v18 = vcombine.high %v3108_v4, %v3112_v5  ;;  %v7639_v33 = vcombine.low %v3108_v4, %v3112_v5  ;;  %v2653_v4 = vld [vmem:[%s8566_s11 + $0x190] sm:$0xff] }
 0x48f   : > { %v2657_v5 = vld [vmem:[%s8566_s11 + $0x1b0] sm:$0xff] }
 0x490   : > { %5815 = vmatpush1.bf16.msra.mxu0 %v7581_v63  ;;  %5979 = vmatpush1.bf16.msra.mxu1 %v7583_v10  ;;  %v2609_v63 = vld [vmem:[%s8566_s11 + $0x30] sm:$0xff]  ;;  %v2606_v10 = vld [vmem:[%s8566_s11 + $0x18] sm:$0xff] }
 0x491   : > { %5816 = vmatprep.subr.bf16.mxu0 %v7590_v22  ;;  %5980 = vmatprep.subr.bf16.mxu1 %v7592_v56  ;;  %v2610_v22 = vld [vmem:[%s8566_s11 + $0x38] sm:$0xff]  ;;  %v7637_v56 = vcombine.low %v3107_v47, %v3111_v27  ;;  %v7138_v26 = vcombine.high %v2605_v8, %v2609_v63  ;;  %v7137_v36 = vcombine.low %v2605_v8, %v2609_v63 }
 0x492   : > { %v7140_v16 = vcombine.high %v2606_v10, %v2610_v22  ;;  %v7139_v35 = vcombine.low %v2606_v10, %v2610_v22  ;;  %v7178_v47 = vcombine.high %v2645_v58, %v2649_v43  ;;  %v7186_v8 = vcombine.high %v2653_v4, %v2657_v5  ;;  %v2661_v10 = vld [vmem:[%s8566_s11 + $0x1d0] sm:$0xff] }
 0x493   : > { %v2665_v22 = vld [vmem:[%s8566_s11 + $0x1f0] sm:$0xff] }
 0x494   : > { %5817 = vmatpush1.bf16.msra.mxu0 %v7589_v17  ;;  %5981 = vmatpush1.bf16.msra.mxu1 %v7591_v25  ;;  %v2617_v17 = vld [vmem:[%s8566_s11 + $0x70] sm:$0xff]  ;;  %v10552_v25 = vpack.c.bf16 %v10468_v28, %v10468_v28  ;;  %v2622_v28 = vld [vmem:[%s8566_s11 + $0x98] sm:$0xff] }
 0x495   : > { %5818 = vmatprep.subr.bf16.mxu0 %v7598_v60  ;;  %5982 = vmatprep.subr.bf16.mxu1 %v7600_v20  ;;  %v2614_v60 = vld [vmem:[%s8566_s11 + $0x58] sm:$0xff]  ;;  %v7146_v24 = vcombine.high %v2613_v13, %v2617_v17 }
 0x496   : > { %v2618_v20 = vld [vmem:[%s8566_s11 + $0x78] sm:$0xff] }
 0x497   : > { %v7148_v44 = vcombine.high %v2614_v60, %v2618_v20  ;;  %v7147_v40 = vcombine.low %v2614_v60, %v2618_v20  ;;  %v2669_v60 = vld [vmem:[%s8566_s11 + $0x210] sm:$0xff] }
 0x498   : > { %5819 = vmatpush1.bf16.msra.mxu0 %v7597_v50  ;;  %5983 = vmatpush1.bf16.msra.mxu1 %v7599_v3  ;;  %v2621_v50 = vld [vmem:[%s8566_s11 + $0x90] sm:$0xff] }
 0x499   : > { %5820 = vmatprep.subr.bf16.mxu0 %v7606_v37  ;;  %5984 = vmatprep.subr.bf16.mxu1 %v7608_v15  ;;  %v2625_v3 = vld [vmem:[%s8566_s11 + $0xb0] sm:$0xff]  ;;  %v2626_v37 = vld [vmem:[%s8566_s11 + $0xb8] sm:$0xff]  ;;  %v7145_v15 = vcombine.low %v2613_v13, %v2617_v17  ;;  %v7194_v13 = vcombine.high %v2661_v10, %v2665_v22 }
 0x49a   : > { %v7154_v32 = vcombine.high %v2621_v50, %v2625_v3  ;;  %v7156_v23 = vcombine.high %v2622_v28, %v2626_v37  ;;  %v7155_v52 = vcombine.low %v2622_v28, %v2626_v37  ;;  %v2673_v20 = vld [vmem:[%s8566_s11 + $0x230] sm:$0xff] }
 0x49b   : > { %v2677_v28 = vld [vmem:[%s8566_s11 + $0x250] sm:$0xff] }
 0x49c   : > { %5821 = vmatpush1.bf16.msra.mxu0 %v7605_v45  ;;  %5985 = vmatpush1.bf16.msra.mxu1 %v7607_v19  ;;  %v2633_v45 = vld [vmem:[%s8566_s11 + $0xf0] sm:$0xff]  ;;  %v2630_v19 = vld [vmem:[%s8566_s11 + $0xd8] sm:$0xff] }
 0x49d   : > { %5822 = vmatprep.subr.bf16.mxu0 %v7614_v55  ;;  %5986 = vmatprep.subr.bf16.mxu1 %v7616_v21  ;;  %v2634_v55 = vld [vmem:[%s8566_s11 + $0xf8] sm:$0xff]  ;;  %v7153_v21 = vcombine.low %v2621_v50, %v2625_v3  ;;  %v7162_v62 = vcombine.high %v2629_v53, %v2633_v45  ;;  %v7202_v50 = vcombine.high %v2669_v60, %v2673_v20  ;;  %v2681_v37 = vld [vmem:[%s8566_s11 + $0x270] sm:$0xff] }
 0x49e   : > { %v7164_v1 = vcombine.high %v2630_v19, %v2634_v55 }
 0x4a0   : > { %5823 = vmatpush1.bf16.msra.mxu0 %v7613_v39  ;;  %5987 = vmatpush1.bf16.msra.mxu1 %v7615_v30  ;;  %v2641_v39 = vld [vmem:[%s8566_s11 + $0x130] sm:$0xff]  ;;  %v2638_v30 = vld [vmem:[%s8566_s11 + $0x118] sm:$0xff] }
 0x4a1   : > { %5824 = vmatprep.subr.bf16.mxu0 %v7622_v34  ;;  %5988 = vmatprep.subr.bf16.mxu1 %v7624_v31  ;;  %v2642_v34 = vld [vmem:[%s8566_s11 + $0x138] sm:$0xff]  ;;  %v7161_v31 = vcombine.low %v2629_v53, %v2633_v45  ;;  %v7170_v38 = vcombine.high %v2637_v9, %v2641_v39  ;;  %v7210_v53 = vcombine.high %v2677_v28, %v2681_v37 }
 0x4a2   : > { %v7172_v57 = vcombine.high %v2638_v30, %v2642_v34 }
 0x4a4   : > { %5825 = vmatpush1.bf16.msra.mxu0 %v7621_v48  ;;  %5989 = vmatpush1.bf16.msra.mxu1 %v7623_v49  ;;  %v2646_v48 = vld [vmem:[%s8566_s11 + $0x158] sm:$0xff] }
 0x4a5   : > { %5826 = vmatprep.subr.bf16.mxu0 %v7630_v29  ;;  %5990 = vmatprep.subr.bf16.mxu1 %v7632_v46  ;;  %v2650_v49 = vld [vmem:[%s8566_s11 + $0x178] sm:$0xff]  ;;  %v7169_v29 = vcombine.low %v2637_v9, %v2641_v39  ;;  %v7171_v46 = vcombine.low %v2638_v30, %v2642_v34  ;;  %v2693_v30 = vld [vmem:[%s8566_s11 + $0x2d0] sm:$0xff] }
 0x4a6   : > { %v7180_v27 = vcombine.high %v2646_v48, %v2650_v49  ;;  %v2697_v34 = vld [vmem:[%s8566_s11 + $0x2f0] sm:$0xff] }
 0x4a8   : > { %5827 = vmatpush1.bf16.msra.mxu0 %v7629_v12  ;;  %5991 = vmatpush1.bf16.msra.mxu1 %v7631_v2  ;;  %v2654_v12 = vld [vmem:[%s8566_s11 + $0x198] sm:$0xff] }
 0x4a9   : > { %5828 = vmatprep.subr.bf16.mxu0 %v7638_v61  ;;  %5992 = vmatprep.subr.bf16.mxu1 %v7640_v18  ;;  %v2658_v2 = vld [vmem:[%s8566_s11 + $0x1b8] sm:$0xff]  ;;  %v7177_v61 = vcombine.low %v2645_v58, %v2649_v43  ;;  %v7179_v18 = vcombine.low %v2646_v48, %v2650_v49  ;;  %v7226_v58 = vcombine.high %v2693_v30, %v2697_v34  ;;  %v2701_v48 = vld [vmem:[%s8566_s11 + $0x310] sm:$0xff] }
 0x4aa   : > { %v7188_v63 = vcombine.high %v2654_v12, %v2658_v2  ;;  %v2705_v49 = vld [vmem:[%s8566_s11 + $0x330] sm:$0xff] }
 0x4ac   : > { %5829 = vmatpush1.bf16.msra.mxu0 %v7637_v56  ;;  %5993 = vmatpush1.bf16.msra.mxu1 %v7639_v33  ;;  %v2662_v56 = vld [vmem:[%s8566_s11 + $0x1d8] sm:$0xff] }
 0x4ad   : > { %6003 = vmatprep.subr.bf16.mxu0 %v7138_v26  ;;  %6167 = vmatprep.subr.bf16.mxu1 %v7140_v16  ;;  %v2666_v33 = vld [vmem:[%s8566_s11 + $0x1f8] sm:$0xff]  ;;  %v7185_v26 = vcombine.low %v2653_v4, %v2657_v5  ;;  %v7187_v16 = vcombine.low %v2654_v12, %v2658_v2  ;;  %v7234_v4 = vcombine.high %v2701_v48, %v2705_v49  ;;  %v2709_v12 = vld [vmem:[%s8566_s11 + $0x350] sm:$0xff] }
 0x4ae   : > { %v7196_v17 = vcombine.high %v2662_v56, %v2666_v33  ;;  %v2713_v2 = vld [vmem:[%s8566_s11 + $0x370] sm:$0xff] }
 0x4af   : > { %5831 = vmatmul.mubr.bf16.vlgmr.msra.gmra.mrb[0].mxu0 %v10552_v25  ;;  %5995 = vmatmul.mubr.bf16.vlgmr.msra.gmra.mrb[0].mxu1 %v10552_v25 }
 0x4b0   : > { %6004 = vmatpush1.bf16.msra.mxu0 %v7137_v36  ;;  %6168 = vmatpush1.bf16.msra.mxu1 %v7139_v35  ;;  %v2670_v36 = vld [vmem:[%s8566_s11 + $0x218] sm:$0xff] }
 0x4b1   : > { %6005 = vmatprep.subr.bf16.mxu0 %v7146_v24  ;;  %6169 = vmatprep.subr.bf16.mxu1 %v7148_v44  ;;  %v2674_v35 = vld [vmem:[%s8566_s11 + $0x238] sm:$0xff]  ;;  %v7193_v24 = vcombine.low %v2661_v10, %v2665_v22  ;;  %v7195_v44 = vcombine.low %v2662_v56, %v2666_v33  ;;  %v7242_v10 = vcombine.high %v2709_v12, %v2713_v2  ;;  %v2717_v56 = vld [vmem:[%s8566_s11 + $0x390] sm:$0xff] }
 0x4b2   : > { %6035 = vmatprep.mubr.bf16.mxu0 %v10265_v6  ;;  %6199 = vmatprep.mubr.bf16.mxu1 %v10265_v6  ;;  %v7163_v6 = vcombine.low %v2630_v19, %v2634_v55  ;;  %v7204_v3 = vcombine.high %v2670_v36, %v2674_v35  ;;  %v2685_v19 = vld [vmem:[%s8566_s11 + $0x290] sm:$0xff] }
 0x4b3   : > { %v2689_v55 = vld [vmem:[%s8566_s11 + $0x2b0] sm:$0xff] }
 0x4b4   : > { %6006 = vmatpush1.bf16.msra.mxu0 %v7145_v15  ;;  %6170 = vmatpush1.bf16.msra.mxu1 %v7147_v40  ;;  %v2678_v15 = vld [vmem:[%s8566_s11 + $0x258] sm:$0xff]  ;;  %v7218_v9 = vcombine.high %v2685_v19, %v2689_v55  ;;  %v2721_v33 = vld [vmem:[%s8566_s11 + $0x3b0] sm:$0xff] }
 0x4b5   : > { %6007 = vmatprep.subr.bf16.mxu0 %v7154_v32  ;;  %6171 = vmatprep.subr.bf16.mxu1 %v7156_v23  ;;  %v2682_v40 = vld [vmem:[%s8566_s11 + $0x278] sm:$0xff]  ;;  %v7201_v32 = vcombine.low %v2669_v60, %v2673_v20  ;;  %v7203_v23 = vcombine.low %v2670_v36, %v2674_v35  ;;  %v7250_v60 = vcombine.high %v2717_v56, %v2721_v33  ;;  %v2725_v36 = vld [vmem:[%s8566_s11 + $0x3d0] sm:$0xff] }
 0x4b6   : > { %v7212_v45 = vcombine.high %v2678_v15, %v2682_v40  ;;  %v2729_v35 = vld [vmem:[%s8566_s11 + $0x3f0] sm:$0xff] }
 0x4b8   : > { %6008 = vmatpush1.bf16.msra.mxu0 %v7153_v21  ;;  %6172 = vmatpush1.bf16.msra.mxu1 %v7155_v52  ;;  %v2686_v21 = vld [vmem:[%s8566_s11 + $0x298] sm:$0xff] }
 0x4b9   : > { %6009 = vmatprep.subr.bf16.mxu0 %v7162_v62  ;;  %6173 = vmatprep.subr.bf16.mxu1 %v7164_v1  ;;  %v2690_v52 = vld [vmem:[%s8566_s11 + $0x2b8] sm:$0xff]  ;;  %v7209_v62 = vcombine.low %v2677_v28, %v2681_v37  ;;  %v7211_v1 = vcombine.low %v2678_v15, %v2682_v40  ;;  %v7258_v28 = vcombine.high %v2725_v36, %v2729_v35  ;;  %v2733_v15 = vld [vmem:[%s8566_s11 + $0x410] sm:$0xff] }
 0x4ba   : > { %v7220_v39 = vcombine.high %v2686_v21, %v2690_v52  ;;  %v2737_v40 = vld [vmem:[%s8566_s11 + $0x430] sm:$0xff] }
 0x4bc   : > { %6010 = vmatpush1.bf16.msra.mxu0 %v7161_v31  ;;  %6174 = vmatpush1.bf16.msra.mxu1 %v7163_v6  ;;  %v2694_v31 = vld [vmem:[%s8566_s11 + $0x2d8] sm:$0xff] }
 0x4bd   : > { %6011 = vmatprep.subr.bf16.mxu0 %v7170_v38  ;;  %6175 = vmatprep.subr.bf16.mxu1 %v7172_v57  ;;  %v2698_v6 = vld [vmem:[%s8566_s11 + $0x2f8] sm:$0xff]  ;;  %v7217_v38 = vcombine.low %v2685_v19, %v2689_v55  ;;  %v7219_v57 = vcombine.low %v2686_v21, %v2690_v52  ;;  %v7266_v19 = vcombine.high %v2733_v15, %v2737_v40  ;;  %v2741_v21 = vld [vmem:[%s8566_s11 + $0x450] sm:$0xff] }
 0x4be   : > { %v7228_v43 = vcombine.high %v2694_v31, %v2698_v6  ;;  %v2745_v52 = vld [vmem:[%s8566_s11 + $0x470] sm:$0xff] }
 0x4c0   : > { %6012 = vmatpush1.bf16.msra.mxu0 %v7169_v29  ;;  %6176 = vmatpush1.bf16.msra.mxu1 %v7171_v46  ;;  %v2702_v29 = vld [vmem:[%s8566_s11 + $0x318] sm:$0xff] }
 0x4c1   : > { %6013 = vmatprep.subr.bf16.mxu0 %v7178_v47  ;;  %6177 = vmatprep.subr.bf16.mxu1 %v7180_v27  ;;  %v2706_v46 = vld [vmem:[%s8566_s11 + $0x338] sm:$0xff]  ;;  %v7225_v47 = vcombine.low %v2693_v30, %v2697_v34  ;;  %v7227_v27 = vcombine.low %v2694_v31, %v2698_v6  ;;  %v7274_v30 = vcombine.high %v2741_v21, %v2745_v52  ;;  %v2749_v31 = vld [vmem:[%s8566_s11 + $0x490] sm:$0xff] }
 0x4c2   : > { %v7236_v5 = vcombine.high %v2702_v29, %v2706_v46  ;;  %v2753_v6 = vld [vmem:[%s8566_s11 + $0x4b0] sm:$0xff] }
 0x4c4   : > { %6014 = vmatpush1.bf16.msra.mxu0 %v7177_v61  ;;  %6178 = vmatpush1.bf16.msra.mxu1 %v7179_v18  ;;  %v2710_v61 = vld [vmem:[%s8566_s11 + $0x358] sm:$0xff] }
 0x4c5   : > { %6015 = vmatprep.subr.bf16.mxu0 %v7186_v8  ;;  %6179 = vmatprep.subr.bf16.mxu1 %v7188_v63  ;;  %v2714_v18 = vld [vmem:[%s8566_s11 + $0x378] sm:$0xff]  ;;  %v7233_v8 = vcombine.low %v2701_v48, %v2705_v49  ;;  %v7235_v63 = vcombine.low %v2702_v29, %v2706_v46  ;;  %v7282_v48 = vcombine.high %v2749_v31, %v2753_v6  ;;  %v2757_v29 = vld [vmem:[%s8566_s11 + $0x4d0] sm:$0xff] }
 0x4c6   : > { %v7244_v22 = vcombine.high %v2710_v61, %v2714_v18  ;;  %v2761_v46 = vld [vmem:[%s8566_s11 + $0x4f0] sm:$0xff] }
 0x4c8   : > { %6016 = vmatpush1.bf16.msra.mxu0 %v7185_v26  ;;  %6180 = vmatpush1.bf16.msra.mxu1 %v7187_v16  ;;  %v2718_v26 = vld [vmem:[%s8566_s11 + $0x398] sm:$0xff] }
 0x4c9   : > { %6017 = vmatprep.subr.bf16.mxu0 %v7194_v13  ;;  %6181 = vmatprep.subr.bf16.mxu1 %v7196_v17  ;;  %v2722_v16 = vld [vmem:[%s8566_s11 + $0x3b8] sm:$0xff]  ;;  %v7241_v13 = vcombine.low %v2709_v12, %v2713_v2  ;;  %v7243_v17 = vcombine.low %v2710_v61, %v2714_v18  ;;  %v2765_v2 = vld [vmem:[%s8566_s11 + $0x510] sm:$0xff] }
 0x4ca   : > { %v7252_v20 = vcombine.high %v2718_v26, %v2722_v16  ;;  %v2769_v61 = vld [vmem:[%s8566_s11 + $0x530] sm:$0xff]  ;;  %v2766_v18 = vld [vmem:[%s8566_s11 + $0x518] sm:$0xff] }
 0x4cc   : > { %6018 = vmatpush1.bf16.msra.mxu0 %v7193_v24  ;;  %6182 = vmatpush1.bf16.msra.mxu1 %v7195_v44  ;;  %v2726_v24 = vld [vmem:[%s8566_s11 + $0x3d8] sm:$0xff] }
 0x4cd   : > { %6019 = vmatprep.subr.bf16.mxu0 %v7202_v50  ;;  %6183 = vmatprep.subr.bf16.mxu1 %v7204_v3  ;;  %v2730_v44 = vld [vmem:[%s8566_s11 + $0x3f8] sm:$0xff]  ;;  %v7249_v50 = vcombine.low %v2717_v56, %v2721_v33  ;;  %v7251_v3 = vcombine.low %v2718_v26, %v2722_v16  ;;  %v2773_v56 = vld [vmem:[%s8566_s11 + $0x550] sm:$0xff] }
 0x4ce   : > { %v7260_v37 = vcombine.high %v2726_v24, %v2730_v44  ;;  %v2777_v33 = vld [vmem:[%s8566_s11 + $0x570] sm:$0xff]  ;;  %v2774_v26 = vld [vmem:[%s8566_s11 + $0x558] sm:$0xff] }
 0x4cf   : > { %v2778_v16 = vld [vmem:[%s8566_s11 + $0x578] sm:$0xff] }
 0x4d0   : > { %6020 = vmatpush1.bf16.msra.mxu0 %v7201_v32  ;;  %6184 = vmatpush1.bf16.msra.mxu1 %v7203_v23  ;;  %v2734_v32 = vld [vmem:[%s8566_s11 + $0x418] sm:$0xff] }
 0x4d1   : > { %6021 = vmatprep.subr.bf16.mxu0 %v7210_v53  ;;  %6185 = vmatprep.subr.bf16.mxu1 %v7212_v45  ;;  %v2738_v23 = vld [vmem:[%s8566_s11 + $0x438] sm:$0xff]  ;;  %v7257_v53 = vcombine.low %v2725_v36, %v2729_v35  ;;  %v7259_v45 = vcombine.low %v2726_v24, %v2730_v44  ;;  %v2781_v36 = vld [vmem:[%s8566_s11 + $0x590] sm:$0xff] }
 0x4d2   : > { %v7268_v55 = vcombine.high %v2734_v32, %v2738_v23  ;;  %v2785_v35 = vld [vmem:[%s8566_s11 + $0x5b0] sm:$0xff]  ;;  %v2782_v24 = vld [vmem:[%s8566_s11 + $0x598] sm:$0xff] }
 0x4d3   : > { %v2786_v44 = vld [vmem:[%s8566_s11 + $0x5b8] sm:$0xff] }
 0x4d4   : > { %6022 = vmatpush1.bf16.msra.mxu0 %v7209_v62  ;;  %6186 = vmatpush1.bf16.msra.mxu1 %v7211_v1  ;;  %v2742_v62 = vld [vmem:[%s8566_s11 + $0x458] sm:$0xff] }
 0x4d5   : > { %6023 = vmatprep.subr.bf16.mxu0 %v7218_v9  ;;  %6187 = vmatprep.subr.bf16.mxu1 %v7220_v39  ;;  %v2746_v1 = vld [vmem:[%s8566_s11 + $0x478] sm:$0xff]  ;;  %v7265_v9 = vcombine.low %v2733_v15, %v2737_v40  ;;  %v7267_v39 = vcombine.low %v2734_v32, %v2738_v23  ;;  %v2789_v15 = vld [vmem:[%s8566_s11 + $0x5d0] sm:$0xff] }
 0x4d6   : > { %v7276_v34 = vcombine.high %v2742_v62, %v2746_v1  ;;  %v2793_v40 = vld [vmem:[%s8566_s11 + $0x5f0] sm:$0xff]  ;;  %v2790_v32 = vld [vmem:[%s8566_s11 + $0x5d8] sm:$0xff] }
 0x4d7   : > { %v2794_v23 = vld [vmem:[%s8566_s11 + $0x5f8] sm:$0xff] }
 0x4d8   : > { %6024 = vmatpush1.bf16.msra.mxu0 %v7217_v38  ;;  %6188 = vmatpush1.bf16.msra.mxu1 %v7219_v57  ;;  %v2750_v38 = vld [vmem:[%s8566_s11 + $0x498] sm:$0xff] }
 0x4d9   : > { %6025 = vmatprep.subr.bf16.mxu0 %v7226_v58  ;;  %6189 = vmatprep.subr.bf16.mxu1 %v7228_v43  ;;  %v2754_v57 = vld [vmem:[%s8566_s11 + $0x4b8] sm:$0xff]  ;;  %v7273_v58 = vcombine.low %v2741_v21, %v2745_v52  ;;  %v7275_v43 = vcombine.low %v2742_v62, %v2746_v1  ;;  %v2797_v21 = vld [vmem:[%s8566_s11 + $0x610] sm:$0xff] }
 0x4da   : > { %v7284_v49 = vcombine.high %v2750_v38, %v2754_v57  ;;  %v2801_v52 = vld [vmem:[%s8566_s11 + $0x630] sm:$0xff]  ;;  %v2798_v62 = vld [vmem:[%s8566_s11 + $0x618] sm:$0xff] }
 0x4db   : > { %v2802_v1 = vld [vmem:[%s8566_s11 + $0x638] sm:$0xff] }
 0x4dc   : > { %6026 = vmatpush1.bf16.msra.mxu0 %v7225_v47  ;;  %6190 = vmatpush1.bf16.msra.mxu1 %v7227_v27  ;;  %v2758_v47 = vld [vmem:[%s8566_s11 + $0x4d8] sm:$0xff] }
 0x4dd   : > { %6027 = vmatprep.subr.bf16.mxu0 %v7234_v4  ;;  %6191 = vmatprep.subr.bf16.mxu1 %v7236_v5  ;;  %v2762_v27 = vld [vmem:[%s8566_s11 + $0x4f8] sm:$0xff]  ;;  %v7283_v4 = vcombine.low %v2750_v38, %v2754_v57  ;;  %v7290_v5 = vcombine.high %v2757_v29, %v2761_v46 }
 0x4de   : > { %v7292_v12 = vcombine.high %v2758_v47, %v2762_v27  ;;  %v2806_v38 = vld [vmem:[%s8566_s11 + $0x658] sm:$0xff] }
 0x4df   : > { %v2810_v57 = vld [vmem:[%s8566_s11 + $0x678] sm:$0xff] }
 0x4e0   : > { %6028 = vmatpush1.bf16.msra.mxu0 %v7233_v8  ;;  %6192 = vmatpush1.bf16.msra.mxu1 %v7235_v63  ;;  %v2770_v8 = vld [vmem:[%s8566_s11 + $0x538] sm:$0xff]  ;;  %v7289_v63 = vcombine.low %v2757_v29, %v2761_v46  ;;  %v2813_v29 = vld [vmem:[%s8566_s11 + $0x690] sm:$0xff] }
 0x4e1   : > { %6029 = vmatprep.subr.bf16.mxu0 %v7242_v10  ;;  %6193 = vmatprep.subr.bf16.mxu1 %v7244_v22  ;;  %v7298_v10 = vcombine.high %v2765_v2, %v2769_v61  ;;  %v7300_v22 = vcombine.high %v2766_v18, %v2770_v8  ;;  %v2817_v46 = vld [vmem:[%s8566_s11 + $0x6b0] sm:$0xff] }
 0x4e4   : > { %6030 = vmatpush1.bf16.msra.mxu0 %v7241_v13  ;;  %6194 = vmatpush1.bf16.msra.mxu1 %v7243_v17  ;;  %v7297_v13 = vcombine.low %v2765_v2, %v2769_v61  ;;  %v7299_v17 = vcombine.low %v2766_v18, %v2770_v8  ;;  %v2821_v2 = vld [vmem:[%s8566_s11 + $0x6d0] sm:$0xff]  ;;  %v2822_v18 = vld [vmem:[%s8566_s11 + $0x6d8] sm:$0xff] }
 0x4e5   : > { %6031 = vmatprep.subr.bf16.mxu0 %v7250_v60  ;;  %6195 = vmatprep.subr.bf16.mxu1 %v7252_v20  ;;  %v7306_v60 = vcombine.high %v2773_v56, %v2777_v33  ;;  %v7308_v20 = vcombine.high %v2774_v26, %v2778_v16  ;;  %v2825_v61 = vld [vmem:[%s8566_s11 + $0x6f0] sm:$0xff]  ;;  %v2826_v8 = vld [vmem:[%s8566_s11 + $0x6f8] sm:$0xff] }
 0x4e8   : > { %6032 = vmatpush1.bf16.msra.mxu0 %v7249_v50  ;;  %6196 = vmatpush1.bf16.msra.mxu1 %v7251_v3  ;;  %v7305_v50 = vcombine.low %v2773_v56, %v2777_v33  ;;  %v7307_v3 = vcombine.low %v2774_v26, %v2778_v16  ;;  %v2829_v56 = vld [vmem:[%s8566_s11 + $0x710] sm:$0xff]  ;;  %v2830_v26 = vld [vmem:[%s8566_s11 + $0x718] sm:$0xff] }
 0x4e9   : > { %6033 = vmatprep.subr.bf16.mxu0 %v7258_v28  ;;  %6197 = vmatprep.subr.bf16.mxu1 %v7260_v37  ;;  %v7314_v28 = vcombine.high %v2781_v36, %v2785_v35  ;;  %v7316_v37 = vcombine.high %v2782_v24, %v2786_v44  ;;  %v2833_v33 = vld [vmem:[%s8566_s11 + $0x730] sm:$0xff]  ;;  %v2834_v16 = vld [vmem:[%s8566_s11 + $0x738] sm:$0xff] }
 0x4ec   : > { %6034 = vmatpush1.bf16.msra.mxu0 %v7257_v53  ;;  %6198 = vmatpush1.bf16.msra.mxu1 %v7259_v45  ;;  %v7313_v53 = vcombine.low %v2781_v36, %v2785_v35  ;;  %v7315_v45 = vcombine.low %v2782_v24, %v2786_v44  ;;  %v2837_v36 = vld [vmem:[%s8566_s11 + $0x750] sm:$0xff]  ;;  %v2838_v24 = vld [vmem:[%s8566_s11 + $0x758] sm:$0xff] }
 0x4ed   : > { %6044 = vmatprep.subr.bf16.mxu0 %v7266_v19  ;;  %6208 = vmatprep.subr.bf16.mxu1 %v7268_v55  ;;  %v7322_v19 = vcombine.high %v2789_v15, %v2793_v40  ;;  %v7324_v55 = vcombine.high %v2790_v32, %v2794_v23  ;;  %v2841_v35 = vld [vmem:[%s8566_s11 + $0x770] sm:$0xff]  ;;  %v2842_v44 = vld [vmem:[%s8566_s11 + $0x778] sm:$0xff] }
 0x4ef   : > { %6036 = vmatmul.mubr.bf16.vlgmr.msra.gmra.mrb[4].mxu0 %v10314_v54  ;;  %6200 = vmatmul.mubr.bf16.vlgmr.msra.gmra.mrb[4].mxu1 %v10314_v54  ;;  %v7281_v54 = vcombine.low %v2749_v31, %v2753_v6  ;;  %v2805_v31 = vld [vmem:[%s8566_s11 + $0x650] sm:$0xff] }
 0x4f0   : > { %6045 = vmatpush1.bf16.msra.mxu0 %v7265_v9  ;;  %6209 = vmatpush1.bf16.msra.mxu1 %v7267_v39  ;;  %v7321_v9 = vcombine.low %v2789_v15, %v2793_v40  ;;  %v7323_v39 = vcombine.low %v2790_v32, %v2794_v23  ;;  %v2809_v6 = vld [vmem:[%s8566_s11 + $0x670] sm:$0xff]  ;;  %v2846_v32 = vld [vmem:[%s8566_s11 + $0x798] sm:$0xff] }
 0x4f1   : > { %6046 = vmatprep.subr.bf16.mxu0 %v7274_v30  ;;  %6210 = vmatprep.subr.bf16.mxu1 %v7276_v34  ;;  %v7330_v30 = vcombine.high %v2797_v21, %v2801_v52  ;;  %v7332_v34 = vcombine.high %v2798_v62, %v2802_v1  ;;  %v2845_v15 = vld [vmem:[%s8566_s11 + $0x790] sm:$0xff]  ;;  %v2850_v23 = vld [vmem:[%s8566_s11 + $0x7b8] sm:$0xff] }
 0x4f2   : > { %6076 = vmatprep.mubr.bf16.mxu0 %v10320_v42  ;;  %6240 = vmatprep.mubr.bf16.mxu1 %v10320_v42  ;;  %v7291_v42 = vcombine.low %v2758_v47, %v2762_v27  ;;  %v2814_v47 = vld [vmem:[%s8566_s11 + $0x698] sm:$0xff]  ;;  %v2849_v40 = vld [vmem:[%s8566_s11 + $0x7b0] sm:$0xff] }
 0x4f3   : > { %v2818_v27 = vld [vmem:[%s8566_s11 + $0x6b8] sm:$0xff] }
 0x4f4   : > { %6047 = vmatpush1.bf16.msra.mxu0 %v7273_v58  ;;  %6211 = vmatpush1.bf16.msra.mxu1 %v7275_v43  ;;  %v7329_v58 = vcombine.low %v2797_v21, %v2801_v52  ;;  %v7331_v43 = vcombine.low %v2798_v62, %v2802_v1  ;;  %v2853_v21 = vld [vmem:[%s8566_s11 + $0x7d0] sm:$0xff]  ;;  %v2854_v62 = vld [vmem:[%s8566_s11 + $0x7d8] sm:$0xff] }
 0x4f5   : > { %6048 = vmatprep.subr.bf16.mxu0 %v7282_v48  ;;  %6212 = vmatprep.subr.bf16.mxu1 %v7284_v49  ;;  %v7338_v48 = vcombine.high %v2805_v31, %v2809_v6  ;;  %v7340_v49 = vcombine.high %v2806_v38, %v2810_v57  ;;  %v2857_v52 = vld [vmem:[%s8566_s11 + $0x7f0] sm:$0xff]  ;;  %v2858_v1 = vld [vmem:[%s8566_s11 + $0x7f8] sm:$0xff] }
 0x4f8   : > { %6049 = vmatpush1.bf16.msra.mxu0 %v7281_v54  ;;  %6213 = vmatpush1.bf16.msra.mxu1 %v7283_v4  ;;  %v7337_v54 = vcombine.low %v2805_v31, %v2809_v6  ;;  %v7339_v4 = vcombine.low %v2806_v38, %v2810_v57  ;;  %v2861_v31 = vld [vmem:[%s8566_s11 + $0x810] sm:$0xff]  ;;  %v2862_v38 = vld [vmem:[%s8566_s11 + $0x818] sm:$0xff] }
 0x4f9   : > { %6050 = vmatprep.subr.bf16.mxu0 %v7290_v5  ;;  %6214 = vmatprep.subr.bf16.mxu1 %v7292_v12  ;;  %v7346_v5 = vcombine.high %v2813_v29, %v2817_v46  ;;  %v7348_v12 = vcombine.high %v2814_v47, %v2818_v27  ;;  %v2865_v6 = vld [vmem:[%s8566_s11 + $0x830] sm:$0xff]  ;;  %v2866_v57 = vld [vmem:[%s8566_s11 + $0x838] sm:$0xff] }
 0x4fc   : > { %6051 = vmatpush1.bf16.msra.mxu0 %v7289_v63  ;;  %6215 = vmatpush1.bf16.msra.mxu1 %v7291_v42  ;;  %v7345_v63 = vcombine.low %v2813_v29, %v2817_v46  ;;  %v7347_v42 = vcombine.low %v2814_v47, %v2818_v27  ;;  %v2869_v29 = vld [vmem:[%s8566_s11 + $0x850] sm:$0xff]  ;;  %v2870_v47 = vld [vmem:[%s8566_s11 + $0x858] sm:$0xff] }
 0x4fd   : > { %6052 = vmatprep.subr.bf16.mxu0 %v7298_v10  ;;  %6216 = vmatprep.subr.bf16.mxu1 %v7300_v22  ;;  %v7354_v10 = vcombine.high %v2821_v2, %v2825_v61  ;;  %v7356_v22 = vcombine.high %v2822_v18, %v2826_v8  ;;  %v2873_v46 = vld [vmem:[%s8566_s11 + $0x870] sm:$0xff]  ;;  %v2874_v27 = vld [vmem:[%s8566_s11 + $0x878] sm:$0xff] }
 0x500   : > { %6053 = vmatpush1.bf16.msra.mxu0 %v7297_v13  ;;  %6217 = vmatpush1.bf16.msra.mxu1 %v7299_v17  ;;  %v7353_v13 = vcombine.low %v2821_v2, %v2825_v61  ;;  %v7355_v17 = vcombine.low %v2822_v18, %v2826_v8  ;;  %v2877_v2 = vld [vmem:[%s8566_s11 + $0x890] sm:$0xff]  ;;  %v2878_v18 = vld [vmem:[%s8566_s11 + $0x898] sm:$0xff] }
 0x501   : > { %6054 = vmatprep.subr.bf16.mxu0 %v7306_v60  ;;  %6218 = vmatprep.subr.bf16.mxu1 %v7308_v20  ;;  %v7362_v60 = vcombine.high %v2829_v56, %v2833_v33  ;;  %v7364_v20 = vcombine.high %v2830_v26, %v2834_v16  ;;  %v2881_v61 = vld [vmem:[%s8566_s11 + $0x8b0] sm:$0xff]  ;;  %v2882_v8 = vld [vmem:[%s8566_s11 + $0x8b8] sm:$0xff] }
 0x504   : > { %6055 = vmatpush1.bf16.msra.mxu0 %v7305_v50  ;;  %6219 = vmatpush1.bf16.msra.mxu1 %v7307_v3  ;;  %v7361_v50 = vcombine.low %v2829_v56, %v2833_v33  ;;  %v7363_v3 = vcombine.low %v2830_v26, %v2834_v16  ;;  %v2885_v56 = vld [vmem:[%s8566_s11 + $0x8d0] sm:$0xff]  ;;  %v2886_v26 = vld [vmem:[%s8566_s11 + $0x8d8] sm:$0xff] }
 0x505   : > { %6056 = vmatprep.subr.bf16.mxu0 %v7314_v28  ;;  %6220 = vmatprep.subr.bf16.mxu1 %v7316_v37  ;;  %v7370_v28 = vcombine.high %v2837_v36, %v2841_v35  ;;  %v7372_v37 = vcombine.high %v2838_v24, %v2842_v44  ;;  %v2889_v33 = vld [vmem:[%s8566_s11 + $0x8f0] sm:$0xff]  ;;  %v2890_v16 = vld [vmem:[%s8566_s11 + $0x8f8] sm:$0xff] }
 0x508   : > { %6057 = vmatpush1.bf16.msra.mxu0 %v7313_v53  ;;  %6221 = vmatpush1.bf16.msra.mxu1 %v7315_v45  ;;  %v7369_v53 = vcombine.low %v2837_v36, %v2841_v35  ;;  %v7371_v45 = vcombine.low %v2838_v24, %v2842_v44  ;;  %v2897_v36 = vld [vmem:[%s8566_s11 + $0x930] sm:$0xff]  ;;  %v2894_v35 = vld [vmem:[%s8566_s11 + $0x918] sm:$0xff]  ;;  %v7417_v44 = vcombine.low %v2885_v56, %v2889_v33 }
 0x509   : > { %6058 = vmatprep.subr.bf16.mxu0 %v7322_v19  ;;  %6222 = vmatprep.subr.bf16.mxu1 %v7324_v55  ;;  %v7378_v19 = vcombine.high %v2845_v15, %v2849_v40  ;;  %v7380_v55 = vcombine.high %v2846_v32, %v2850_v23  ;;  %v2898_v24 = vld [vmem:[%s8566_s11 + $0x938] sm:$0xff] }
 0x50c   : > { %6059 = vmatpush1.bf16.msra.mxu0 %v7321_v9  ;;  %6223 = vmatpush1.bf16.msra.mxu1 %v7323_v39  ;;  %v7377_v9 = vcombine.low %v2845_v15, %v2849_v40  ;;  %v7379_v39 = vcombine.low %v2846_v32, %v2850_v23  ;;  %v2902_v15 = vld [vmem:[%s8566_s11 + $0x958] sm:$0xff]  ;;  %v7427_v23 = vcombine.low %v2894_v35, %v2898_v24 }
 0x50d   : > { %6060 = vmatprep.subr.bf16.mxu0 %v7330_v30  ;;  %6224 = vmatprep.subr.bf16.mxu1 %v7332_v34  ;;  %v7386_v30 = vcombine.high %v2853_v21, %v2857_v52  ;;  %v7388_v34 = vcombine.high %v2854_v62, %v2858_v1  ;;  %v2906_v40 = vld [vmem:[%s8566_s11 + $0x978] sm:$0xff] }
 0x510   : > { %6061 = vmatpush1.bf16.msra.mxu0 %v7329_v58  ;;  %6225 = vmatpush1.bf16.msra.mxu1 %v7331_v43  ;;  %v7385_v58 = vcombine.low %v2853_v21, %v2857_v52  ;;  %v7387_v43 = vcombine.low %v2854_v62, %v2858_v1  ;;  %v2910_v21 = vld [vmem:[%s8566_s11 + $0x998] sm:$0xff]  ;;  %v7435_v1 = vcombine.low %v2902_v15, %v2906_v40 }
 0x511   : > { %6062 = vmatprep.subr.bf16.mxu0 %v7338_v48  ;;  %6226 = vmatprep.subr.bf16.mxu1 %v7340_v49  ;;  %v7394_v48 = vcombine.high %v2861_v31, %v2865_v6  ;;  %v7396_v49 = vcombine.high %v2862_v38, %v2866_v57  ;;  %v2914_v52 = vld [vmem:[%s8566_s11 + $0x9b8] sm:$0xff] }
 0x514   : > { %6063 = vmatpush1.bf16.msra.mxu0 %v7337_v54  ;;  %6227 = vmatpush1.bf16.msra.mxu1 %v7339_v4  ;;  %v7393_v54 = vcombine.low %v2861_v31, %v2865_v6  ;;  %v7395_v4 = vcombine.low %v2862_v38, %v2866_v57  ;;  %v2918_v31 = vld [vmem:[%s8566_s11 + $0x9d8] sm:$0xff]  ;;  %v7443_v57 = vcombine.low %v2910_v21, %v2914_v52 }
 0x515   : > { %6064 = vmatprep.subr.bf16.mxu0 %v7346_v5  ;;  %6228 = vmatprep.subr.bf16.mxu1 %v7348_v12  ;;  %v7402_v5 = vcombine.high %v2869_v29, %v2873_v46  ;;  %v7404_v12 = vcombine.high %v2870_v47, %v2874_v27  ;;  %v2922_v6 = vld [vmem:[%s8566_s11 + $0x9f8] sm:$0xff] }
 0x518   : > { %6065 = vmatpush1.bf16.msra.mxu0 %v7345_v63  ;;  %6229 = vmatpush1.bf16.msra.mxu1 %v7347_v42  ;;  %v7401_v63 = vcombine.low %v2869_v29, %v2873_v46  ;;  %v7403_v42 = vcombine.low %v2870_v47, %v2874_v27  ;;  %v2926_v29 = vld [vmem:[%s8566_s11 + $0xa18] sm:$0xff]  ;;  %v7451_v27 = vcombine.low %v2918_v31, %v2922_v6 }
 0x519   : > { %6066 = vmatprep.subr.bf16.mxu0 %v7354_v10  ;;  %6230 = vmatprep.subr.bf16.mxu1 %v7356_v22  ;;  %v7410_v10 = vcombine.high %v2877_v2, %v2881_v61  ;;  %v7412_v22 = vcombine.high %v2878_v18, %v2882_v8  ;;  %v2930_v46 = vld [vmem:[%s8566_s11 + $0xa38] sm:$0xff] }
 0x51c   : > { %6067 = vmatpush1.bf16.msra.mxu0 %v7353_v13  ;;  %6231 = vmatpush1.bf16.msra.mxu1 %v7355_v17  ;;  %v7411_v13 = vcombine.low %v2878_v18, %v2882_v8  ;;  %v7418_v17 = vcombine.high %v2885_v56, %v2889_v33  ;;  %v7459_v8 = vcombine.low %v2926_v29, %v2930_v46  ;;  %v2942_v56 = vld [vmem:[%s8566_s11 + $0xa98] sm:$0xff] }
 0x51d   : > { %6068 = vmatprep.subr.bf16.mxu0 %v7362_v60  ;;  %6232 = vmatprep.subr.bf16.mxu1 %v7364_v20  ;;  %v7420_v60 = vcombine.high %v2886_v26, %v2890_v16  ;;  %v2893_v20 = vld [vmem:[%s8566_s11 + $0x910] sm:$0xff]  ;;  %v2946_v33 = vld [vmem:[%s8566_s11 + $0xab8] sm:$0xff] }
 0x51e   : > { %v7425_v32 = vcombine.low %v2893_v20, %v2897_v36 }
 0x520   : > { %6069 = vmatpush1.bf16.msra.mxu0 %v7361_v50  ;;  %6233 = vmatpush1.bf16.msra.mxu1 %v7363_v3  ;;  %v7426_v50 = vcombine.high %v2893_v20, %v2897_v36  ;;  %v7428_v3 = vcombine.high %v2894_v35, %v2898_v24  ;;  %v2950_v20 = vld [vmem:[%s8566_s11 + $0xad8] sm:$0xff]  ;;  %v7475_v24 = vcombine.low %v2942_v56, %v2946_v33 }
 0x521   : > { %6070 = vmatprep.subr.bf16.mxu0 %v7370_v28  ;;  %6234 = vmatprep.subr.bf16.mxu1 %v7372_v37  ;;  %v2901_v28 = vld [vmem:[%s8566_s11 + $0x950] sm:$0xff]  ;;  %v2954_v36 = vld [vmem:[%s8566_s11 + $0xaf8] sm:$0xff] }
 0x522   : > { %v2905_v37 = vld [vmem:[%s8566_s11 + $0x970] sm:$0xff] }
 0x523   : > { %v7433_v62 = vcombine.low %v2901_v28, %v2905_v37 }
 0x524   : > { %6071 = vmatpush1.bf16.msra.mxu0 %v7369_v53  ;;  %6235 = vmatpush1.bf16.msra.mxu1 %v7371_v45  ;;  %v7434_v53 = vcombine.high %v2901_v28, %v2905_v37  ;;  %v7436_v45 = vcombine.high %v2902_v15, %v2906_v40  ;;  %v2958_v28 = vld [vmem:[%s8566_s11 + $0xb18] sm:$0xff]  ;;  %v7483_v40 = vcombine.low %v2950_v20, %v2954_v36 }
 0x525   : > { %6072 = vmatprep.subr.bf16.mxu0 %v7378_v19  ;;  %6236 = vmatprep.subr.bf16.mxu1 %v7380_v55  ;;  %v2909_v19 = vld [vmem:[%s8566_s11 + $0x990] sm:$0xff]  ;;  %v2962_v37 = vld [vmem:[%s8566_s11 + $0xb38] sm:$0xff] }
 0x526   : > { %v2913_v55 = vld [vmem:[%s8566_s11 + $0x9b0] sm:$0xff] }
 0x527   : > { %v7441_v38 = vcombine.low %v2909_v19, %v2913_v55 }
 0x528   : > { %6073 = vmatpush1.bf16.msra.mxu0 %v7377_v9  ;;  %6237 = vmatpush1.bf16.msra.mxu1 %v7379_v39  ;;  %v7442_v9 = vcombine.high %v2909_v19, %v2913_v55  ;;  %v7444_v39 = vcombine.high %v2910_v21, %v2914_v52  ;;  %v2966_v19 = vld [vmem:[%s8566_s11 + $0xb58] sm:$0xff]  ;;  %v7491_v52 = vcombine.low %v2958_v28, %v2962_v37 }
 0x529   : > { %6074 = vmatprep.subr.bf16.mxu0 %v7386_v30  ;;  %6238 = vmatprep.subr.bf16.mxu1 %v7388_v34  ;;  %v2917_v30 = vld [vmem:[%s8566_s11 + $0x9d0] sm:$0xff]  ;;  %v2970_v55 = vld [vmem:[%s8566_s11 + $0xb78] sm:$0xff] }
 0x52a   : > { %v2921_v34 = vld [vmem:[%s8566_s11 + $0x9f0] sm:$0xff] }
 0x52b   : > { %v7449_v47 = vcombine.low %v2917_v30, %v2921_v34 }
 0x52c   : > { %6075 = vmatpush1.bf16.msra.mxu0 %v7385_v58  ;;  %6239 = vmatpush1.bf16.msra.mxu1 %v7387_v43  ;;  %v7450_v58 = vcombine.high %v2917_v30, %v2921_v34  ;;  %v7452_v43 = vcombine.high %v2918_v31, %v2922_v6  ;;  %v2974_v30 = vld [vmem:[%s8566_s11 + $0xb98] sm:$0xff]  ;;  %v7499_v6 = vcombine.low %v2966_v19, %v2970_v55 }
 0x52d   : > { %6085 = vmatprep.subr.bf16.mxu0 %v7394_v48  ;;  %6249 = vmatprep.subr.bf16.mxu1 %v7396_v49  ;;  %v2925_v48 = vld [vmem:[%s8566_s11 + $0xa10] sm:$0xff]  ;;  %v2978_v34 = vld [vmem:[%s8566_s11 + $0xbb8] sm:$0xff] }
 0x52e   : > { %v2929_v49 = vld [vmem:[%s8566_s11 + $0xa30] sm:$0xff] }
 0x52f   : > { %6077 = vmatmul.mubr.bf16.vlgmr.msra.gmra.mrb[4].mxu0 %v10397_v7  ;;  %6241 = vmatmul.mubr.bf16.vlgmr.msra.gmra.mrb[4].mxu1 %v10397_v7  ;;  %v7409_v7 = vcombine.low %v2877_v2, %v2881_v61  ;;  %v2934_v2 = vld [vmem:[%s8566_s11 + $0xa58] sm:$0xff]  ;;  %v7457_v18 = vcombine.low %v2925_v48, %v2929_v49 }
 0x530   : > { %6086 = vmatpush1.bf16.msra.mxu0 %v7393_v54  ;;  %6250 = vmatpush1.bf16.msra.mxu1 %v7395_v4  ;;  %v7458_v54 = vcombine.high %v2925_v48, %v2929_v49  ;;  %v7460_v4 = vcombine.high %v2926_v29, %v2930_v46  ;;  %v2938_v61 = vld [vmem:[%s8566_s11 + $0xa78] sm:$0xff]  ;;  %v7507_v46 = vcombine.low %v2974_v30, %v2978_v34 }
 0x531   : > { %6087 = vmatprep.subr.bf16.mxu0 %v7402_v5  ;;  %6251 = vmatprep.subr.bf16.mxu1 %v7404_v12  ;;  %v2933_v5 = vld [vmem:[%s8566_s11 + $0xa50] sm:$0xff]  ;;  %v2982_v48 = vld [vmem:[%s8566_s11 + $0xbd8] sm:$0xff] }
 0x532   : > { %6117 = vmatprep.mubr.bf16.mxu0 %v10403_v0  ;;  %6281 = vmatprep.mubr.bf16.mxu1 %v10403_v0  ;;  %v7419_v0 = vcombine.low %v2886_v26, %v2890_v16  ;;  %v2937_v12 = vld [vmem:[%s8566_s11 + $0xa70] sm:$0xff]  ;;  %v7467_v16 = vcombine.low %v2934_v2, %v2938_v61  ;;  %v2986_v49 = vld [vmem:[%s8566_s11 + $0xbf8] sm:$0xff] }
 0x533   : > { %v7465_v26 = vcombine.low %v2933_v5, %v2937_v12 }
 0x534   : > { %6088 = vmatpush1.bf16.msra.mxu0 %v7401_v63  ;;  %6252 = vmatpush1.bf16.msra.mxu1 %v7403_v42  ;;  %v7466_v63 = vcombine.high %v2933_v5, %v2937_v12  ;;  %v7468_v42 = vcombine.high %v2934_v2, %v2938_v61  ;;  %v2990_v5 = vld [vmem:[%s8566_s11 + $0xc18] sm:$0xff]  ;;  %v7515_v61 = vcombine.low %v2982_v48, %v2986_v49 }
 0x535   : > { %6089 = vmatprep.subr.bf16.mxu0 %v7410_v10  ;;  %6253 = vmatprep.subr.bf16.mxu1 %v7412_v22  ;;  %v2941_v10 = vld [vmem:[%s8566_s11 + $0xa90] sm:$0xff]  ;;  %v2994_v12 = vld [vmem:[%s8566_s11 + $0xc38] sm:$0xff] }
 0x536   : > { %v2945_v22 = vld [vmem:[%s8566_s11 + $0xab0] sm:$0xff] }
 0x537   : > { %v7473_v35 = vcombine.low %v2941_v10, %v2945_v22 }
 0x538   : > { %6090 = vmatpush1.bf16.msra.mxu0 %v7409_v7  ;;  %6254 = vmatpush1.bf16.msra.mxu1 %v7411_v13  ;;  %v7474_v7 = vcombine.high %v2941_v10, %v2945_v22  ;;  %v7476_v13 = vcombine.high %v2942_v56, %v2946_v33  ;;  %v2998_v10 = vld [vmem:[%s8566_s11 + $0xc58] sm:$0xff]  ;;  %v7523_v33 = vcombine.low %v2990_v5, %v2994_v12 }
 0x539   : > { %6091 = vmatprep.subr.bf16.mxu0 %v7418_v17  ;;  %6255 = vmatprep.subr.bf16.mxu1 %v7420_v60  ;;  %v2949_v17 = vld [vmem:[%s8566_s11 + $0xad0] sm:$0xff]  ;;  %v3002_v22 = vld [vmem:[%s8566_s11 + $0xc78] sm:$0xff] }
 0x53a   : > { %v2953_v60 = vld [vmem:[%s8566_s11 + $0xaf0] sm:$0xff] }
 0x53b   : > { %v7481_v15 = vcombine.low %v2949_v17, %v2953_v60 }
 0x53c   : > { %6092 = vmatpush1.bf16.msra.mxu0 %v7417_v44  ;;  %6256 = vmatpush1.bf16.msra.mxu1 %v7419_v0  ;;  %v7482_v44 = vcombine.high %v2949_v17, %v2953_v60  ;;  %v7484_v0 = vcombine.high %v2950_v20, %v2954_v36  ;;  %v3006_v17 = vld [vmem:[%s8566_s11 + $0xc98] sm:$0xff]  ;;  %v7531_v36 = vcombine.low %v2998_v10, %v3002_v22 }
 0x53d   : > { %6093 = vmatprep.subr.bf16.mxu0 %v7426_v50  ;;  %6257 = vmatprep.subr.bf16.mxu1 %v7428_v3  ;;  %v2957_v50 = vld [vmem:[%s8566_s11 + $0xb10] sm:$0xff]  ;;  %v3010_v60 = vld [vmem:[%s8566_s11 + $0xcb8] sm:$0xff] }
 0x53e   : > { %v2961_v3 = vld [vmem:[%s8566_s11 + $0xb30] sm:$0xff] }
 0x53f   : > { %v7489_v21 = vcombine.low %v2957_v50, %v2961_v3 }
 0x540   : > { %6094 = vmatpush1.bf16.msra.mxu0 %v7425_v32  ;;  %6258 = vmatpush1.bf16.msra.mxu1 %v7427_v23  ;;  %v7490_v32 = vcombine.high %v2957_v50, %v2961_v3  ;;  %v7492_v23 = vcombine.high %v2958_v28, %v2962_v37  ;;  %v3014_v50 = vld [vmem:[%s8566_s11 + $0xcd8] sm:$0xff]  ;;  %v7539_v28 = vcombine.low %v3006_v17, %v3010_v60 }
 0x541   : > { %6095 = vmatprep.subr.bf16.mxu0 %v7434_v53  ;;  %6259 = vmatprep.subr.bf16.mxu1 %v7436_v45  ;;  %v2965_v53 = vld [vmem:[%s8566_s11 + $0xb50] sm:$0xff]  ;;  %v3018_v3 = vld [vmem:[%s8566_s11 + $0xcf8] sm:$0xff] }
 0x542   : > { %v2969_v45 = vld [vmem:[%s8566_s11 + $0xb70] sm:$0xff] }
 0x543   : > { %v7497_v31 = vcombine.low %v2965_v53, %v2969_v45 }
 0x544   : > { %6096 = vmatpush1.bf16.msra.mxu0 %v7433_v62  ;;  %6260 = vmatpush1.bf16.msra.mxu1 %v7435_v1  ;;  %v7498_v62 = vcombine.high %v2965_v53, %v2969_v45  ;;  %v7500_v1 = vcombine.high %v2966_v19, %v2970_v55  ;;  %v3026_v53 = vld [vmem:[%s8566_s11 + $0xd38] sm:$0xff] }
 0x545   : > { %6097 = vmatprep.subr.bf16.mxu0 %v7442_v9  ;;  %6261 = vmatprep.subr.bf16.mxu1 %v7444_v39  ;;  %v2973_v9 = vld [vmem:[%s8566_s11 + $0xb90] sm:$0xff] }
 0x546   : > { %v2977_v39 = vld [vmem:[%s8566_s11 + $0xbb0] sm:$0xff] }
 0x547   : > { %v7505_v29 = vcombine.low %v2973_v9, %v2977_v39 }
 0x548   : > { %6098 = vmatpush1.bf16.msra.mxu0 %v7441_v38  ;;  %6262 = vmatpush1.bf16.msra.mxu1 %v7443_v57  ;;  %v7506_v38 = vcombine.high %v2973_v9, %v2977_v39  ;;  %v7508_v57 = vcombine.high %v2974_v30, %v2978_v34 }
 0x549   : > { %6099 = vmatprep.subr.bf16.mxu0 %v7450_v58  ;;  %6263 = vmatprep.subr.bf16.mxu1 %v7452_v43  ;;  %v2981_v58 = vld [vmem:[%s8566_s11 + $0xbd0] sm:$0xff] }
 0x54a   : > { %v2985_v43 = vld [vmem:[%s8566_s11 + $0xbf0] sm:$0xff] }
 0x54b   : > { %v7513_v2 = vcombine.low %v2981_v58, %v2985_v43 }
 0x54c   : > { %6100 = vmatpush1.bf16.msra.mxu0 %v7449_v47  ;;  %6264 = vmatpush1.bf16.msra.mxu1 %v7451_v27  ;;  %v7514_v47 = vcombine.high %v2981_v58, %v2985_v43  ;;  %v7516_v27 = vcombine.high %v2982_v48, %v2986_v49 }
 0x54d   : > { %6101 = vmatprep.subr.bf16.mxu0 %v7458_v54  ;;  %6265 = vmatprep.subr.bf16.mxu1 %v7460_v4  ;;  %v2989_v54 = vld [vmem:[%s8566_s11 + $0xc10] sm:$0xff] }
 0x54e   : > { %v2993_v4 = vld [vmem:[%s8566_s11 + $0xc30] sm:$0xff] }
 0x54f   : > { %v7521_v56 = vcombine.low %v2989_v54, %v2993_v4 }
 0x550   : > { %6102 = vmatpush1.bf16.msra.mxu0 %v7457_v18  ;;  %6266 = vmatpush1.bf16.msra.mxu1 %v7459_v8  ;;  %v7522_v18 = vcombine.high %v2989_v54, %v2993_v4  ;;  %v7524_v8 = vcombine.high %v2990_v5, %v2994_v12  ;;  %v3046_v4 = vld [vmem:[%s8566_s11 + $0xdd8] sm:$0xff] }
 0x551   : > { %6103 = vmatprep.subr.bf16.mxu0 %v7466_v63  ;;  %6267 = vmatprep.subr.bf16.mxu1 %v7468_v42  ;;  %v2997_v63 = vld [vmem:[%s8566_s11 + $0xc50] sm:$0xff]  ;;  %v3050_v5 = vld [vmem:[%s8566_s11 + $0xdf8] sm:$0xff] }
 0x552   : > { %v3001_v42 = vld [vmem:[%s8566_s11 + $0xc70] sm:$0xff] }
 0x553   : > { %v7529_v20 = vcombine.low %v2997_v63, %v3001_v42 }
 0x554   : > { %6104 = vmatpush1.bf16.msra.mxu0 %v7465_v26  ;;  %6268 = vmatpush1.bf16.msra.mxu1 %v7467_v16  ;;  %v7530_v26 = vcombine.high %v2997_v63, %v3001_v42  ;;  %v7532_v16 = vcombine.high %v2998_v10, %v3002_v22 }
 0x555   : > { %6105 = vmatprep.subr.bf16.mxu0 %v7474_v7  ;;  %6269 = vmatprep.subr.bf16.mxu1 %v7476_v13  ;;  %v3005_v7 = vld [vmem:[%s8566_s11 + $0xc90] sm:$0xff] }
 0x556   : > { %v3009_v13 = vld [vmem:[%s8566_s11 + $0xcb0] sm:$0xff] }
 0x558   : > { %6106 = vmatpush1.bf16.msra.mxu0 %v7473_v35  ;;  %6270 = vmatpush1.bf16.msra.mxu1 %v7475_v24  ;;  %v7538_v35 = vcombine.high %v3005_v7, %v3009_v13  ;;  %v7540_v24 = vcombine.high %v3006_v17, %v3010_v60  ;;  %v3054_v17 = vld [vmem:[%s8566_s11 + $0xe18] sm:$0xff] }
 0x559   : > { %6107 = vmatprep.subr.bf16.mxu0 %v7482_v44  ;;  %6271 = vmatprep.subr.bf16.mxu1 %v7484_v0  ;;  %v3013_v44 = vld [vmem:[%s8566_s11 + $0xcd0] sm:$0xff]  ;;  %v3058_v60 = vld [vmem:[%s8566_s11 + $0xe38] sm:$0xff] }
 0x55a   : > { %v3017_v0 = vld [vmem:[%s8566_s11 + $0xcf0] sm:$0xff] }
 0x55b   : > { %v7546_v37 = vcombine.high %v3013_v44, %v3017_v0  ;;  %v7545_v45 = vcombine.low %v3013_v44, %v3017_v0  ;;  %v7588_v0 = vcombine.high %v3054_v17, %v3058_v60 }
 0x55c   : > { %6108 = vmatpush1.bf16.msra.mxu0 %v7481_v15  ;;  %6272 = vmatpush1.bf16.msra.mxu1 %v7483_v40  ;;  %v7548_v15 = vcombine.high %v3014_v50, %v3018_v3  ;;  %v3021_v40 = vld [vmem:[%s8566_s11 + $0xd10] sm:$0xff] }
 0x55d   : > { %6109 = vmatprep.subr.bf16.mxu0 %v7490_v32  ;;  %6273 = vmatprep.subr.bf16.mxu1 %v7492_v23  ;;  %v3025_v32 = vld [vmem:[%s8566_s11 + $0xd30] sm:$0xff]  ;;  %v3022_v23 = vld [vmem:[%s8566_s11 + $0xd18] sm:$0xff] }
 0x55e   : > { %v7554_v19 = vcombine.high %v3021_v40, %v3025_v32  ;;  %v7556_v55 = vcombine.high %v3022_v23, %v3026_v53  ;;  %v7553_v9 = vcombine.low %v3021_v40, %v3025_v32  ;;  %v7555_v39 = vcombine.low %v3022_v23, %v3026_v53  ;;  %v3069_v53 = vld [vmem:[%s8566_s11 + $0xe90] sm:$0xff] }
 0x55f   : > { %v7587_v40 = vcombine.low %v3054_v17, %v3058_v60  ;;  %v3114_v17 = vld [vmem:[%s8566_s11 + $0xff8] sm:$0xff] }
 0x560   : > { %6110 = vmatpush1.bf16.msra.mxu0 %v7489_v21  ;;  %6274 = vmatpush1.bf16.msra.mxu1 %v7491_v52  ;;  %v3029_v21 = vld [vmem:[%s8566_s11 + $0xd50] sm:$0xff] }
 0x561   : > { %6111 = vmatprep.subr.bf16.mxu0 %v7498_v62  ;;  %6275 = vmatprep.subr.bf16.mxu1 %v7500_v1  ;;  %v3033_v52 = vld [vmem:[%s8566_s11 + $0xd70] sm:$0xff]  ;;  %v3030_v62 = vld [vmem:[%s8566_s11 + $0xd58] sm:$0xff] }
 0x562   : > { %v3034_v1 = vld [vmem:[%s8566_s11 + $0xd78] sm:$0xff]  ;;  %v7562_v30 = vcombine.high %v3029_v21, %v3033_v52  ;;  %v7561_v58 = vcombine.low %v3029_v21, %v3033_v52 }
 0x563   : > { %v7564_v34 = vcombine.high %v3030_v62, %v3034_v1  ;;  %v7563_v43 = vcombine.low %v3030_v62, %v3034_v1  ;;  %v3077_v1 = vld [vmem:[%s8566_s11 + $0xed0] sm:$0xff] }
 0x564   : > { %6112 = vmatpush1.bf16.msra.mxu0 %v7497_v31  ;;  %6276 = vmatpush1.bf16.msra.mxu1 %v7499_v6  ;;  %v3037_v31 = vld [vmem:[%s8566_s11 + $0xd90] sm:$0xff] }
 0x565   : > { %6113 = vmatprep.subr.bf16.mxu0 %v7506_v38  ;;  %6277 = vmatprep.subr.bf16.mxu1 %v7508_v57  ;;  %v3041_v6 = vld [vmem:[%s8566_s11 + $0xdb0] sm:$0xff]  ;;  %v3038_v38 = vld [vmem:[%s8566_s11 + $0xd98] sm:$0xff] }
 0x566   : > { %v3042_v57 = vld [vmem:[%s8566_s11 + $0xdb8] sm:$0xff]  ;;  %v7570_v48 = vcombine.high %v3037_v31, %v3041_v6 }
 0x567   : > { %v7571_v10 = vcombine.low %v3038_v38, %v3042_v57 }
 0x568   : > { %6114 = vmatpush1.bf16.msra.mxu0 %v7505_v29  ;;  %6278 = vmatpush1.bf16.msra.mxu1 %v7507_v46  ;;  %v7572_v29 = vcombine.high %v3038_v38, %v3042_v57  ;;  %v3045_v46 = vld [vmem:[%s8566_s11 + $0xdd0] sm:$0xff] }
 0x569   : > { %6115 = vmatprep.subr.bf16.mxu0 %v7514_v47  ;;  %6279 = vmatprep.subr.bf16.mxu1 %v7516_v27  ;;  %v3049_v47 = vld [vmem:[%s8566_s11 + $0xdf0] sm:$0xff] }
 0x56a   : > { %v7578_v22 = vcombine.high %v3045_v46, %v3049_v47  ;;  %v3085_v57 = vld [vmem:[%s8566_s11 + $0xf10] sm:$0xff] }
 0x56c   : > { %6116 = vmatpush1.bf16.msra.mxu0 %v7513_v2  ;;  %6280 = vmatpush1.bf16.msra.mxu1 %v7515_v61 }
 0x56d   : > { %6126 = vmatprep.subr.bf16.mxu0 %v7522_v18  ;;  %6290 = vmatprep.subr.bf16.mxu1 %v7524_v8  ;;  %v7569_v18 = vcombine.low %v3037_v31, %v3041_v6 }
 0x56f   : > { %6118 = vmatmul.mubr.bf16.vlgmr.msra.gmra.mrb[4].mxu0 %v10478_v14  ;;  %6282 = vmatmul.mubr.bf16.vlgmr.msra.gmra.mrb[4].mxu1 %v10478_v14  ;;  %v7537_v14 = vcombine.low %v3005_v7, %v3009_v13  ;;  %v3057_v7 = vld [vmem:[%s8566_s11 + $0xe30] sm:$0xff] }
 0x570   : > { %6127 = vmatpush1.bf16.msra.mxu0 %v7521_v56  ;;  %6291 = vmatpush1.bf16.msra.mxu1 %v7523_v33 }
 0x571   : > { %6128 = vmatprep.subr.bf16.mxu0 %v7530_v26  ;;  %6292 = vmatprep.subr.bf16.mxu1 %v7532_v16  ;;  %v7580_v26 = vcombine.high %v3046_v4, %v3050_v5  ;;  %v3053_v16 = vld [vmem:[%s8566_s11 + $0xe10] sm:$0xff] }
 0x572   : > { %6158 = vmatprep.mubr.bf16.mxu0 %v10484_v11  ;;  %6322 = vmatprep.mubr.bf16.mxu1 %v10484_v11  ;;  %v7547_v11 = vcombine.low %v3014_v50, %v3018_v3  ;;  %v7586_v44 = vcombine.high %v3053_v16, %v3057_v7  ;;  %v3061_v50 = vld [vmem:[%s8566_s11 + $0xe50] sm:$0xff] }
 0x573   : > { %v3065_v3 = vld [vmem:[%s8566_s11 + $0xe70] sm:$0xff] }
 0x574   : > { %6129 = vmatpush1.bf16.msra.mxu0 %v7529_v20  ;;  %6293 = vmatpush1.bf16.msra.mxu1 %v7531_v36  ;;  %v2601_v20 = vld [vmem:[#allocation3] sm:$0xff]  ;;  %v7577_v36 = vcombine.low %v3045_v46, %v3049_v47  ;;  %v7594_v32 = vcombine.high %v3061_v50, %v3065_v3 }
 0x575   : > { %6130 = vmatprep.subr.bf16.mxu0 %v7538_v35  ;;  %6294 = vmatprep.subr.bf16.mxu1 %v7540_v24  ;;  %v7579_v24 = vcombine.low %v3046_v4, %v3050_v5  ;;  %v3094_v4 = vld [vmem:[%s8566_s11 + $0xf58] sm:$0xff] }
 0x576   : > { %v3098_v5 = vld [vmem:[%s8566_s11 + $0xf78] sm:$0xff] }
 0x578   : > { %6131 = vmatpush1.bf16.msra.mxu0 %v7537_v14  ;;  %6295 = vmatpush1.bf16.msra.mxu1 %v7539_v28  ;;  %v3062_v28 = vld [vmem:[%s8566_s11 + $0xe58] sm:$0xff] }
 0x579   : > { %6132 = vmatprep.subr.bf16.mxu0 %v7546_v37  ;;  %6296 = vmatprep.subr.bf16.mxu1 %v7548_v15  ;;  %v3066_v37 = vld [vmem:[%s8566_s11 + $0xe78] sm:$0xff]  ;;  %v7585_v15 = vcombine.low %v3053_v16, %v3057_v7  ;;  %v3109_v16 = vld [vmem:[%s8566_s11 + $0xfd0] sm:$0xff] }
 0x57a   : > { %v7596_v23 = vcombine.high %v3062_v28, %v3066_v37  ;;  %v7595_v21 = vcombine.low %v3062_v28, %v3066_v37  ;;  %v3113_v7 = vld [vmem:[%s8566_s11 + $0xff0] sm:$0xff] }
 0x57c   : > { %6133 = vmatpush1.bf16.msra.mxu0 %v7545_v45  ;;  %6297 = vmatpush1.bf16.msra.mxu1 %v7547_v11  ;;  %v3073_v45 = vld [vmem:[%s8566_s11 + $0xeb0] sm:$0xff]  ;;  %v3070_v11 = vld [vmem:[%s8566_s11 + $0xe98] sm:$0xff] }
 0x57d   : > { %6134 = vmatprep.subr.bf16.mxu0 %v7554_v19  ;;  %6298 = vmatprep.subr.bf16.mxu1 %v7556_v55  ;;  %v3074_v19 = vld [vmem:[%s8566_s11 + $0xeb8] sm:$0xff]  ;;  %v7593_v55 = vcombine.low %v3061_v50, %v3065_v3  ;;  %v7602_v52 = vcombine.high %v3069_v53, %v3073_v45 }
 0x57e   : > { %v7604_v62 = vcombine.high %v3070_v11, %v3074_v19  ;;  %v7603_v31 = vcombine.low %v3070_v11, %v3074_v19  ;;  %v2602_v11 = vld [vmem:[#allocation3 + $0x8] sm:$0xff] }
 0x580   : > { %6135 = vmatpush1.bf16.msra.mxu0 %v7553_v9  ;;  %6299 = vmatpush1.bf16.msra.mxu1 %v7555_v39  ;;  %v3081_v9 = vld [vmem:[%s8566_s11 + $0xef0] sm:$0xff]  ;;  %v3078_v39 = vld [vmem:[%s8566_s11 + $0xed8] sm:$0xff] }
 0x581   : > { %6136 = vmatprep.subr.bf16.mxu0 %v7562_v30  ;;  %6300 = vmatprep.subr.bf16.mxu1 %v7564_v34  ;;  %v3082_v30 = vld [vmem:[%s8566_s11 + $0xef8] sm:$0xff]  ;;  %v7601_v34 = vcombine.low %v3069_v53, %v3073_v45  ;;  %v7610_v6 = vcombine.high %v3077_v1, %v3081_v9 }
 0x582   : > { %v5832_v49 = vpop.f32.mrb[0].mxu0  ;;  %v5996_v27 = vpop.f32.mrb[0].mxu1  ;;  %v7612_v38 = vcombine.high %v3078_v39, %v3082_v30 }
 0x583   : > { %v5834_v54 = vpop.f32.mrb[1].mxu0  ;;  %v5998_v2 = vpop.f32.mrb[1].mxu1 }
 0x584   : > { %v6339_v12 = vcombine.low %v5832_v49, %v5834_v54  ;;  %v5836_v61 = vpop.f32.mrb[2].mxu0  ;;  %6137 = vmatpush1.bf16.msra.mxu0 %v7561_v58  ;;  %v6340_v8 = vcombine.low %v5996_v27, %v5998_v2  ;;  %v6000_v63 = vpop.f32.mrb[2].mxu1  ;;  %6301 = vmatpush1.bf16.msra.mxu1 %v7563_v43  ;;  %v3089_v58 = vld [vmem:[%s8566_s11 + $0xf30] sm:$0xff]  ;;  %v3086_v43 = vld [vmem:[%s8566_s11 + $0xf18] sm:$0xff]  ;;  %v7609_v49 = vcombine.low %v3077_v1, %v3081_v9  ;;  %v6460_v1 = vld [vmem:[%s11266_s6 + $0x8] sm:$0xff] (!%p7645_p5) }
 0x585   : > { %v5837_v42 = vpop.f32.mrb[3].mxu0  ;;  %6138 = vmatprep.subr.bf16.mxu0 %v7570_v48  ;;  %v6001_v33 = vpop.f32.mrb[3].mxu1  ;;  %6302 = vmatprep.subr.bf16.mxu1 %v7572_v29  ;;  %v3090_v48 = vld [vmem:[%s8566_s11 + $0xf38] sm:$0xff]  ;;  %v7611_v29 = vcombine.low %v3078_v39, %v3082_v30  ;;  %v7618_v46 = vcombine.high %v3085_v57, %v3089_v58  ;;  %v3093_v27 = vld [vmem:[%s8566_s11 + $0xf50] sm:$0xff]  ;;  %v6507_v9 = vld [vmem:[%s11266_s6 + $0x180] sm:$0xff] (!%p7645_p5) }
 0x586   : > { %v6347_v56 = vrot.slane %v6339_v12, %v10244_v59  ;;  %v6354_v13 = vrot.slane %v6340_v8, %v10244_v59  ;;  %v7620_v47 = vcombine.high %v3086_v43, %v3090_v48  ;;  %v3097_v54 = vld [vmem:[%s8566_s11 + $0xf70] sm:$0xff]  ;;  %v7617_v12 = vcombine.low %v3085_v57, %v3089_v58  ;;  %v3102_v42 = vld [vmem:[%s8566_s11 + $0xf98] sm:$0xff]  ;;  %v6508_v39 = vld [vmem:[%s11266_s6 + $0x188] sm:$0xff] (!%p7645_p5) }
 0x587   : > { %v7619_v2 = vcombine.low %v3086_v43, %v3090_v48  ;;  %v7626_v61 = vcombine.high %v3093_v27, %v3097_v54  ;;  %v3101_v8 = vld [vmem:[%s8566_s11 + $0xf90] sm:$0xff]  ;;  %v6478_v58 = vld [vmem:[%s11266_s6 + $0x98] sm:$0xff] (!%p7645_p5) }
 0x588   : > { %6139 = vmatpush1.bf16.msra.mxu0 %v7569_v18  ;;  %v6355_v35 = vcombine.low %v6347_v56, %v6354_v13  ;;  %6303 = vmatpush1.bf16.msra.mxu1 %v7571_v10  ;;  %v7628_v18 = vcombine.high %v3094_v4, %v3098_v5  ;;  %v3105_v63 = vld [vmem:[%s8566_s11 + $0xfb0] sm:$0xff]  ;;  %v3106_v10 = vld [vmem:[%s8566_s11 + $0xfb8] sm:$0xff]  ;;  %v7627_v56 = vcombine.low %v3094_v4, %v3098_v5  ;;  %v6479_v5 = vld [vmem:[%s11266_s6 + $0xa0] sm:$0xff] (!%p7645_p5) }
 0x589   : > { %6140 = vmatprep.subr.bf16.mxu0 %v7578_v22  ;;  %6304 = vmatprep.subr.bf16.mxu1 %v7580_v26  ;;  %v7625_v22 = vcombine.low %v3093_v27, %v3097_v54  ;;  %v7634_v33 = vcombine.high %v3101_v8, %v3105_v63  ;;  %v7636_v26 = vcombine.high %v3102_v42, %v3106_v10  ;;  %v3110_v13 = vld [vmem:[%s8566_s11 + $0xfd8] sm:$0xff]  ;;  %v6461_v43 = vld [vmem:[%s11266_s6 + $0x10] sm:$0xff] (!%p7645_p5) }
 0x58a   : > { %v6375_v14 = vadd.f32 %v6355_v35, %v2601_v20  ;;  %v7633_v60 = vcombine.low %v3101_v8, %v3105_v63  ;;  %v7635_v20 = vcombine.low %v3102_v42, %v3106_v10  ;;  %v7644_v35 = vcombine.high %v3110_v13, %v3114_v17  ;;  %v6462_v48 = vld [vmem:[%s11266_s6 + $0x18] sm:$0xff] (!%p7645_p5)  ;;  %v6493_v27 = vld [vmem:[%s11266_s6 + $0x110] sm:$0xff] (!%p7645_p5)  ;;  %v6464_v8 = vld [vmem:[%s11266_s6 + $0x28] sm:$0xff] (!%p7645_p5) }
 0x58b   : > { %v6494_v4 = vld [vmem:[%s11266_s6 + $0x118] sm:$0xff] (!%p7645_p5)  ;;  %v6511_v63 = vld [vmem:[%s11266_s6 + $0x1a0] sm:$0xff] (!%p7645_p5)  ;;  %v6512_v42 = vld [vmem:[%s11266_s6 + $0x1a8] sm:$0xff] (!%p7645_p5) }
 0x58c   : > { %6141 = vmatpush1.bf16.msra.mxu0 %v7577_v36  ;;  %6377 = vst [vmem:[#allocation3] sm:$0xff] %v6375_v14  ;;  %6305 = vmatpush1.bf16.msra.mxu1 %v7579_v24  ;;  %v7642_v36 = vcombine.high %v3109_v16, %v3113_v7  ;;  %v7641_v24 = vcombine.low %v3109_v16, %v3113_v7  ;;  %v6495_v10 = vld [vmem:[%s11266_s6 + $0x120] sm:$0xff] (!%p7645_p5)  ;;  %v6482_v16 = vld [vmem:[%s11266_s6 + $0xb8] sm:$0xff] (!%p7645_p5)  ;;  %v6465_v7 = vld [vmem:[%s11266_s6 + $0x30] sm:$0xff] (!%p7645_p5) }
 0x58d   : > { %6142 = vmatprep.subr.bf16.mxu0 %v7586_v44  ;;  %6306 = vmatprep.subr.bf16.mxu1 %v7588_v0  ;;  %v7643_v44 = vcombine.low %v3110_v13, %v3114_v17 }
 0x590   : > { %6143 = vmatpush1.bf16.msra.mxu0 %v7585_v15  ;;  %6307 = vmatpush1.bf16.msra.mxu1 %v7587_v40 }
 0x591   : > { %6144 = vmatprep.subr.bf16.mxu0 %v7594_v32  ;;  %6308 = vmatprep.subr.bf16.mxu1 %v7596_v23 }
 0x594   : > { %6145 = vmatpush1.bf16.msra.mxu0 %v7593_v55  ;;  %6309 = vmatpush1.bf16.msra.mxu1 %v7595_v21  ;;  %v6476_v21 = vld [vmem:[%s11266_s6 + $0x88] sm:$0xff] (!%p7645_p5) }
 0x595   : > { %6146 = vmatprep.subr.bf16.mxu0 %v7602_v52  ;;  %6310 = vmatprep.subr.bf16.mxu1 %v7604_v62  ;;  %v6459_v52 = vld [vmem:[%s11266_s6] sm:$0xff] (!%p7645_p5) }
 0x596   : > { %v8109_v30 = vpack.c.bf16 (!%p7645_p5), %v6460_v1, %v6459_v52  ;;  %v6469_v1 = vld [vmem:[%s11266_s6 + $0x50] sm:$0xff] (!%p7645_p5) }
 0x598   : > { %6147 = vmatpush1.bf16.msra.mxu0 %v7601_v34  ;;  %6311 = vmatpush1.bf16.msra.mxu1 %v7603_v31  ;;  %v8139_v34 = vpack.c.bf16 (!%p7645_p5), %v6508_v39, %v6507_v9  ;;  %v6491_v31 = vld [vmem:[%s11266_s6 + $0x100] sm:$0xff] (!%p7645_p5)  ;;  %v6470_v9 = vld [vmem:[%s11266_s6 + $0x58] sm:$0xff] (!%p7645_p5)  ;;  %v6501_v39 = vld [vmem:[%s11266_s6 + $0x150] sm:$0xff] (!%p7645_p5) }
 0x599   : > { %6148 = vmatprep.subr.bf16.mxu0 %v7610_v6  ;;  %6312 = vmatprep.subr.bf16.mxu1 %v7612_v38  ;;  %v6492_v6 = vld [vmem:[%s11266_s6 + $0x108] sm:$0xff] (!%p7645_p5)  ;;  %v6477_v38 = vld [vmem:[%s11266_s6 + $0x90] sm:$0xff] (!%p7645_p5) }
 0x59a   : > { %v8141_v57 = vpack.c.bf16 (!%p7645_p5), %v6492_v6, %v6491_v31  ;;  %v6487_v31 = vld [vmem:[%s11266_s6 + $0xe0] sm:$0xff] (!%p7645_p5)  ;;  %v6488_v6 = vld [vmem:[%s11266_s6 + $0xe8] sm:$0xff] (!%p7645_p5) }
 0x59c   : > { %6149 = vmatpush1.bf16.msra.mxu0 %v7609_v49  ;;  %6313 = vmatpush1.bf16.msra.mxu1 %v7611_v29  ;;  %v8111_v49 = vpack.c.bf16 (!%p7645_p5), %v6478_v58, %v6477_v38  ;;  %v8113_v29 = vpack.c.bf16 (!%p7645_p5), %v6462_v48, %v6461_v43  ;;  %v6389_v38 = vsub.s32 (!%p7645_p5), 0, %v10236_v51  ;;  %v6397_v58 = vsub.s32 (!%p7645_p5), 2, %v10236_v51  ;;  %v6519_v43 = vld [vmem:[%s11266_s6 + $0x1e0] sm:$0xff] (!%p7645_p5)  ;;  %v6520_v48 = vld [vmem:[%s11266_s6 + $0x1e8] sm:$0xff] (!%p7645_p5) }
 0x59d   : > { %6150 = vmatprep.subr.bf16.mxu0 %v7618_v46  ;;  %6314 = vmatprep.subr.bf16.mxu1 %v7620_v47  ;;  %v6509_v46 = vld [vmem:[%s11266_s6 + $0x190] sm:$0xff] (!%p7645_p5)  ;;  %v6510_v47 = vld [vmem:[%s11266_s6 + $0x198] sm:$0xff] (!%p7645_p5) }
 0x59e   : > { %v8143_v54 = vpack.c.bf16 (!%p7645_p5), %v6510_v47, %v6509_v46  ;;  %v6471_v46 = vld [vmem:[%s11266_s6 + $0x60] sm:$0xff] (!%p7645_p5) }
 0x5a0   : > { %6151 = vmatpush1.bf16.msra.mxu0 %v7617_v12  ;;  %6315 = vmatpush1.bf16.msra.mxu1 %v7619_v2  ;;  %v6480_v12 = vld [vmem:[%s11266_s6 + $0xa8] sm:$0xff] (!%p7645_p5)  ;;  %v8145_v2 = vpack.c.bf16 (!%p7645_p5), %v6494_v4, %v6493_v27  ;;  %v8131_v27 = vpack.c.bf16 (!%p7645_p5), %v6488_v6, %v6487_v31  ;;  %v6503_v4 = vld [vmem:[%s11266_s6 + $0x160] sm:$0xff] (!%p7645_p5)  ;;  %v6541_v6 = vld [vmem:[%s11266_s6 + $0x290] sm:$0xff] (!%p7645_p5) }
 0x5a1   : > { %6152 = vmatprep.subr.bf16.mxu0 %v7626_v61  ;;  %6316 = vmatprep.subr.bf16.mxu1 %v7628_v18  ;;  %v8115_v61 = vpack.c.bf16 (!%p7645_p5), %v6480_v12, %v6479_v5  ;;  %v6463_v18 = vld [vmem:[%s11266_s6 + $0x20] sm:$0xff] (!%p7645_p5)  ;;  %v8163_v12 = vpack.c.bf16 (!%p7645_p5), %v6520_v48, %v6519_v43 }
 0x5a2   : > { %v6385_v5 = vld [vmem:[%s11265_s5] sm:$0xff] (!%p7645_p5) }
 0x5a4   : > { %6153 = vmatpush1.bf16.msra.mxu0 %v7625_v22  ;;  %6317 = vmatpush1.bf16.msra.mxu1 %v7627_v56  ;;  %v6496_v22 = vld [vmem:[%s11266_s6 + $0x128] sm:$0xff] (!%p7645_p5)  ;;  %v8117_v56 = vpack.c.bf16 (!%p7645_p5), %v6464_v8, %v6463_v18  ;;  %v6490_v18 = vld [vmem:[%s11266_s6 + $0xf8] sm:$0xff] (!%p7645_p5)  ;;  %v6390_v8 = vrot.slane (!%p7645_p5), %v6385_v5, %v6389_v38 }
 0x5a5   : > { %6154 = vmatprep.subr.bf16.mxu0 %v7634_v33  ;;  %6318 = vmatprep.subr.bf16.mxu1 %v7636_v26  ;;  %v8147_v33 = vpack.c.bf16 (!%p7645_p5), %v6512_v42, %v6511_v63  ;;  %v6481_v26 = vld [vmem:[%s11266_s6 + $0xb0] sm:$0xff] (!%p7645_p5)  ;;  %v8149_v13 = vpack.c.bf16 (!%p7645_p5), %v6496_v22, %v6495_v10  ;;  %v6398_v42 = vrot.slane (!%p7645_p5), %v6385_v5, %v6397_v58  ;;  %v6522_v22 = vld [vmem:[%s11266_s6 + $0x1f8] sm:$0xff] (!%p7645_p5)  ;;  %v6556_v58 = vld [vmem:[%s11266_s6 + $0x308] sm:$0xff] (!%p7645_p5) }
 0x5a6   : > { %v8119_v17 = vpack.c.bf16 (!%p7645_p5), %v6482_v16, %v6481_v26  ;;  %v6521_v10 = vld [vmem:[%s11266_s6 + $0x1f0] sm:$0xff] (!%p7645_p5)  ;;  %v6409_v26 = vsub.s32 (!%p7645_p5), 5, %v10236_v51  ;;  %v6542_v38 = vld [vmem:[%s11266_s6 + $0x298] sm:$0xff] (!%p7645_p5) }
 0x5a8   : > { %6155 = vmatpush1.bf16.msra.mxu0 %v7633_v60  ;;  %6319 = vmatpush1.bf16.msra.mxu1 %v7635_v20  ;;  %v6466_v60 = vld [vmem:[%s11266_s6 + $0x38] sm:$0xff] (!%p7645_p5)  ;;  %v6513_v20 = vld [vmem:[%s11266_s6 + $0x1b0] sm:$0xff] (!%p7645_p5) }
 0x5a9   : > { %6156 = vmatprep.subr.bf16.mxu0 %v7642_v36  ;;  %6320 = vmatprep.subr.bf16.mxu1 %v7644_v35  ;;  %v6514_v36 = vld [vmem:[%s11266_s6 + $0x1b8] sm:$0xff] (!%p7645_p5) }
 0x5aa   : > { %v8151_v35 = vpack.c.bf16 (!%p7645_p5), %v6514_v36, %v6513_v20  ;;  %v6417_v20 = vsub.s32 (!%p7645_p5), 7, %v10236_v51 }
 0x5ac   : > { %6157 = vmatpush1.bf16.msra.mxu0 %v7641_v24  ;;  %6321 = vmatpush1.bf16.msra.mxu1 %v7643_v44  ;;  %v6497_v24 = vld [vmem:[%s11266_s6 + $0x130] sm:$0xff] (!%p7645_p5)  ;;  %v6498_v44 = vld [vmem:[%s11266_s6 + $0x138] sm:$0xff] (!%p7645_p5) }
 0x5ad   : > { %8140 = vmatprep.subr.bf16.mxu1 (!%p7645_p5), %v8139_v34  ;;  %v6502_v34 = vld [vmem:[%s11266_s6 + $0x158] sm:$0xff] (!%p7645_p5) }
 0x5ae   : > { %v8161_v47 = vpack.c.bf16 (!%p7645_p5), %v6502_v34, %v6501_v39  ;;  %v6523_v39 = vld [vmem:[%s11266_s6 + $0x200] sm:$0xff] (!%p7645_p5) }
 0x5af   : > { %6159 = vmatmul.mubr.bf16.vlgmr.msra.gmra.mrb[4].mxu0 %v10552_v25  ;;  %6323 = vmatmul.mubr.bf16.vlgmr.msra.gmra.mrb[4].mxu1 %v10552_v25  ;;  %v6475_v25 = vld [vmem:[%s11266_s6 + $0x80] sm:$0xff] (!%p7645_p5) }
 0x5b0   : > { %v8107_v62 = vpack.c.bf16 (!%p7645_p5), %v6476_v21, %v6475_v25  ;;  %8142 = vmatpush3.bf16.msra.mxu1 (!%p7645_p5), %v8141_v57  ;;  %v6518_v25 = vld [vmem:[%s11266_s6 + $0x1d8] sm:$0xff] (!%p7645_p5)  ;;  %v6393_v57 = vsub.s32 (!%p7645_p5), 1, %v10236_v51 }
 0x5b1   : > { %8144 = vmatprep.subr.bf16.mxu1 (!%p7645_p5), %v8143_v54  ;;  %v6472_v54 = vld [vmem:[%s11266_s6 + $0x68] sm:$0xff] (!%p7645_p5) }
 0x5b2   : > { %8108 = vmatprep.subr.bf16.mxu0 (!%p7645_p5), %v8107_v62  ;;  %v6394_v63 = vrot.slane (!%p7645_p5), %v6385_v5, %v6393_v57  ;;  %v8133_v16 = vpack.c.bf16 (!%p7645_p5), %v6472_v54, %v6471_v46  ;;  %v6555_v57 = vld [vmem:[%s11266_s6 + $0x300] sm:$0xff] (!%p7645_p5)  ;;  %v8175_v54 = vpack.c.bf16 (!%p7645_p5), %v6542_v38, %v6541_v6 }
 0x5b3   : > { %8110 = vmatpush3.bf16.msra.mxu0 (!%p7645_p5), %v8109_v30  ;;  %v6563_v38 = vld [vmem:[%s11266_s6 + $0x340] sm:$0xff] (!%p7645_p5) }
 0x5b4   : > { %8112 = vmatprep.subr.bf16.mxu0 (!%p7645_p5), %v8111_v49  ;;  %8146 = vmatpush3.bf16.msra.mxu1 (!%p7645_p5), %v8145_v2  ;;  %v6401_v49 = vsub.s32 (!%p7645_p5), 3, %v10236_v51  ;;  %v6504_v2 = vld [vmem:[%s11266_s6 + $0x168] sm:$0xff] (!%p7645_p5) }
 0x5b5   : > { %8148 = vmatprep.subr.bf16.mxu1 (!%p7645_p5), %v8147_v33  ;;  %v6405_v33 = vsub.s32 (!%p7645_p5), 4, %v10236_v51  ;;  %v8165_v36 = vpack.c.bf16 (!%p7645_p5), %v6504_v2, %v6503_v4  ;;  %v6525_v4 = vld [vmem:[%s11266_s6 + $0x210] sm:$0xff] (!%p7645_p5)  ;;  %v8205_v2 = vpack.c.bf16 (!%p7645_p5), %v6556_v58, %v6555_v57 }
 0x5b7   : > { %8114 = vmatpush3.bf16.msra.mxu0 (!%p7645_p5), %v8113_v29  ;;  %v8129_v29 = vpack.c.bf16 (!%p7645_p5), %v6470_v9, %v6469_v1 }
 0x5b8   : > { %8116 = vmatprep.subr.bf16.mxu0 (!%p7645_p5), %v8115_v61  ;;  %8150 = vmatpush3.bf16.msra.mxu1 (!%p7645_p5), %v8149_v13  ;;  %v6489_v61 = vld [vmem:[%s11266_s6 + $0xf0] sm:$0xff] (!%p7645_p5)  ;;  %v6474_v13 = vld [vmem:[%s11266_s6 + $0x78] sm:$0xff] (!%p7645_p5) }
 0x5b9   : > { %8152 = vmatprep.subr.bf16.mxu1 (!%p7645_p5), %v8151_v35  ;;  %v8135_v35 = vpack.c.bf16 (!%p7645_p5), %v6490_v18, %v6489_v61  ;;  %v6543_v61 = vld [vmem:[%s11266_s6 + $0x2a0] sm:$0xff] (!%p7645_p5)  ;;  %v6544_v18 = vld [vmem:[%s11266_s6 + $0x2a8] sm:$0xff] (!%p7645_p5) }
 0x5bb   : > { %8118 = vmatpush3.bf16.msra.mxu0 (!%p7645_p5), %v8117_v56  ;;  %v6402_v56 = vrot.slane (!%p7645_p5), %v6385_v5, %v6401_v49 }
 0x5bc   : > { %8120 = vmatprep.subr.bf16.mxu0 (!%p7645_p5), %v8119_v17  ;;  %v6419_v17 = vcombine.low (!%p7645_p5), %v6390_v8, %v6394_v63  ;;  %v6557_v63 = vld [vmem:[%s11266_s6 + $0x310] sm:$0xff] (!%p7645_p5) }
 0x682   : > { %v6160_v0 = vpop.f32.mrb[4].mxu0  ;;  %v6324_v50 = vpop.f32.mrb[4].mxu1 }
 0x683   : > { %v6162_v3 = vpop.f32.mrb[5].mxu0  ;;  %v6326_v28 = vpop.f32.mrb[5].mxu1 }
 0x684   : > { %v6356_v14 = vcombine.low %v6160_v0, %v6162_v3  ;;  %v6164_v37 = vpop.f32.mrb[6].mxu0  ;;  %v6357_v15 = vcombine.low %v6324_v50, %v6326_v28  ;;  %v6328_v40 = vpop.f32.mrb[6].mxu1  ;;  %v6483_v0 = vld [vmem:[%s11266_s6 + $0xc0] sm:$0xff] (!%p7645_p5)  ;;  %v6484_v50 = vld [vmem:[%s11266_s6 + $0xc8] sm:$0xff] (!%p7645_p5)  ;;  %v8121_v3 = vpack.c.bf16 (!%p7645_p5), %v6466_v60, %v6465_v7  ;;  %v6473_v7 = vld [vmem:[%s11266_s6 + $0x70] sm:$0xff] (!%p7645_p5)  ;;  %v6413_v60 = vsub.s32 (!%p7645_p5), 6, %v10236_v51 }
 0x685   : > { %v6165_v32 = vpop.f32.mrb[7].mxu0  ;;  %v6329_v53 = vpop.f32.mrb[7].mxu1  ;;  %v6516_v28 = vld [vmem:[%s11266_s6 + $0x1c8] sm:$0xff] (!%p7645_p5)  ;;  %v8153_v37 = vpack.c.bf16 (!%p7645_p5), %v6498_v44, %v6497_v24  ;;  %v6467_v40 = vld [vmem:[%s11266_s6 + $0x40] sm:$0xff] (!%p7645_p5)  ;;  %v6505_v24 = vld [vmem:[%s11266_s6 + $0x170] sm:$0xff] (!%p7645_p5)  ;;  %v6420_v44 = vcombine.low (!%p7645_p5), %v6398_v42, %v6402_v56 }
 0x686   : > { %v6364_v23 = vrot.slane %v6356_v14, %v10244_v59  ;;  %v6371_v45 = vrot.slane %v6357_v15, %v10244_v59  ;;  %6382 = sbr.rel (%p7645_p5) target bundleno = 2118 (0x846), region = 60  ;;  %v6515_v14 = vld [vmem:[%s11266_s6 + $0x1c0] sm:$0xff] (!%p7645_p5)  ;;  %v8123_v15 = vpack.c.bf16 (!%p7645_p5), %v6484_v50, %v6483_v0  ;;  %v6468_v32 = vld [vmem:[%s11266_s6 + $0x48] sm:$0xff] (!%p7645_p5)  ;;  %8122 = vmatpush3.bf16.msra.mxu0 (!%p7645_p5), %v8121_v3  ;;  %v8167_v0 = vpack.c.bf16 (!%p7645_p5), %v6522_v22, %v6521_v10  ;;  %v6506_v50 = vld [vmem:[%s11266_s6 + $0x178] sm:$0xff] (!%p7645_p5) }
 0x687   : > { %v8155_v53 = vpack.c.bf16 (!%p7645_p5), %v6516_v28, %v6515_v14  ;;  %v8125_v21 = vpack.c.bf16 (!%p7645_p5), %v6468_v32, %v6467_v40  ;;  %8154 = vmatpush3.bf16.msra.mxu1 (!%p7645_p5), %v8153_v37  ;;  %v6427_v3 = vrot.slane (!%p7645_p5), %v6419_v17, %v10244_v59  ;;  %v6539_v51 = vld [vmem:[%s11266_s6 + $0x280] sm:$0xff] (!%p7645_p5)  ;;  %v6540_v14 = vld [vmem:[%s11266_s6 + $0x288] sm:$0xff] (!%p7645_p5)  ;;  %v8137_v28 = vpack.c.bf16 (!%p7645_p5), %v6474_v13, %v6473_v7  ;;  %v6558_v42 = vld [vmem:[%s11266_s6 + $0x318] sm:$0xff] (!%p7645_p5) }
 0x688   : > { %v6372_v19 = vcombine.low %v6364_v23, %v6371_v45  ;;  %v6499_v23 = vld [vmem:[%s11266_s6 + $0x140] sm:$0xff] (!%p7645_p5)  ;;  %v6500_v45 = vld [vmem:[%s11266_s6 + $0x148] sm:$0xff] (!%p7645_p5)  ;;  %8124 = vmatprep.subr.bf16.mxu0 (!%p7645_p5), %v8123_v15  ;;  %v6434_v37 = vrot.slane (!%p7645_p5), %v6420_v44, %v10244_v59  ;;  %v8209_v13 = vpack.c.bf16 (!%p7645_p5), %v6558_v42, %v6557_v63  ;;  %v6545_v17 = vld [vmem:[%s11266_s6 + $0x2b0] sm:$0xff] (!%p7645_p5) }
 0x689   : > { %v8157_v52 = vpack.c.bf16 (!%p7645_p5), %v6500_v45, %v6499_v23  ;;  %8156 = vmatprep.subr.bf16.mxu1 (!%p7645_p5), %v8155_v53  ;;  %v6571_v15 = vld [vmem:[%s11266_s6 + $0x380] sm:$0xff] (!%p7645_p5)  ;;  %v6572_v40 = vld [vmem:[%s11266_s6 + $0x388] sm:$0xff] (!%p7645_p5)  ;;  %v6406_v23 = vrot.slane (!%p7645_p5), %v6385_v5, %v6405_v33  ;;  %v6410_v53 = vrot.slane (!%p7645_p5), %v6385_v5, %v6409_v26  ;;  %v6414_v45 = vrot.slane (!%p7645_p5), %v6385_v5, %v6413_v60  ;;  %v6546_v60 = vld [vmem:[%s11266_s6 + $0x2b8] sm:$0xff] (!%p7645_p5) }
 0x68a   : > { %v6376_v55 = vadd.f32 %v6372_v19, %v2602_v11  ;;  %v6485_v11 = vld [vmem:[%s11266_s6 + $0xd0] sm:$0xff] (!%p7645_p5)  ;;  %v6486_v19 = vld [vmem:[%s11266_s6 + $0xd8] sm:$0xff] (!%p7645_p5)  ;;  %8126 = vmatpush3.bf16.msra.mxu0 (!%p7645_p5), %v8125_v21  ;;  %v6383_v32 = vld [vmem:[#allocation3] sm:$0xff] (!%p7645_p5)  ;;  %v8203_v21 = vpack.c.bf16 (!%p7645_p5), %v6572_v40, %v6571_v15  ;;  %v8179_v26 = vpack.c.bf16 (!%p7645_p5), %v6544_v18, %v6543_v61 }
 0x68b   : > { %v8127_v62 = vpack.c.bf16 (!%p7645_p5), %v6486_v19, %v6485_v11  ;;  %8158 = vmatpush3.bf16.msra.mxu1 (!%p7645_p5), %v8157_v52  ;;  %v6418_v11 = vrot.slane (!%p7645_p5), %v6385_v5, %v6417_v20  ;;  %v8169_v19 = vpack.c.bf16 (!%p7645_p5), %v6506_v50, %v6505_v24  ;;  %v6526_v5 = vld [vmem:[%s11266_s6 + $0x218] sm:$0xff] (!%p7645_p5)  ;;  %v6575_v56 = vld [vmem:[%s11266_s6 + $0x3a0] sm:$0xff] (!%p7645_p5)  ;;  %v6576_v33 = vld [vmem:[%s11266_s6 + $0x3a8] sm:$0xff] (!%p7645_p5) }
 0x68c   : > { %6378 = vst [vmem:[#allocation3 + $0x8] sm:$0xff] %v6376_v55  ;;  %v6517_v55 = vld [vmem:[%s11266_s6 + $0x1d0] sm:$0xff] (!%p7645_p5)  ;;  %v8177_v22 = vpack.c.bf16 (!%p7645_p5), %v6526_v5, %v6525_v4  ;;  %v6528_v7 = vld [vmem:[%s11266_s6 + $0x228] sm:$0xff] (!%p7645_p5)  ;;  %v6547_v40 = vld [vmem:[%s11266_s6 + $0x2c0] sm:$0xff] (!%p7645_p5) }
 0x68d   : > { %v8159_v30 = vpack.c.bf16 %v6518_v25, %v6517_v55  ;;  %8128 = vmatprep.subr.bf16.mxu0 %v8127_v62  ;;  %v6435_v55 = vcombine.low %v6427_v3, %v6434_v37  ;;  %v8171_v25 = vpack.c.bf16 %v6540_v14, %v6539_v51  ;;  %v6436_v62 = vcombine.low %v6406_v23, %v6410_v53  ;;  %v6560_v24 = vld [vmem:[%s11266_s6 + $0x328] sm:$0xff]  ;;  %v6577_v50 = vld [vmem:[%s11266_s6 + $0x3b0] sm:$0xff]  ;;  %v6578_v3 = vld [vmem:[%s11266_s6 + $0x3b8] sm:$0xff] }
 0x68e   : > { %8130 = vmatpush3.bf16.msra.mxu0 %v8129_v29  ;;  %v6437_v1 = vcombine.low %v6414_v45, %v6418_v11  ;;  %v8183_v51 = vpack.c.bf16 %v6546_v60, %v6545_v17  ;;  %v6529_v14 = vld [vmem:[%s11266_s6 + $0x230] sm:$0xff]  ;;  %v8215_v23 = vpack.c.bf16 %v6578_v3, %v6577_v50  ;;  %v6562_v45 = vld [vmem:[%s11266_s6 + $0x338] sm:$0xff]  ;;  %v6583_v61 = vld [vmem:[%s11266_s6 + $0x3e0] sm:$0xff] }
 0x68f   : > { %8160 = vmatprep.subr.bf16.mxu1 %v8159_v30  ;;  %8132 = vmatprep.subr.bf16.mxu0 %v8131_v27  ;;  %v6455_v52 = vadd.f32 %v6435_v55, %v6383_v32  ;;  %v6524_v30 = vld [vmem:[%s11266_s6 + $0x208] sm:$0xff]  ;;  %v6444_v43 = vrot.slane %v6436_v62, %v10244_v59  ;;  %v6574_v27 = vld [vmem:[%s11266_s6 + $0x398] sm:$0xff]  ;;  %v6561_v53 = vld [vmem:[%s11266_s6 + $0x330] sm:$0xff] }
 0x690   : > { %8162 = vmatpush3.bf16.msra.mxu1 %v8161_v47  ;;  %v6451_v48 = vrot.slane %v6437_v1, %v10244_v59  ;;  %v8173_v46 = vpack.c.bf16 %v6524_v30, %v6523_v39  ;;  %v6573_v47 = vld [vmem:[%s11266_s6 + $0x390] sm:$0xff]  ;;  %v6548_v32 = vld [vmem:[%s11266_s6 + $0x2c8] sm:$0xff]  ;;  %v6531_v62 = vld [vmem:[%s11266_s6 + $0x240] sm:$0xff]  ;;  %v8217_v30 = vpack.c.bf16 %v6562_v45, %v6561_v53 }
 0x691   : > { %8164 = vmatprep.subr.bf16.mxu1 %v8163_v12  ;;  %v6457_v9 = vmax.f32 %v6455_v52, 0.0  ;;  %v8207_v8 = vpack.c.bf16 %v6574_v27, %v6573_v47  ;;  %v8187_v52 = vpack.c.bf16 %v6548_v32, %v6547_v40  ;;  %v6532_v1 = vld [vmem:[%s11266_s6 + $0x248] sm:$0xff]  ;;  %v6551_v27 = vld [vmem:[%s11266_s6 + $0x2e0] sm:$0xff]  ;;  %v6565_v5 = vld [vmem:[%s11266_s6 + $0x350] sm:$0xff] }
 0x692   : > { %8134 = vmatpush3.bf16.msra.mxu0 %v8133_v16  ;;  %v6452_v10 = vcombine.low %v6444_v43, %v6451_v48  ;;  %v6527_v16 = vld [vmem:[%s11266_s6 + $0x220] sm:$0xff]  ;;  %v8189_v58 = vpack.c.bf16 %v6532_v1, %v6531_v62  ;;  %v6581_v43 = vld [vmem:[%s11266_s6 + $0x3d0] sm:$0xff]  ;;  %v6582_v48 = vld [vmem:[%s11266_s6 + $0x3d8] sm:$0xff] }
 0x693   : > { %8136 = vmatprep.subr.bf16.mxu0 %v8135_v35  ;;  %v6603_v34 = vrot.slane %v6457_v9, %v10244_v59  ;;  %v6596_v31 = vcombine.high %v6457_v9, %v6457_v9  ;;  %v6384_v20 = vld [vmem:[#allocation3 + $0x8] sm:$0xff]  ;;  %v6559_v35 = vld [vmem:[%s11266_s6 + $0x320] sm:$0xff]  ;;  %v8223_v4 = vpack.c.bf16 %v6582_v48, %v6581_v43  ;;  %v6586_v17 = vld [vmem:[%s11266_s6 + $0x3f8] sm:$0xff] }
 0x694   : > { %8166 = vmatpush3.bf16.msra.mxu1 %v8165_v36  ;;  %v8211_v36 = vpack.c.bf16 %v6576_v33, %v6575_v56  ;;  %v6456_v44 = vadd.f32 %v6452_v10, %v6384_v20  ;;  %v8213_v15 = vpack.c.bf16 %v6560_v24, %v6559_v35  ;;  %v6584_v18 = vld [vmem:[%s11266_s6 + $0x3e8] sm:$0xff]  ;;  %v6535_v63 = vld [vmem:[%s11266_s6 + $0x260] sm:$0xff]  ;;  %v6554_v56 = vld [vmem:[%s11266_s6 + $0x2f8] sm:$0xff] }
 0x695   : > { %8168 = vmatprep.subr.bf16.mxu1 %v8167_v0  ;;  %v6611_v49 = vcombine.high %v6603_v34, %v6603_v34  ;;  %v6610_v29 = vrot.slane %v6596_v31, %v10244_v59  ;;  %v8181_v0 = vpack.c.bf16 %v6528_v7, %v6527_v16  ;;  %v6550_v31 = vld [vmem:[%s11266_s6 + $0x2d8] sm:$0xff]  ;;  %v6536_v42 = vld [vmem:[%s11266_s6 + $0x268] sm:$0xff]  ;;  %v8227_v33 = vpack.c.bf16 %v6584_v18, %v6583_v61  ;;  %v6537_v20 = vld [vmem:[%s11266_s6 + $0x270] sm:$0xff] }
 0x696   : > { %8138 = vmatpush3.bf16.msra.mxu0 %v8137_v28  ;;  %v6530_v28 = vld [vmem:[%s11266_s6 + $0x238] sm:$0xff]  ;;  %v6458_v37 = vmax.f32 %v6456_v44, 0.0  ;;  %v6568_v16 = vld [vmem:[%s11266_s6 + $0x368] sm:$0xff]  ;;  %v8197_v7 = vpack.c.bf16 %v6536_v42, %v6535_v63  ;;  %v6569_v44 = vld [vmem:[%s11266_s6 + $0x370] sm:$0xff] }
 0x697   : > { %8172 = vmatprep.subr.bf16.mxu0 %v8171_v25  ;;  %6702 = vmatprep.mubr.f32.mxu0 %v6611_v49  ;;  %v6612_v12 = vcombine.high %v6610_v29, %v6610_v29  ;;  %v8185_v55 = vpack.c.bf16 %v6530_v28, %v6529_v14  ;;  %v6579_v25 = vld [vmem:[%s11266_s6 + $0x3c0] sm:$0xff] }
 0x698   : > { %8170 = vmatpush3.bf16.msra.mxu1 %v8169_v19  ;;  %v11139_v11 = vrot.slane %v6458_v37, %v10244_v59  ;;  %v6613_v19 = vcombine.high %v6458_v37, %v6458_v37  ;;  %v7646_v14 = vld [vmem:[%s11267_s7] ss:$0 sm:$0xff] }
 0x699   : > { %8204 = vmatprep.subr.bf16.mxu1 %v8203_v21  ;;  %6703 = vmatmul.mubr.f32.vlgmr.msra.gmra.mrb[0].mxu0 %v6603_v34  ;;  %v6580_v21 = vld [vmem:[%s11266_s6 + $0x3c8] sm:$0xff]  ;;  %v6549_v34 = vld [vmem:[%s11266_s6 + $0x2d0] sm:$0xff] }
 0x69a   : > { %6772 = vmatprep.mubr.f32.mxu1 %v6612_v12  ;;  %8174 = vmatpush3.bf16.msra.mxu0 %v8173_v46  ;;  %v6628_v9 = vcombine.high %v11139_v11, %v11139_v11  ;;  %v11156_v39 = vrot.slane %v6613_v19, %v10244_v59  ;;  %v8219_v6 = vpack.c.bf16 %v6580_v21, %v6579_v25  ;;  %v6564_v59 = vld [vmem:[%s11266_s6 + $0x348] sm:$0xff]  ;;  %v6534_v46 = vld [vmem:[%s11266_s6 + $0x258] sm:$0xff]  ;;  %v6919_v19 = vand.u32 127, %v2555_v41 }
 0x69b   : > { %6773 = vmatmul.mubr.f32.vlgmr.msra.gmra.mrb[0].mxu1 %v6610_v29  ;;  %8176 = vmatprep.subr.bf16.mxu0 %v8175_v54  ;;  %v8191_v49 = vpack.c.bf16 %v6550_v31, %v6549_v34  ;;  %v6533_v29 = vld [vmem:[%s11266_s6 + $0x250] sm:$0xff]  ;;  %v8221_v47 = vpack.c.bf16 %v6564_v59, %v6563_v38  ;;  %v6552_v54 = vld [vmem:[%s11266_s6 + $0x2e8] sm:$0xff]  ;;  %v6566_v12 = vld [vmem:[%s11266_s6 + $0x358] sm:$0xff] }
 0x69c   : > { %8206 = vmatpush3.bf16.msra.mxu1 %v8205_v2  ;;  %6842 = vmatprep.mubr.f32.mxu0 %v6628_v9  ;;  %v6629_v57 = vcombine.high %v11156_v39, %v11156_v39  ;;  %v8193_v2 = vpack.c.bf16 %v6534_v46, %v6533_v29  ;;  %v8225_v10 = vpack.c.bf16 %v6566_v12, %v6565_v5  ;;  %vm6920_vm2 = vcmp.ge.s32.totalorder %v6919_v19, 3 }
 0x69d   : > { %8208 = vmatprep.subr.bf16.mxu1 %v8207_v8  ;;  %v8195_v8 = vpack.c.bf16 %v6552_v54, %v6551_v27  ;;  %vm6921_vm3 = vcmp.lt.s32.totalorder %v6919_v19, 7 }
 0x69e   : > { %8178 = vmatpush3.bf16.msra.mxu0 %v8177_v22  ;;  %6912 = vmatprep.mubr.f32.mxu1 %v6629_v57  ;;  %v6553_v22 = vld [vmem:[%s11266_s6 + $0x2f0] sm:$0xff]  ;;  %vm11244_vm4 = vmand %vm6920_vm2, %vm6921_vm3 }
 0x69f   : > { %8180 = vmatprep.subr.bf16.mxu0 %v8179_v26  ;;  %v6567_v26 = vld [vmem:[%s11266_s6 + $0x360] sm:$0xff]  ;;  %v8199_v60 = vpack.c.bf16 %v6554_v56, %v6553_v22 }
 0x6a0   : > { %8210 = vmatpush3.bf16.msra.mxu1 %v8209_v13  ;;  %v6585_v13 = vld [vmem:[%s11266_s6 + $0x3f0] sm:$0xff]  ;;  %v8229_v35 = vpack.c.bf16 %v6568_v16, %v6567_v26 }
 0x6a1   : > { %8212 = vmatprep.subr.bf16.mxu1 %v8211_v36  ;;  %v6538_v36 = vld [vmem:[%s11266_s6 + $0x278] sm:$0xff]  ;;  %v8231_v24 = vpack.c.bf16 %v6586_v17, %v6585_v13 }
 0x6a2   : > { %8182 = vmatpush3.bf16.msra.mxu0 %v8181_v0  ;;  %v6570_v0 = vld [vmem:[%s11266_s6 + $0x378] sm:$0xff]  ;;  %v8201_v50 = vpack.c.bf16 %v6538_v36, %v6537_v20 }
 0x6a3   : > { %8184 = vmatprep.subr.bf16.mxu0 %v8183_v51  ;;  %v8233_v3 = vpack.c.bf16 %v6570_v0, %v6569_v44 }
 0x6a4   : > { %8214 = vmatpush3.bf16.msra.mxu1 %v8213_v15 }
 0x6a5   : > { %8216 = vmatprep.subr.bf16.mxu1 %v8215_v23 }
 0x6a6   : > { %8186 = vmatpush3.bf16.msra.mxu0 %v8185_v55 }
 0x6a7   : > { %8188 = vmatprep.subr.bf16.mxu0 %v8187_v52 }
 0x6a8   : > { %8218 = vmatpush3.bf16.msra.mxu1 %v8217_v30 }
 0x6a9   : > { %8220 = vmatprep.subr.bf16.mxu1 %v8219_v6 }
 0x6aa   : > { %8190 = vmatpush3.bf16.msra.mxu0 %v8189_v58 }
 0x6ab   : > { %8192 = vmatprep.subr.bf16.mxu0 %v8191_v49 }
 0x6ac   : > { %8222 = vmatpush3.bf16.msra.mxu1 %v8221_v47 }
 0x6ad   : > { %8224 = vmatprep.subr.bf16.mxu1 %v8223_v4 }
 0x6ae   : > { %8194 = vmatpush3.bf16.msra.mxu0 %v8193_v2 }
 0x6af   : > { %8196 = vmatprep.subr.bf16.mxu0 %v8195_v8 }
 0x6b0   : > { %8226 = vmatpush3.bf16.msra.mxu1 %v8225_v10 }
 0x6b1   : > { %8228 = vmatprep.subr.bf16.mxu1 %v8227_v33 }
 0x6b2   : > { %8198 = vmatpush3.bf16.msra.mxu0 %v8197_v7 }
 0x6b3   : > { %8200 = vmatprep.subr.bf16.mxu0 %v8199_v60 }
 0x6b4   : > { %8230 = vmatpush3.bf16.msra.mxu1 %v8229_v35 }
 0x6b5   : > { %8232 = vmatprep.subr.bf16.mxu1 %v8231_v24 }
 0x6b6   : > { %8202 = vmatpush3.bf16.msra.mxu0 %v8201_v50 }
 0x6b8   : > { %8234 = vmatpush3.bf16.msra.mxu1 %v8233_v3 }
 0x6b9   : > { %6843 = vmatmul.mubr.f32.vlgmr.msra.gmra.mrb[2].mxu0 %v11139_v11 }
 0x6bb   : > { %6913 = vmatmul.mubr.f32.vlgmr.msra.gmra.mrb[2].mxu1 %v11156_v39 }
 0x76c   : > { %v7835_v51 = vpop.f32.mrb[0].mxu0 }
 0x76d   : > { %v7836_v28 = vpop.f32.mrb[1].mxu0 }
 0x76e   : > { %v7837_v37 = vadd.f32 %v7836_v28, %v7835_v51  ;;  %v7870_v15 = vpop.f32.mrb[0].mxu1 }
 0x76f   : > { %v7871_v40 = vpop.f32.mrb[1].mxu1 }
 0x770   : > { %v6705_v32 = vadd.f32 %v7837_v37, %v7646_v14  ;;  %v7872_v23 = vadd.f32 %v7871_v40, %v7870_v15 }
 0x772   : > { %v6775_v53 = vadd.f32 %v7872_v23, %v6705_v32 }
 0x78c   : > { %v7905_v45 = vpop.f32.mrb[2].mxu0 }
 0x78d   : > { %v7906_v55 = vpop.f32.mrb[3].mxu0 }
 0x78e   : > { %v7907_v25 = vadd.f32 %v7906_v55, %v7905_v45  ;;  %v7940_v11 = vpop.f32.mrb[2].mxu1 }
 0x78f   : > { %v7941_v21 = vpop.f32.mrb[3].mxu1 }
 0x790   : > { %v6845_v52 = vadd.f32 %v7907_v25, %v6775_v53  ;;  %v7942_v62 = vadd.f32 %v7941_v21, %v7940_v11 }
 0x792   : > { %v6915_v1 = vadd.f32 %v7942_v62, %v6845_v52 }
 0x794   : > { %v6923_v39 = vmul.f32 %v6915_v1, %v6915_v1 }
 0x796   : > { %v6924_v30 = vsel %vm11244_vm4, %v6923_v39, 0.0 }
 0x797   : > { %v6926_v41 = vsel %vm6925_vm5, %v6924_v30, 0.0 }
 0x798   : > { %6927 = vadd.xlane.f32.xlu0 %v6926_v41 }
 0x825   : > { %v6928_v34 = vpop.xlane.xlu0 %6927 }
 0x826   : > { %8491 = vrsqrt.f32 %v6928_v34  ;;  %vm6931_vm6 = vcmp.eq.f32.partialorder %v6928_v34, inf  ;;  %v6934_v38 = vand.u32 2147483648, %v6928_v34  ;;  %vm6933_vm7 = vcmp.eq.f32.partialorder %v6928_v34, 0.0 }
 0x830   : > { %v8492_v31 = vpop.eup %8491 }
 0x831   : > { %v6930_v6 = vmul.f32 %v8492_v31, %v6928_v34 }
 0x833   : > { %v6932_v59 = vsel %vm6931_vm6, %v6928_v34, %v6930_v6 }
 0x834   : > { %v6935_v57 = vsel %vm6933_vm7, %v6934_v38, %v6932_v59 }
 0x835   : > { %v6936_v58 = vmax.f32 %v6935_v57, 1e-12 }
 0x837   : > { %8493 = vrcp.f32 %v6936_v58 }
 0x841   : > { %v8494_v43 = vpop.eup %8493 }
 0x842   : > { %v6939_v48 = vmul.f32 %v8494_v43, %v6915_v1 }
 0x844   : > { %v6940_v49 = vsel %vm11244_vm4, %v6939_v48, %v6915_v1 }
 0x845   : > { %6941 = vst.msk [vmem:[%s11268_s8] sm:$0x3] %vm6925_vm5, %v6940_v49 }
 0x846 PF: > { %s18_s27 = sadd.s32 1, %s8501_s27  }
 0x847   : > { %p15_p6 = scmp.ge.s32.totalorder %s18_s27, 4  }
 0x849   :  { %17 = sbr.rel (!%p15_p6) target bundleno = 1 (0x1), region = 88 }

</bundles_post_ra>
